<compile_context>
chip_gen: v5e
topology: v5e:2x2
jax: 0.10.0
libtpu: 0.0.40
codegen_flags: <defaults>
</compile_context>

<pallas_src>
import functools

import jax
import jax.numpy as jnp
from jax import lax
from jax.experimental import pallas as pl
from jax.experimental.pallas import tpu as pltpu


def lstm_fc_kernel(x_ref, w0x_ref, whh0_ref, b0_ref, wih1_ref, whh1_ref, b1_ref,
                   out_ref,
                   h0_ref, c0_ref, h1_ref, c1_ref, xproj_ref,
                   *, hidden_size, unroll):
    """One (batch-tile, time-chunk) grid step of the 2-layer LSTM.

    x_ref:      (C, Bt, D)   time-major input chunk (auto-pipelined by BlockSpec)
    w0x_ref:    (D, 4H)      layer-0 input weights, transposed (PyTorch gate order i,f,g,o)
    whh0_ref:   (H, 4H)      layer-0 recurrent weights, transposed
    b0_ref:     (1, 4H)      layer-0 combined bias (b_ih + b_hh)
    wih1_ref:   (H, 4H)      layer-1 input weights, transposed
    whh1_ref:   (H, 4H)      layer-1 recurrent weights, transposed
    b1_ref:     (1, 4H)      layer-1 combined bias
    out_ref:    (Bt, H)      layer-1 hidden state after the last timestep (lane-dense output)
    h*/c*_ref:  (Bt, H)      carried LSTM state (VMEM scratch, persists across time chunks)
    xproj_ref:  (C, Bt, 4H)  scratch: hoisted layer-0 input projection, time-major

    NOTE: the g-gate columns (lanes 2H:3H) of every weight/bias were pre-scaled by 2 in
    init_params, so a single sigmoid pass + (2*act - 1) on those lanes reproduces tanh.
    """
    H = hidden_size
    G = 4 * H
    C, Bt, D = x_ref.shape
    t_chunk = pl.program_id(1)

    # Reset carried state at the start of each batch tile's time sweep.
    @pl.when(t_chunk == 0)
    def _():
        h0_ref[...] = jnp.zeros_like(h0_ref)
        c0_ref[...] = jnp.zeros_like(c0_ref)
        h1_ref[...] = jnp.zeros_like(h1_ref)
        c1_ref[...] = jnp.zeros_like(c1_ref)

    # Hoisted layer-0 input projection for the whole chunk (bias folded in): one big MXU
    # matmul off the serial chain. Stored time-major so per-step reads are dense tiles.
    x2d = x_ref[...].reshape(C * Bt, D)
    proj = jnp.dot(x2d, w0x_ref[...], preferred_element_type=jnp.float32) + b0_ref[...]
    xproj_ref[...] = proj.reshape(C, Bt, G)

    # Loop invariants hoisted out of the per-timestep path.
    whh0 = whh0_ref[...]
    wih1 = wih1_ref[...]
    whh1 = whh1_ref[...]
    b1b = jnp.broadcast_to(b1_ref[...], (Bt, G))
    lane = lax.broadcasted_iota(jnp.int32, (Bt, G), 1)
    g_lanes = (lane >= 2 * H) & (lane < 3 * H)   # cell-candidate ("g") lanes

    def gate_act(gates):
        # Single full-width EUP pass: sigmoid on all 4H lanes, then a VPU fixup on the
        # pre-scaled g lanes (tanh(x) = 2*sigmoid(2x) - 1).
        # TODO(synk): pl.reciprocal(1 + exp(-x), approx=True) is slightly cheaper but its
        # approximation error is hard to bound over the recurrence; kept exact sigmoid.
        act = jax.nn.sigmoid(gates)
        act = jnp.where(g_lanes, 2.0 * act - 1.0, act)
        return (act[:, 0 * H:1 * H], act[:, 1 * H:2 * H],
                act[:, 2 * H:3 * H], act[:, 3 * H:4 * H])

    def step(tt, carry):
        h0, c0, h1, c1 = carry

        # Layer-1 recurrent term: depends only on h1(t-1), so the scheduler can overlap it
        # with all of the layer-0 work below (off the serial critical chain). No concat.
        rec1 = jnp.dot(h1, whh1, preferred_element_type=jnp.float32) + b1b

        # Layer 0: only the (Bt,H)@(H,4H) recurrent matmul sits on the serial chain; the
        # input projection is a dense, tile-aligned (Bt,4H) load from time-major scratch.
        gates0 = xproj_ref[tt] + jnp.dot(h0, whh0, preferred_element_type=jnp.float32)
        i0, f0, g0, o0 = gate_act(gates0)
        c0 = f0 * c0 + i0 * g0
        h0 = o0 * jnp.tanh(c0)

        # Layer 1: a single (Bt,H)@(H,4H) matmul between h0(t) and the layer-1 gates.
        gates1 = jnp.dot(h0, wih1, preferred_element_type=jnp.float32) + rec1
        i1, f1, g1, o1 = gate_act(gates1)
        c1 = f1 * c1 + i1 * g1
        h1 = o1 * jnp.tanh(c1)
        return h0, c0, h1, c1

    carry0 = (h0_ref[...], c0_ref[...], h1_ref[...], c1_ref[...])
    # fori_loop (not a Python for) bounds vreg live ranges; modest unroll keeps cross-step
    # LLO scheduling without spilling when the time chunk is large.
    h0, c0, h1, c1 = lax.fori_loop(0, C, step, carry0, unroll=unroll)

    h0_ref[...] = h0
    c0_ref[...] = c0
    h1_ref[...] = h1
    c1_ref[...] = c1
    out_ref[...] = h1   # lane-dense (Bt, H); the Linear(H, 1) runs in the XLA wrapper


def _pick_time_chunk(T, max_chunk=64):
    """Largest multiple-of-8 divisor of T (<= max_chunk), else the whole sequence.

    max_chunk=64 keeps the xproj scratch + double-buffered x blocks comfortably inside
    v7x's 64 MiB VMEM even at bt=128; on v5e/v6e (128 MiB) callers may pass a larger chunk
    for long sequences to amortize the ~0.35 us per-grid-step overhead.
    """
    best = None
    c = 8
    while c <= min(T, max_chunk):
        if T % c == 0:
            best = c
        c += 8
    return best if best is not None else T


def _pick_batch_tile(Bp):
    """Largest multiple-of-8 divisor of Bp, capped at 128, and (when Bp >= 16) capped at
    Bp//2 so the 'parallel' batch axis has >= 2 blocks and both v7x TensorCores get work."""
    if Bp < 16:
        return Bp
    cap = min(128, Bp // 2)
    best = 8
    c = 8
    while c <= cap:
        if Bp % c == 0:
            best = c
        c += 8
    return best


def _vmem_limit_bytes(bt, chunk, D, H):
    """Explicit VMEM budget: double-buffered x blocks + xproj scratch + weights + state,
    with headroom, capped below v7x's 64 MiB physical VMEM."""
    G = 4 * H
    d_pad = max(128, ((D + 127) // 128) * 128)          # lane padding of the x block
    x_block = bt * chunk * d_pad * 4
    xproj = chunk * bt * G * 4
    weights = (D * G + 3 * H * G + 2 * G) * 4
    small = (4 * bt * H + bt * H) * 4                   # state scratch + out block
    need = 2 * x_block + xproj + 2 * weights + 2 * small
    return int(min(56 * 2**20, max(16 * 2**20, need * 5 // 4 + (2 << 20))))


def lstm_model_forward(x, params, hidden_size, chunk=None):
    """x: (B, T, D) float32, batch_first — same layout as the PyTorch module."""
    B, T, D = x.shape
    H = hidden_size
    G = 4 * H

    if chunk is None:
        chunk = _pick_time_chunk(T)
    assert T % chunk == 0, (T, chunk)

    # Pad batch to a multiple of 8 sublanes so the recurrence runs on full tiles.
    Bp = ((B + 7) // 8) * 8
    if Bp != B:
        x = jnp.pad(x, ((0, Bp - B), (0, 0), (0, 0)))
    bt = _pick_batch_tile(Bp)

    # Time-major input (one XLA transpose) -> dense, tile-aligned per-step xproj reads.
    x_tm = jnp.transpose(x, (1, 0, 2))   # (T, Bp, D)

    # Modest in-loop unroll that divides the chunk (bounds vreg pressure).
    unroll = max(u for u in (1, 2, 4, 8) if chunk % u == 0)

    kernel = functools.partial(lstm_fc_kernel, hidden_size=H, unroll=unroll)
    grid = (Bp // bt, T // chunk)   # (parallel batch tiles, sequential time chunks)

    h_last = pl.pallas_call(
        kernel,
        out_shape=jax.ShapeDtypeStruct((Bp, H), jnp.float32),
        grid_spec=pltpu.PrefetchScalarGridSpec(
            num_scalar_prefetch=0,
            grid=grid,
            in_specs=[
                pl.BlockSpec((chunk, bt, D), lambda b, t: (t, b, 0)),   # x, time-major
                pl.BlockSpec((D, G), lambda b, t: (0, 0)),              # w0x
                pl.BlockSpec((H, G), lambda b, t: (0, 0)),              # whh0
                pl.BlockSpec((1, G), lambda b, t: (0, 0)),              # b0
                pl.BlockSpec((H, G), lambda b, t: (0, 0)),              # wih1
                pl.BlockSpec((H, G), lambda b, t: (0, 0)),              # whh1
                pl.BlockSpec((1, G), lambda b, t: (0, 0)),              # b1
            ],
            out_specs=pl.BlockSpec((bt, H), lambda b, t: (b, 0)),
            scratch_shapes=[
                pltpu.VMEM((bt, H), jnp.float32),           # h0
                pltpu.VMEM((bt, H), jnp.float32),           # c0
                pltpu.VMEM((bt, H), jnp.float32),           # h1
                pltpu.VMEM((bt, H), jnp.float32),           # c1
                pltpu.VMEM((chunk, bt, G), jnp.float32),    # time-major layer-0 projection
            ],
        ),
        compiler_params=pltpu.CompilerParams(
            dimension_semantics=("parallel", "arbitrary"),
            vmem_limit_bytes=_vmem_limit_bytes(bt, chunk, D, H)),
    )(x_tm, params["w0x"], params["whh0"], params["b0"],
      params["wih1"], params["whh1"], params["b1"])

    # fc(out[:, -1, :]) — kept in XLA so the kernel output stays lane-dense.
    return h_last[:B] @ params["fcw_t"] + params["fcb"]


def init_params(key, input_size, hidden_size):
    """PyTorch-style uniform(-1/sqrt(H), 1/sqrt(H)) init.

    Returns (raw, kernel_params): `raw` keeps nn.LSTM / nn.Linear shaped tensors (used by
    the pure-JAX reference); `kernel_params` is the transposed layout consumed by the
    Pallas kernel, with the g-gate columns pre-scaled by 2 (single-sigmoid activation trick).
    """
    H = hidden_size
    k = 1.0 / jnp.sqrt(jnp.float32(H))
    keys = jax.random.split(key, 10)

    def u(kk, shape):
        return jax.random.uniform(kk, shape, jnp.float32, -k, k)

    raw = {
        "w_ih0": u(keys[0], (4 * H, input_size)),
        "w_hh0": u(keys[1], (4 * H, H)),
        "b_ih0": u(keys[2], (4 * H,)),
        "b_hh0": u(keys[3], (4 * H,)),
        "w_ih1": u(keys[4], (4 * H, H)),
        "w_hh1": u(keys[5], (4 * H, H)),
        "b_ih1": u(keys[6], (4 * H,)),
        "b_hh1": u(keys[7], (4 * H,)),
        "fc_w":  u(keys[8], (1, H)),
        "fc_b":  u(keys[9], (1,)),
    }

    # g-gate (cell-candidate) columns scaled by 2: tanh(x) = 2*sigmoid(2x) - 1 in-kernel.
    gscale = jnp.concatenate(
        [jnp.ones((1, 2 * H), jnp.float32),
         jnp.full((1, H), 2.0, jnp.float32),
         jnp.ones((1, H), jnp.float32)], axis=1)                         # (1, 4H)

    kparams = {
        "w0x":   raw["w_ih0"].T * gscale,                                # (D, 4H)
        "whh0":  raw["w_hh0"].T * gscale,                                # (H, 4H)
        "b0":    (raw["b_ih0"] + raw["b_hh0"]).reshape(1, 4 * H) * gscale,
        "wih1":  raw["w_ih1"].T * gscale,                                # (H, 4H)
        "whh1":  raw["w_hh1"].T * gscale,                                # (H, 4H)
        "b1":    (raw["b_ih1"] + raw["b_hh1"]).reshape(1, 4 * H) * gscale,
        "fcw_t": raw["fc_w"].T,                                          # (H, 1)
        "fcb":   raw["fc_b"].reshape(1, 1),
    }
    # TODO(synk): optional bf16 cast of the matmul operands (keep c-state f32) for v6e/v7x;
    # kept f32 here to preserve the tight numerical check against the reference.
    return raw, kparams


def reference_forward(x, raw, hidden_size):
    """Pure-JAX reference with nn.LSTM semantics (gate order i,f,g,o)."""
    H = hidden_size
    B, T, _ = x.shape

    def cell(x_t, h, c, w_ih, w_hh, b_ih, b_hh):
        gates = x_t @ w_ih.T + h @ w_hh.T + b_ih + b_hh
        i = jax.nn.sigmoid(gates[:, 0 * H:1 * H])
        f = jax.nn.sigmoid(gates[:, 1 * H:2 * H])
        g = jnp.tanh(gates[:, 2 * H:3 * H])
        o = jax.nn.sigmoid(gates[:, 3 * H:4 * H])
        c = f * c + i * g
        return o * jnp.tanh(c), c

    h0 = c0 = h1 = c1 = jnp.zeros((B, H), jnp.float32)
    for t in range(T):
        h0, c0 = cell(x[:, t, :], h0, c0,
                      raw["w_ih0"], raw["w_hh0"], raw["b_ih0"], raw["b_hh0"])
        h1, c1 = cell(h0, h1, c1,
                      raw["w_ih1"], raw["w_hh1"], raw["b_ih1"], raw["b_hh1"])
    return h1 @ raw["fc_w"].T + raw["fc_b"]


if __name__ == "__main__":
    # Small shapes consistent with the module (hidden_size=64 default, 2 layers).
    # T=16 with chunk=8 exercises the carried-state / pipelined time-chunk grid.
    B, T, D_IN, HIDDEN = 2, 16, 16, 64

    key = jax.random.PRNGKey(0)
    kx, kp = jax.random.split(key)
    x = jax.random.normal(kx, (B, T, D_IN), jnp.float32)
    raw, kparams = init_params(kp, D_IN, HIDDEN)

    fwd = jax.jit(functools.partial(lstm_model_forward, hidden_size=HIDDEN, chunk=8))
    out = jax.block_until_ready(fwd(x, kparams))

    ref = reference_forward(x, raw, HIDDEN)
    assert out.shape == (B, 1)
    assert jnp.allclose(out, ref, atol=5e-4, rtol=5e-4), (out, ref)

    print("KERNEL_OK")
</pallas_src>

<mosaic_0001>
module attributes {stable_mosaic.version = 11 : i64} {
  func.func @lstm_fc_kernel(%arg0: i32, %arg1: i32, %arg2: memref<8x8x16xf32, #tpu.memory_space<vmem>>, %arg3: memref<16x256xf32, #tpu.memory_space<vmem>>, %arg4: memref<64x256xf32, #tpu.memory_space<vmem>>, %arg5: memref<1x256xf32, #tpu.memory_space<vmem>>, %arg6: memref<64x256xf32, #tpu.memory_space<vmem>>, %arg7: memref<64x256xf32, #tpu.memory_space<vmem>>, %arg8: memref<1x256xf32, #tpu.memory_space<vmem>>, %arg9: memref<8x64xf32, #tpu.memory_space<vmem>>, %arg10: memref<8x64xf32, #tpu.memory_space<vmem>>, %arg11: memref<8x64xf32, #tpu.memory_space<vmem>>, %arg12: memref<8x64xf32, #tpu.memory_space<vmem>>, %arg13: memref<8x64xf32, #tpu.memory_space<vmem>>, %arg14: memref<8x8x256xf32, #tpu.memory_space<vmem>>) attributes {dimension_semantics = [#tpu.dimension_semantics<parallel>, #tpu.dimension_semantics<arbitrary>], iteration_bounds = array<i64: 1, 2>, scalar_prefetch = 0 : i64, scratch_operands = 5 : i64, tpu.core_type = #tpu.core_type<tc>, window_params = [{transform_indices = @transform_0, window_bounds = array<i64: 8, 8, 16>}, {pipeline_mode = #tpu.pipeline_mode<synchronous>, transform_indices = @transform_1, window_bounds = array<i64: 16, 256>}, {pipeline_mode = #tpu.pipeline_mode<synchronous>, transform_indices = @transform_2, window_bounds = array<i64: 64, 256>}, {pipeline_mode = #tpu.pipeline_mode<synchronous>, transform_indices = @transform_3, window_bounds = array<i64: 1, 256>}, {pipeline_mode = #tpu.pipeline_mode<synchronous>, transform_indices = @transform_4, window_bounds = array<i64: 64, 256>}, {pipeline_mode = #tpu.pipeline_mode<synchronous>, transform_indices = @transform_5, window_bounds = array<i64: 64, 256>}, {pipeline_mode = #tpu.pipeline_mode<synchronous>, transform_indices = @transform_6, window_bounds = array<i64: 1, 256>}, {transform_indices = @transform_7, window_bounds = array<i64: 8, 64>}]} {
    %c0_i32 = arith.constant 0 : i32
    %0 = arith.cmpi eq, %arg1, %c0_i32 : i32
    %1 = arith.extui %0 : i1 to i32
    %c0_i32_0 = arith.constant 0 : i32
    %2 = arith.cmpi ne, %1, %c0_i32_0 : i32
    scf.if %2 {
      %cst_125 = arith.constant 0.000000e+00 : f32
      %409 = vector.broadcast %cst_125 : f32 to vector<8x64xf32>
      %c0_126 = arith.constant 0 : index
      %c0_127 = arith.constant 0 : index
      %410 = vector.load %arg10[%c0_126, %c0_127] : memref<8x64xf32, #tpu.memory_space<vmem>>, vector<8x64xf32>
      tpu.vector_store %arg10[%c0_126, %c0_127], %409 {strides = array<i32>} : memref<8x64xf32, #tpu.memory_space<vmem>>, vector<8x64xf32>,
      %cst_128 = arith.constant 0.000000e+00 : f32
      %411 = vector.broadcast %cst_128 : f32 to vector<8x64xf32>
      %c0_129 = arith.constant 0 : index
      %c0_130 = arith.constant 0 : index
      %412 = vector.load %arg11[%c0_129, %c0_130] : memref<8x64xf32, #tpu.memory_space<vmem>>, vector<8x64xf32>
      tpu.vector_store %arg11[%c0_129, %c0_130], %411 {strides = array<i32>} : memref<8x64xf32, #tpu.memory_space<vmem>>, vector<8x64xf32>,
      %cst_131 = arith.constant 0.000000e+00 : f32
      %413 = vector.broadcast %cst_131 : f32 to vector<8x64xf32>
      %c0_132 = arith.constant 0 : index
      %c0_133 = arith.constant 0 : index
      %414 = vector.load %arg12[%c0_132, %c0_133] : memref<8x64xf32, #tpu.memory_space<vmem>>, vector<8x64xf32>
      tpu.vector_store %arg12[%c0_132, %c0_133], %413 {strides = array<i32>} : memref<8x64xf32, #tpu.memory_space<vmem>>, vector<8x64xf32>,
      %cst_134 = arith.constant 0.000000e+00 : f32
      %415 = vector.broadcast %cst_134 : f32 to vector<8x64xf32>
      %c0_135 = arith.constant 0 : index
      %c0_136 = arith.constant 0 : index
      %416 = vector.load %arg13[%c0_135, %c0_136] : memref<8x64xf32, #tpu.memory_space<vmem>>, vector<8x64xf32>
      tpu.vector_store %arg13[%c0_135, %c0_136], %415 {strides = array<i32>} : memref<8x64xf32, #tpu.memory_space<vmem>>, vector<8x64xf32>,
    } else {
    }
    %c0 = arith.constant 0 : index
    %c0_1 = arith.constant 0 : index
    %c0_2 = arith.constant 0 : index
    %3 = vector.load %arg2[%c0, %c0_1, %c0_2] : memref<8x8x16xf32, #tpu.memory_space<vmem>>, vector<8x8x16xf32>
    %4 = vector.shape_cast %3 : vector<8x8x16xf32> to vector<64x16xf32>
    %c0_3 = arith.constant 0 : index
    %c0_4 = arith.constant 0 : index
    %5 = vector.load %arg3[%c0_3, %c0_4] : memref<16x256xf32, #tpu.memory_space<vmem>>, vector<16x256xf32>
    %cst = arith.constant dense<0.000000e+00> : vector<64x256xf32>
    %6 = tpu.matmul %4, %5, %cst {dimension_numbers = #tpu.dot_dimension_numbers<[1], [0], [0], [1], [0, 0, 1, 1], [], []>} : vector<64x16xf32>, vector<16x256xf32>, vector<64x256xf32> -> vector<64x256xf32>
    %c0_5 = arith.constant 0 : index
    %c0_6 = arith.constant 0 : index
    %7 = vector.load %arg5[%c0_5, %c0_6] : memref<1x256xf32, #tpu.memory_space<vmem>>, vector<1x256xf32>
    %8 = vector.broadcast %7 : vector<1x256xf32> to vector<64x256xf32>
    %9 = arith.addf %6, %8 : vector<64x256xf32>
    %10 = vector.shape_cast %9 : vector<64x256xf32> to vector<8x8x256xf32>
    %c0_7 = arith.constant 0 : index
    %c0_8 = arith.constant 0 : index
    %c0_9 = arith.constant 0 : index
    %11 = vector.load %arg14[%c0_7, %c0_8, %c0_9] : memref<8x8x256xf32, #tpu.memory_space<vmem>>, vector<8x8x256xf32>
    tpu.vector_store %arg14[%c0_7, %c0_8, %c0_9], %10 {strides = array<i32>} : memref<8x8x256xf32, #tpu.memory_space<vmem>>, vector<8x8x256xf32>,
    %c0_10 = arith.constant 0 : index
    %c0_11 = arith.constant 0 : index
    %12 = vector.load %arg4[%c0_10, %c0_11] : memref<64x256xf32, #tpu.memory_space<vmem>>, vector<64x256xf32>
    %c0_12 = arith.constant 0 : index
    %c0_13 = arith.constant 0 : index
    %13 = vector.load %arg6[%c0_12, %c0_13] : memref<64x256xf32, #tpu.memory_space<vmem>>, vector<64x256xf32>
    %c0_14 = arith.constant 0 : index
    %c0_15 = arith.constant 0 : index
    %14 = vector.load %arg7[%c0_14, %c0_15] : memref<64x256xf32, #tpu.memory_space<vmem>>, vector<64x256xf32>
    %c0_16 = arith.constant 0 : index
    %c0_17 = arith.constant 0 : index
    %15 = vector.load %arg8[%c0_16, %c0_17] : memref<1x256xf32, #tpu.memory_space<vmem>>, vector<1x256xf32>
    %16 = vector.shape_cast %15 : vector<1x256xf32> to vector<1x256xf32>
    %17 = vector.broadcast %16 : vector<1x256xf32> to vector<8x256xf32>
    %18 = tpu.iota {dimensions = array<i32: 1>} : vector<8x256xi32>
    %c128_i32 = arith.constant 128 : i32
    %19 = vector.broadcast %c128_i32 : i32 to vector<8x256xi32>
    %20 = arith.cmpi sge, %18, %19 : vector<8x256xi32>
    %c192_i32 = arith.constant 192 : i32
    %21 = vector.broadcast %c192_i32 : i32 to vector<8x256xi32>
    %22 = arith.cmpi slt, %18, %21 : vector<8x256xi32>
    %23 = arith.andi %20, %22 : vector<8x256xi1>
    %c0_18 = arith.constant 0 : index
    %c0_19 = arith.constant 0 : index
    %24 = vector.load %arg10[%c0_18, %c0_19] : memref<8x64xf32, #tpu.memory_space<vmem>>, vector<8x64xf32>
    %c0_20 = arith.constant 0 : index
    %c0_21 = arith.constant 0 : index
    %25 = vector.load %arg11[%c0_20, %c0_21] : memref<8x64xf32, #tpu.memory_space<vmem>>, vector<8x64xf32>
    %c0_22 = arith.constant 0 : index
    %c0_23 = arith.constant 0 : index
    %26 = vector.load %arg12[%c0_22, %c0_23] : memref<8x64xf32, #tpu.memory_space<vmem>>, vector<8x64xf32>
    %c0_24 = arith.constant 0 : index
    %c0_25 = arith.constant 0 : index
    %27 = vector.load %arg13[%c0_24, %c0_25] : memref<8x64xf32, #tpu.memory_space<vmem>>, vector<8x64xf32>
    %c0_i32_26 = arith.constant 0 : i32
    %cst_27 = arith.constant dense<0.000000e+00> : vector<8x256xf32>
    %28 = tpu.matmul %26, %14, %cst_27 {dimension_numbers = #tpu.dot_dimension_numbers<[1], [0], [0], [1], [0, 0, 1, 1], [], []>} : vector<8x64xf32>, vector<64x256xf32>, vector<8x256xf32> -> vector<8x256xf32>
    %29 = arith.addf %28, %17 : vector<8x256xf32>
    %30 = arith.index_cast %c0_i32_26 : i32 to index
    %c0_28 = arith.constant 0 : index
    %c0_29 = arith.constant 0 : index
    %31 = vector.load %arg14[%30, %c0_28, %c0_29] : memref<8x8x256xf32, #tpu.memory_space<vmem>>, vector<1x8x256xf32>
    %32 = vector.shape_cast %31 : vector<1x8x256xf32> to vector<8x256xf32>
    %cst_30 = arith.constant dense<0.000000e+00> : vector<8x256xf32>
    %33 = tpu.matmul %24, %12, %cst_30 {dimension_numbers = #tpu.dot_dimension_numbers<[1], [0], [0], [1], [0, 0, 1, 1], [], []>} : vector<8x64xf32>, vector<64x256xf32>, vector<8x256xf32> -> vector<8x256xf32>
    %34 = arith.addf %32, %33 : vector<8x256xf32>
    %35 = arith.negf %34 : vector<8x256xf32>
    %36 = math.exp %35 : vector<8x256xf32>
    %cst_31 = arith.constant 1.000000e+00 : f32
    %37 = vector.broadcast %cst_31 : f32 to vector<8x256xf32>
    %38 = arith.addf %37, %36 : vector<8x256xf32>
    %39 = arith.divf %37, %38 : vector<8x256xf32>
    %cst_32 = arith.constant 2.000000e+00 : f32
    %40 = vector.broadcast %cst_32 : f32 to vector<8x256xf32>
    %41 = arith.mulf %40, %39 : vector<8x256xf32>
    %cst_33 = arith.constant 1.000000e+00 : f32
    %42 = vector.broadcast %cst_33 : f32 to vector<8x256xf32>
    %43 = arith.subf %41, %42 : vector<8x256xf32>
    %44 = arith.select %23, %43, %39 : vector<8x256xi1>, vector<8x256xf32>
    %45 = vector.extract_strided_slice %44 {offsets = [0, 0], sizes = [8, 64], strides = [1, 1]} : vector<8x256xf32> to vector<8x64xf32>
    %46 = vector.extract_strided_slice %44 {offsets = [0, 64], sizes = [8, 64], strides = [1, 1]} : vector<8x256xf32> to vector<8x64xf32>
    %47 = vector.extract_strided_slice %44 {offsets = [0, 128], sizes = [8, 64], strides = [1, 1]} : vector<8x256xf32> to vector<8x64xf32>
    %48 = vector.extract_strided_slice %44 {offsets = [0, 192], sizes = [8, 64], strides = [1, 1]} : vector<8x256xf32> to vector<8x64xf32>
    %49 = arith.mulf %46, %25 : vector<8x64xf32>
    %50 = arith.mulf %45, %47 : vector<8x64xf32>
    %51 = arith.addf %49, %50 : vector<8x64xf32>
    %52 = math.tanh %51 : vector<8x64xf32>
    %53 = arith.mulf %48, %52 : vector<8x64xf32>
    %cst_34 = arith.constant dense<0.000000e+00> : vector<8x256xf32>
    %54 = tpu.matmul %53, %13, %cst_34 {dimension_numbers = #tpu.dot_dimension_numbers<[1], [0], [0], [1], [0, 0, 1, 1], [], []>} : vector<8x64xf32>, vector<64x256xf32>, vector<8x256xf32> -> vector<8x256xf32>
    %55 = arith.addf %54, %29 : vector<8x256xf32>
    %56 = arith.negf %55 : vector<8x256xf32>
    %57 = math.exp %56 : vector<8x256xf32>
    %cst_35 = arith.constant 1.000000e+00 : f32
    %58 = vector.broadcast %cst_35 : f32 to vector<8x256xf32>
    %59 = arith.addf %58, %57 : vector<8x256xf32>
    %60 = arith.divf %58, %59 : vector<8x256xf32>
    %cst_36 = arith.constant 2.000000e+00 : f32
    %61 = vector.broadcast %cst_36 : f32 to vector<8x256xf32>
    %62 = arith.mulf %61, %60 : vector<8x256xf32>
    %cst_37 = arith.constant 1.000000e+00 : f32
    %63 = vector.broadcast %cst_37 : f32 to vector<8x256xf32>
    %64 = arith.subf %62, %63 : vector<8x256xf32>
    %65 = arith.select %23, %64, %60 : vector<8x256xi1>, vector<8x256xf32>
    %66 = vector.extract_strided_slice %65 {offsets = [0, 0], sizes = [8, 64], strides = [1, 1]} : vector<8x256xf32> to vector<8x64xf32>
    %67 = vector.extract_strided_slice %65 {offsets = [0, 64], sizes = [8, 64], strides = [1, 1]} : vector<8x256xf32> to vector<8x64xf32>
    %68 = vector.extract_strided_slice %65 {offsets = [0, 128], sizes = [8, 64], strides = [1, 1]} : vector<8x256xf32> to vector<8x64xf32>
    %69 = vector.extract_strided_slice %65 {offsets = [0, 192], sizes = [8, 64], strides = [1, 1]} : vector<8x256xf32> to vector<8x64xf32>
    %70 = arith.mulf %67, %27 : vector<8x64xf32>
    %71 = arith.mulf %66, %68 : vector<8x64xf32>
    %72 = arith.addf %70, %71 : vector<8x64xf32>
    %73 = math.tanh %72 : vector<8x64xf32>
    %74 = arith.mulf %69, %73 : vector<8x64xf32>
    %c1_i32 = arith.constant 1 : i32
    %cst_38 = arith.constant dense<0.000000e+00> : vector<8x256xf32>
    %75 = tpu.matmul %74, %14, %cst_38 {dimension_numbers = #tpu.dot_dimension_numbers<[1], [0], [0], [1], [0, 0, 1, 1], [], []>} : vector<8x64xf32>, vector<64x256xf32>, vector<8x256xf32> -> vector<8x256xf32>
    %76 = arith.addf %75, %17 : vector<8x256xf32>
    %77 = arith.index_cast %c1_i32 : i32 to index
    %c0_39 = arith.constant 0 : index
    %c0_40 = arith.constant 0 : index
    %78 = vector.load %arg14[%77, %c0_39, %c0_40] : memref<8x8x256xf32, #tpu.memory_space<vmem>>, vector<1x8x256xf32>
    %79 = vector.shape_cast %78 : vector<1x8x256xf32> to vector<8x256xf32>
    %cst_41 = arith.constant dense<0.000000e+00> : vector<8x256xf32>
    %80 = tpu.matmul %53, %12, %cst_41 {dimension_numbers = #tpu.dot_dimension_numbers<[1], [0], [0], [1], [0, 0, 1, 1], [], []>} : vector<8x64xf32>, vector<64x256xf32>, vector<8x256xf32> -> vector<8x256xf32>
    %81 = arith.addf %79, %80 : vector<8x256xf32>
    %82 = arith.negf %81 : vector<8x256xf32>
    %83 = math.exp %82 : vector<8x256xf32>
    %cst_42 = arith.constant 1.000000e+00 : f32
    %84 = vector.broadcast %cst_42 : f32 to vector<8x256xf32>
    %85 = arith.addf %84, %83 : vector<8x256xf32>
    %86 = arith.divf %84, %85 : vector<8x256xf32>
    %cst_43 = arith.constant 2.000000e+00 : f32
    %87 = vector.broadcast %cst_43 : f32 to vector<8x256xf32>
    %88 = arith.mulf %87, %86 : vector<8x256xf32>
    %cst_44 = arith.constant 1.000000e+00 : f32
    %89 = vector.broadcast %cst_44 : f32 to vector<8x256xf32>
    %90 = arith.subf %88, %89 : vector<8x256xf32>
    %91 = arith.select %23, %90, %86 : vector<8x256xi1>, vector<8x256xf32>
    %92 = vector.extract_strided_slice %91 {offsets = [0, 0], sizes = [8, 64], strides = [1, 1]} : vector<8x256xf32> to vector<8x64xf32>
    %93 = vector.extract_strided_slice %91 {offsets = [0, 64], sizes = [8, 64], strides = [1, 1]} : vector<8x256xf32> to vector<8x64xf32>
    %94 = vector.extract_strided_slice %91 {offsets = [0, 128], sizes = [8, 64], strides = [1, 1]} : vector<8x256xf32> to vector<8x64xf32>
    %95 = vector.extract_strided_slice %91 {offsets = [0, 192], sizes = [8, 64], strides = [1, 1]} : vector<8x256xf32> to vector<8x64xf32>
    %96 = arith.mulf %93, %51 : vector<8x64xf32>
    %97 = arith.mulf %92, %94 : vector<8x64xf32>
    %98 = arith.addf %96, %97 : vector<8x64xf32>
    %99 = math.tanh %98 : vector<8x64xf32>
    %100 = arith.mulf %95, %99 : vector<8x64xf32>
    %cst_45 = arith.constant dense<0.000000e+00> : vector<8x256xf32>
    %101 = tpu.matmul %100, %13, %cst_45 {dimension_numbers = #tpu.dot_dimension_numbers<[1], [0], [0], [1], [0, 0, 1, 1], [], []>} : vector<8x64xf32>, vector<64x256xf32>, vector<8x256xf32> -> vector<8x256xf32>
    %102 = arith.addf %101, %76 : vector<8x256xf32>
    %103 = arith.negf %102 : vector<8x256xf32>
    %104 = math.exp %103 : vector<8x256xf32>
    %cst_46 = arith.constant 1.000000e+00 : f32
    %105 = vector.broadcast %cst_46 : f32 to vector<8x256xf32>
    %106 = arith.addf %105, %104 : vector<8x256xf32>
    %107 = arith.divf %105, %106 : vector<8x256xf32>
    %cst_47 = arith.constant 2.000000e+00 : f32
    %108 = vector.broadcast %cst_47 : f32 to vector<8x256xf32>
    %109 = arith.mulf %108, %107 : vector<8x256xf32>
    %cst_48 = arith.constant 1.000000e+00 : f32
    %110 = vector.broadcast %cst_48 : f32 to vector<8x256xf32>
    %111 = arith.subf %109, %110 : vector<8x256xf32>
    %112 = arith.select %23, %111, %107 : vector<8x256xi1>, vector<8x256xf32>
    %113 = vector.extract_strided_slice %112 {offsets = [0, 0], sizes = [8, 64], strides = [1, 1]} : vector<8x256xf32> to vector<8x64xf32>
    %114 = vector.extract_strided_slice %112 {offsets = [0, 64], sizes = [8, 64], strides = [1, 1]} : vector<8x256xf32> to vector<8x64xf32>
    %115 = vector.extract_strided_slice %112 {offsets = [0, 128], sizes = [8, 64], strides = [1, 1]} : vector<8x256xf32> to vector<8x64xf32>
    %116 = vector.extract_strided_slice %112 {offsets = [0, 192], sizes = [8, 64], strides = [1, 1]} : vector<8x256xf32> to vector<8x64xf32>
    %117 = arith.mulf %114, %72 : vector<8x64xf32>
    %118 = arith.mulf %113, %115 : vector<8x64xf32>
    %119 = arith.addf %117, %118 : vector<8x64xf32>
    %120 = math.tanh %119 : vector<8x64xf32>
    %121 = arith.mulf %116, %120 : vector<8x64xf32>
    %c2_i32 = arith.constant 2 : i32
    %cst_49 = arith.constant dense<0.000000e+00> : vector<8x256xf32>
    %122 = tpu.matmul %121, %14, %cst_49 {dimension_numbers = #tpu.dot_dimension_numbers<[1], [0], [0], [1], [0, 0, 1, 1], [], []>} : vector<8x64xf32>, vector<64x256xf32>, vector<8x256xf32> -> vector<8x256xf32>
    %123 = arith.addf %122, %17 : vector<8x256xf32>
    %124 = arith.index_cast %c2_i32 : i32 to index
    %c0_50 = arith.constant 0 : index
    %c0_51 = arith.constant 0 : index
    %125 = vector.load %arg14[%124, %c0_50, %c0_51] : memref<8x8x256xf32, #tpu.memory_space<vmem>>, vector<1x8x256xf32>
    %126 = vector.shape_cast %125 : vector<1x8x256xf32> to vector<8x256xf32>
    %cst_52 = arith.constant dense<0.000000e+00> : vector<8x256xf32>
    %127 = tpu.matmul %100, %12, %cst_52 {dimension_numbers = #tpu.dot_dimension_numbers<[1], [0], [0], [1], [0, 0, 1, 1], [], []>} : vector<8x64xf32>, vector<64x256xf32>, vector<8x256xf32> -> vector<8x256xf32>
    %128 = arith.addf %126, %127 : vector<8x256xf32>
    %129 = arith.negf %128 : vector<8x256xf32>
    %130 = math.exp %129 : vector<8x256xf32>
    %cst_53 = arith.constant 1.000000e+00 : f32
    %131 = vector.broadcast %cst_53 : f32 to vector<8x256xf32>
    %132 = arith.addf %131, %130 : vector<8x256xf32>
    %133 = arith.divf %131, %132 : vector<8x256xf32>
    %cst_54 = arith.constant 2.000000e+00 : f32
    %134 = vector.broadcast %cst_54 : f32 to vector<8x256xf32>
    %135 = arith.mulf %134, %133 : vector<8x256xf32>
    %cst_55 = arith.constant 1.000000e+00 : f32
    %136 = vector.broadcast %cst_55 : f32 to vector<8x256xf32>
    %137 = arith.subf %135, %136 : vector<8x256xf32>
    %138 = arith.select %23, %137, %133 : vector<8x256xi1>, vector<8x256xf32>
    %139 = vector.extract_strided_slice %138 {offsets = [0, 0], sizes = [8, 64], strides = [1, 1]} : vector<8x256xf32> to vector<8x64xf32>
    %140 = vector.extract_strided_slice %138 {offsets = [0, 64], sizes = [8, 64], strides = [1, 1]} : vector<8x256xf32> to vector<8x64xf32>
    %141 = vector.extract_strided_slice %138 {offsets = [0, 128], sizes = [8, 64], strides = [1, 1]} : vector<8x256xf32> to vector<8x64xf32>
    %142 = vector.extract_strided_slice %138 {offsets = [0, 192], sizes = [8, 64], strides = [1, 1]} : vector<8x256xf32> to vector<8x64xf32>
    %143 = arith.mulf %140, %98 : vector<8x64xf32>
    %144 = arith.mulf %139, %141 : vector<8x64xf32>
    %145 = arith.addf %143, %144 : vector<8x64xf32>
    %146 = math.tanh %145 : vector<8x64xf32>
    %147 = arith.mulf %142, %146 : vector<8x64xf32>
    %cst_56 = arith.constant dense<0.000000e+00> : vector<8x256xf32>
    %148 = tpu.matmul %147, %13, %cst_56 {dimension_numbers = #tpu.dot_dimension_numbers<[1], [0], [0], [1], [0, 0, 1, 1], [], []>} : vector<8x64xf32>, vector<64x256xf32>, vector<8x256xf32> -> vector<8x256xf32>
    %149 = arith.addf %148, %123 : vector<8x256xf32>
    %150 = arith.negf %149 : vector<8x256xf32>
    %151 = math.exp %150 : vector<8x256xf32>
    %cst_57 = arith.constant 1.000000e+00 : f32
    %152 = vector.broadcast %cst_57 : f32 to vector<8x256xf32>
    %153 = arith.addf %152, %151 : vector<8x256xf32>
    %154 = arith.divf %152, %153 : vector<8x256xf32>
    %cst_58 = arith.constant 2.000000e+00 : f32
    %155 = vector.broadcast %cst_58 : f32 to vector<8x256xf32>
    %156 = arith.mulf %155, %154 : vector<8x256xf32>
    %cst_59 = arith.constant 1.000000e+00 : f32
    %157 = vector.broadcast %cst_59 : f32 to vector<8x256xf32>
    %158 = arith.subf %156, %157 : vector<8x256xf32>
    %159 = arith.select %23, %158, %154 : vector<8x256xi1>, vector<8x256xf32>
    %160 = vector.extract_strided_slice %159 {offsets = [0, 0], sizes = [8, 64], strides = [1, 1]} : vector<8x256xf32> to vector<8x64xf32>
    %161 = vector.extract_strided_slice %159 {offsets = [0, 64], sizes = [8, 64], strides = [1, 1]} : vector<8x256xf32> to vector<8x64xf32>
    %162 = vector.extract_strided_slice %159 {offsets = [0, 128], sizes = [8, 64], strides = [1, 1]} : vector<8x256xf32> to vector<8x64xf32>
    %163 = vector.extract_strided_slice %159 {offsets = [0, 192], sizes = [8, 64], strides = [1, 1]} : vector<8x256xf32> to vector<8x64xf32>
    %164 = arith.mulf %161, %119 : vector<8x64xf32>
    %165 = arith.mulf %160, %162 : vector<8x64xf32>
    %166 = arith.addf %164, %165 : vector<8x64xf32>
    %167 = math.tanh %166 : vector<8x64xf32>
    %168 = arith.mulf %163, %167 : vector<8x64xf32>
    %c3_i32 = arith.constant 3 : i32
    %cst_60 = arith.constant dense<0.000000e+00> : vector<8x256xf32>
    %169 = tpu.matmul %168, %14, %cst_60 {dimension_numbers = #tpu.dot_dimension_numbers<[1], [0], [0], [1], [0, 0, 1, 1], [], []>} : vector<8x64xf32>, vector<64x256xf32>, vector<8x256xf32> -> vector<8x256xf32>
    %170 = arith.addf %169, %17 : vector<8x256xf32>
    %171 = arith.index_cast %c3_i32 : i32 to index
    %c0_61 = arith.constant 0 : index
    %c0_62 = arith.constant 0 : index
    %172 = vector.load %arg14[%171, %c0_61, %c0_62] : memref<8x8x256xf32, #tpu.memory_space<vmem>>, vector<1x8x256xf32>
    %173 = vector.shape_cast %172 : vector<1x8x256xf32> to vector<8x256xf32>
    %cst_63 = arith.constant dense<0.000000e+00> : vector<8x256xf32>
    %174 = tpu.matmul %147, %12, %cst_63 {dimension_numbers = #tpu.dot_dimension_numbers<[1], [0], [0], [1], [0, 0, 1, 1], [], []>} : vector<8x64xf32>, vector<64x256xf32>, vector<8x256xf32> -> vector<8x256xf32>
    %175 = arith.addf %173, %174 : vector<8x256xf32>
    %176 = arith.negf %175 : vector<8x256xf32>
    %177 = math.exp %176 : vector<8x256xf32>
    %cst_64 = arith.constant 1.000000e+00 : f32
    %178 = vector.broadcast %cst_64 : f32 to vector<8x256xf32>
    %179 = arith.addf %178, %177 : vector<8x256xf32>
    %180 = arith.divf %178, %179 : vector<8x256xf32>
    %cst_65 = arith.constant 2.000000e+00 : f32
    %181 = vector.broadcast %cst_65 : f32 to vector<8x256xf32>
    %182 = arith.mulf %181, %180 : vector<8x256xf32>
    %cst_66 = arith.constant 1.000000e+00 : f32
    %183 = vector.broadcast %cst_66 : f32 to vector<8x256xf32>
    %184 = arith.subf %182, %183 : vector<8x256xf32>
    %185 = arith.select %23, %184, %180 : vector<8x256xi1>, vector<8x256xf32>
    %186 = vector.extract_strided_slice %185 {offsets = [0, 0], sizes = [8, 64], strides = [1, 1]} : vector<8x256xf32> to vector<8x64xf32>
    %187 = vector.extract_strided_slice %185 {offsets = [0, 64], sizes = [8, 64], strides = [1, 1]} : vector<8x256xf32> to vector<8x64xf32>
    %188 = vector.extract_strided_slice %185 {offsets = [0, 128], sizes = [8, 64], strides = [1, 1]} : vector<8x256xf32> to vector<8x64xf32>
    %189 = vector.extract_strided_slice %185 {offsets = [0, 192], sizes = [8, 64], strides = [1, 1]} : vector<8x256xf32> to vector<8x64xf32>
    %190 = arith.mulf %187, %145 : vector<8x64xf32>
    %191 = arith.mulf %186, %188 : vector<8x64xf32>
    %192 = arith.addf %190, %191 : vector<8x64xf32>
    %193 = math.tanh %192 : vector<8x64xf32>
    %194 = arith.mulf %189, %193 : vector<8x64xf32>
    %cst_67 = arith.constant dense<0.000000e+00> : vector<8x256xf32>
    %195 = tpu.matmul %194, %13, %cst_67 {dimension_numbers = #tpu.dot_dimension_numbers<[1], [0], [0], [1], [0, 0, 1, 1], [], []>} : vector<8x64xf32>, vector<64x256xf32>, vector<8x256xf32> -> vector<8x256xf32>
    %196 = arith.addf %195, %170 : vector<8x256xf32>
    %197 = arith.negf %196 : vector<8x256xf32>
    %198 = math.exp %197 : vector<8x256xf32>
    %cst_68 = arith.constant 1.000000e+00 : f32
    %199 = vector.broadcast %cst_68 : f32 to vector<8x256xf32>
    %200 = arith.addf %199, %198 : vector<8x256xf32>
    %201 = arith.divf %199, %200 : vector<8x256xf32>
    %cst_69 = arith.constant 2.000000e+00 : f32
    %202 = vector.broadcast %cst_69 : f32 to vector<8x256xf32>
    %203 = arith.mulf %202, %201 : vector<8x256xf32>
    %cst_70 = arith.constant 1.000000e+00 : f32
    %204 = vector.broadcast %cst_70 : f32 to vector<8x256xf32>
    %205 = arith.subf %203, %204 : vector<8x256xf32>
    %206 = arith.select %23, %205, %201 : vector<8x256xi1>, vector<8x256xf32>
    %207 = vector.extract_strided_slice %206 {offsets = [0, 0], sizes = [8, 64], strides = [1, 1]} : vector<8x256xf32> to vector<8x64xf32>
    %208 = vector.extract_strided_slice %206 {offsets = [0, 64], sizes = [8, 64], strides = [1, 1]} : vector<8x256xf32> to vector<8x64xf32>
    %209 = vector.extract_strided_slice %206 {offsets = [0, 128], sizes = [8, 64], strides = [1, 1]} : vector<8x256xf32> to vector<8x64xf32>
    %210 = vector.extract_strided_slice %206 {offsets = [0, 192], sizes = [8, 64], strides = [1, 1]} : vector<8x256xf32> to vector<8x64xf32>
    %211 = arith.mulf %208, %166 : vector<8x64xf32>
    %212 = arith.mulf %207, %209 : vector<8x64xf32>
    %213 = arith.addf %211, %212 : vector<8x64xf32>
    %214 = math.tanh %213 : vector<8x64xf32>
    %215 = arith.mulf %210, %214 : vector<8x64xf32>
    %c4_i32 = arith.constant 4 : i32
    %cst_71 = arith.constant dense<0.000000e+00> : vector<8x256xf32>
    %216 = tpu.matmul %215, %14, %cst_71 {dimension_numbers = #tpu.dot_dimension_numbers<[1], [0], [0], [1], [0, 0, 1, 1], [], []>} : vector<8x64xf32>, vector<64x256xf32>, vector<8x256xf32> -> vector<8x256xf32>
    %217 = arith.addf %216, %17 : vector<8x256xf32>
    %218 = arith.index_cast %c4_i32 : i32 to index
    %c0_72 = arith.constant 0 : index
    %c0_73 = arith.constant 0 : index
    %219 = vector.load %arg14[%218, %c0_72, %c0_73] : memref<8x8x256xf32, #tpu.memory_space<vmem>>, vector<1x8x256xf32>
    %220 = vector.shape_cast %219 : vector<1x8x256xf32> to vector<8x256xf32>
    %cst_74 = arith.constant dense<0.000000e+00> : vector<8x256xf32>
    %221 = tpu.matmul %194, %12, %cst_74 {dimension_numbers = #tpu.dot_dimension_numbers<[1], [0], [0], [1], [0, 0, 1, 1], [], []>} : vector<8x64xf32>, vector<64x256xf32>, vector<8x256xf32> -> vector<8x256xf32>
    %222 = arith.addf %220, %221 : vector<8x256xf32>
    %223 = arith.negf %222 : vector<8x256xf32>
    %224 = math.exp %223 : vector<8x256xf32>
    %cst_75 = arith.constant 1.000000e+00 : f32
    %225 = vector.broadcast %cst_75 : f32 to vector<8x256xf32>
    %226 = arith.addf %225, %224 : vector<8x256xf32>
    %227 = arith.divf %225, %226 : vector<8x256xf32>
    %cst_76 = arith.constant 2.000000e+00 : f32
    %228 = vector.broadcast %cst_76 : f32 to vector<8x256xf32>
    %229 = arith.mulf %228, %227 : vector<8x256xf32>
    %cst_77 = arith.constant 1.000000e+00 : f32
    %230 = vector.broadcast %cst_77 : f32 to vector<8x256xf32>
    %231 = arith.subf %229, %230 : vector<8x256xf32>
    %232 = arith.select %23, %231, %227 : vector<8x256xi1>, vector<8x256xf32>
    %233 = vector.extract_strided_slice %232 {offsets = [0, 0], sizes = [8, 64], strides = [1, 1]} : vector<8x256xf32> to vector<8x64xf32>
    %234 = vector.extract_strided_slice %232 {offsets = [0, 64], sizes = [8, 64], strides = [1, 1]} : vector<8x256xf32> to vector<8x64xf32>
    %235 = vector.extract_strided_slice %232 {offsets = [0, 128], sizes = [8, 64], strides = [1, 1]} : vector<8x256xf32> to vector<8x64xf32>
    %236 = vector.extract_strided_slice %232 {offsets = [0, 192], sizes = [8, 64], strides = [1, 1]} : vector<8x256xf32> to vector<8x64xf32>
    %237 = arith.mulf %234, %192 : vector<8x64xf32>
    %238 = arith.mulf %233, %235 : vector<8x64xf32>
    %239 = arith.addf %237, %238 : vector<8x64xf32>
    %240 = math.tanh %239 : vector<8x64xf32>
    %241 = arith.mulf %236, %240 : vector<8x64xf32>
    %cst_78 = arith.constant dense<0.000000e+00> : vector<8x256xf32>
    %242 = tpu.matmul %241, %13, %cst_78 {dimension_numbers = #tpu.dot_dimension_numbers<[1], [0], [0], [1], [0, 0, 1, 1], [], []>} : vector<8x64xf32>, vector<64x256xf32>, vector<8x256xf32> -> vector<8x256xf32>
    %243 = arith.addf %242, %217 : vector<8x256xf32>
    %244 = arith.negf %243 : vector<8x256xf32>
    %245 = math.exp %244 : vector<8x256xf32>
    %cst_79 = arith.constant 1.000000e+00 : f32
    %246 = vector.broadcast %cst_79 : f32 to vector<8x256xf32>
    %247 = arith.addf %246, %245 : vector<8x256xf32>
    %248 = arith.divf %246, %247 : vector<8x256xf32>
    %cst_80 = arith.constant 2.000000e+00 : f32
    %249 = vector.broadcast %cst_80 : f32 to vector<8x256xf32>
    %250 = arith.mulf %249, %248 : vector<8x256xf32>
    %cst_81 = arith.constant 1.000000e+00 : f32
    %251 = vector.broadcast %cst_81 : f32 to vector<8x256xf32>
    %252 = arith.subf %250, %251 : vector<8x256xf32>
    %253 = arith.select %23, %252, %248 : vector<8x256xi1>, vector<8x256xf32>
    %254 = vector.extract_strided_slice %253 {offsets = [0, 0], sizes = [8, 64], strides = [1, 1]} : vector<8x256xf32> to vector<8x64xf32>
    %255 = vector.extract_strided_slice %253 {offsets = [0, 64], sizes = [8, 64], strides = [1, 1]} : vector<8x256xf32> to vector<8x64xf32>
    %256 = vector.extract_strided_slice %253 {offsets = [0, 128], sizes = [8, 64], strides = [1, 1]} : vector<8x256xf32> to vector<8x64xf32>
    %257 = vector.extract_strided_slice %253 {offsets = [0, 192], sizes = [8, 64], strides = [1, 1]} : vector<8x256xf32> to vector<8x64xf32>
    %258 = arith.mulf %255, %213 : vector<8x64xf32>
    %259 = arith.mulf %254, %256 : vector<8x64xf32>
    %260 = arith.addf %258, %259 : vector<8x64xf32>
    %261 = math.tanh %260 : vector<8x64xf32>
    %262 = arith.mulf %257, %261 : vector<8x64xf32>
    %c5_i32 = arith.constant 5 : i32
    %cst_82 = arith.constant dense<0.000000e+00> : vector<8x256xf32>
    %263 = tpu.matmul %262, %14, %cst_82 {dimension_numbers = #tpu.dot_dimension_numbers<[1], [0], [0], [1], [0, 0, 1, 1], [], []>} : vector<8x64xf32>, vector<64x256xf32>, vector<8x256xf32> -> vector<8x256xf32>
    %264 = arith.addf %263, %17 : vector<8x256xf32>
    %265 = arith.index_cast %c5_i32 : i32 to index
    %c0_83 = arith.constant 0 : index
    %c0_84 = arith.constant 0 : index
    %266 = vector.load %arg14[%265, %c0_83, %c0_84] : memref<8x8x256xf32, #tpu.memory_space<vmem>>, vector<1x8x256xf32>
    %267 = vector.shape_cast %266 : vector<1x8x256xf32> to vector<8x256xf32>
    %cst_85 = arith.constant dense<0.000000e+00> : vector<8x256xf32>
    %268 = tpu.matmul %241, %12, %cst_85 {dimension_numbers = #tpu.dot_dimension_numbers<[1], [0], [0], [1], [0, 0, 1, 1], [], []>} : vector<8x64xf32>, vector<64x256xf32>, vector<8x256xf32> -> vector<8x256xf32>
    %269 = arith.addf %267, %268 : vector<8x256xf32>
    %270 = arith.negf %269 : vector<8x256xf32>
    %271 = math.exp %270 : vector<8x256xf32>
    %cst_86 = arith.constant 1.000000e+00 : f32
    %272 = vector.broadcast %cst_86 : f32 to vector<8x256xf32>
    %273 = arith.addf %272, %271 : vector<8x256xf32>
    %274 = arith.divf %272, %273 : vector<8x256xf32>
    %cst_87 = arith.constant 2.000000e+00 : f32
    %275 = vector.broadcast %cst_87 : f32 to vector<8x256xf32>
    %276 = arith.mulf %275, %274 : vector<8x256xf32>
    %cst_88 = arith.constant 1.000000e+00 : f32
    %277 = vector.broadcast %cst_88 : f32 to vector<8x256xf32>
    %278 = arith.subf %276, %277 : vector<8x256xf32>
    %279 = arith.select %23, %278, %274 : vector<8x256xi1>, vector<8x256xf32>
    %280 = vector.extract_strided_slice %279 {offsets = [0, 0], sizes = [8, 64], strides = [1, 1]} : vector<8x256xf32> to vector<8x64xf32>
    %281 = vector.extract_strided_slice %279 {offsets = [0, 64], sizes = [8, 64], strides = [1, 1]} : vector<8x256xf32> to vector<8x64xf32>
    %282 = vector.extract_strided_slice %279 {offsets = [0, 128], sizes = [8, 64], strides = [1, 1]} : vector<8x256xf32> to vector<8x64xf32>
    %283 = vector.extract_strided_slice %279 {offsets = [0, 192], sizes = [8, 64], strides = [1, 1]} : vector<8x256xf32> to vector<8x64xf32>
    %284 = arith.mulf %281, %239 : vector<8x64xf32>
    %285 = arith.mulf %280, %282 : vector<8x64xf32>
    %286 = arith.addf %284, %285 : vector<8x64xf32>
    %287 = math.tanh %286 : vector<8x64xf32>
    %288 = arith.mulf %283, %287 : vector<8x64xf32>
    %cst_89 = arith.constant dense<0.000000e+00> : vector<8x256xf32>
    %289 = tpu.matmul %288, %13, %cst_89 {dimension_numbers = #tpu.dot_dimension_numbers<[1], [0], [0], [1], [0, 0, 1, 1], [], []>} : vector<8x64xf32>, vector<64x256xf32>, vector<8x256xf32> -> vector<8x256xf32>
    %290 = arith.addf %289, %264 : vector<8x256xf32>
    %291 = arith.negf %290 : vector<8x256xf32>
    %292 = math.exp %291 : vector<8x256xf32>
    %cst_90 = arith.constant 1.000000e+00 : f32
    %293 = vector.broadcast %cst_90 : f32 to vector<8x256xf32>
    %294 = arith.addf %293, %292 : vector<8x256xf32>
    %295 = arith.divf %293, %294 : vector<8x256xf32>
    %cst_91 = arith.constant 2.000000e+00 : f32
    %296 = vector.broadcast %cst_91 : f32 to vector<8x256xf32>
    %297 = arith.mulf %296, %295 : vector<8x256xf32>
    %cst_92 = arith.constant 1.000000e+00 : f32
    %298 = vector.broadcast %cst_92 : f32 to vector<8x256xf32>
    %299 = arith.subf %297, %298 : vector<8x256xf32>
    %300 = arith.select %23, %299, %295 : vector<8x256xi1>, vector<8x256xf32>
    %301 = vector.extract_strided_slice %300 {offsets = [0, 0], sizes = [8, 64], strides = [1, 1]} : vector<8x256xf32> to vector<8x64xf32>
    %302 = vector.extract_strided_slice %300 {offsets = [0, 64], sizes = [8, 64], strides = [1, 1]} : vector<8x256xf32> to vector<8x64xf32>
    %303 = vector.extract_strided_slice %300 {offsets = [0, 128], sizes = [8, 64], strides = [1, 1]} : vector<8x256xf32> to vector<8x64xf32>
    %304 = vector.extract_strided_slice %300 {offsets = [0, 192], sizes = [8, 64], strides = [1, 1]} : vector<8x256xf32> to vector<8x64xf32>
    %305 = arith.mulf %302, %260 : vector<8x64xf32>
    %306 = arith.mulf %301, %303 : vector<8x64xf32>
    %307 = arith.addf %305, %306 : vector<8x64xf32>
    %308 = math.tanh %307 : vector<8x64xf32>
    %309 = arith.mulf %304, %308 : vector<8x64xf32>
    %c6_i32 = arith.constant 6 : i32
    %cst_93 = arith.constant dense<0.000000e+00> : vector<8x256xf32>
    %310 = tpu.matmul %309, %14, %cst_93 {dimension_numbers = #tpu.dot_dimension_numbers<[1], [0], [0], [1], [0, 0, 1, 1], [], []>} : vector<8x64xf32>, vector<64x256xf32>, vector<8x256xf32> -> vector<8x256xf32>
    %311 = arith.addf %310, %17 : vector<8x256xf32>
    %312 = arith.index_cast %c6_i32 : i32 to index
    %c0_94 = arith.constant 0 : index
    %c0_95 = arith.constant 0 : index
    %313 = vector.load %arg14[%312, %c0_94, %c0_95] : memref<8x8x256xf32, #tpu.memory_space<vmem>>, vector<1x8x256xf32>
    %314 = vector.shape_cast %313 : vector<1x8x256xf32> to vector<8x256xf32>
    %cst_96 = arith.constant dense<0.000000e+00> : vector<8x256xf32>
    %315 = tpu.matmul %288, %12, %cst_96 {dimension_numbers = #tpu.dot_dimension_numbers<[1], [0], [0], [1], [0, 0, 1, 1], [], []>} : vector<8x64xf32>, vector<64x256xf32>, vector<8x256xf32> -> vector<8x256xf32>
    %316 = arith.addf %314, %315 : vector<8x256xf32>
    %317 = arith.negf %316 : vector<8x256xf32>
    %318 = math.exp %317 : vector<8x256xf32>
    %cst_97 = arith.constant 1.000000e+00 : f32
    %319 = vector.broadcast %cst_97 : f32 to vector<8x256xf32>
    %320 = arith.addf %319, %318 : vector<8x256xf32>
    %321 = arith.divf %319, %320 : vector<8x256xf32>
    %cst_98 = arith.constant 2.000000e+00 : f32
    %322 = vector.broadcast %cst_98 : f32 to vector<8x256xf32>
    %323 = arith.mulf %322, %321 : vector<8x256xf32>
    %cst_99 = arith.constant 1.000000e+00 : f32
    %324 = vector.broadcast %cst_99 : f32 to vector<8x256xf32>
    %325 = arith.subf %323, %324 : vector<8x256xf32>
    %326 = arith.select %23, %325, %321 : vector<8x256xi1>, vector<8x256xf32>
    %327 = vector.extract_strided_slice %326 {offsets = [0, 0], sizes = [8, 64], strides = [1, 1]} : vector<8x256xf32> to vector<8x64xf32>
    %328 = vector.extract_strided_slice %326 {offsets = [0, 64], sizes = [8, 64], strides = [1, 1]} : vector<8x256xf32> to vector<8x64xf32>
    %329 = vector.extract_strided_slice %326 {offsets = [0, 128], sizes = [8, 64], strides = [1, 1]} : vector<8x256xf32> to vector<8x64xf32>
    %330 = vector.extract_strided_slice %326 {offsets = [0, 192], sizes = [8, 64], strides = [1, 1]} : vector<8x256xf32> to vector<8x64xf32>
    %331 = arith.mulf %328, %286 : vector<8x64xf32>
    %332 = arith.mulf %327, %329 : vector<8x64xf32>
    %333 = arith.addf %331, %332 : vector<8x64xf32>
    %334 = math.tanh %333 : vector<8x64xf32>
    %335 = arith.mulf %330, %334 : vector<8x64xf32>
    %cst_100 = arith.constant dense<0.000000e+00> : vector<8x256xf32>
    %336 = tpu.matmul %335, %13, %cst_100 {dimension_numbers = #tpu.dot_dimension_numbers<[1], [0], [0], [1], [0, 0, 1, 1], [], []>} : vector<8x64xf32>, vector<64x256xf32>, vector<8x256xf32> -> vector<8x256xf32>
    %337 = arith.addf %336, %311 : vector<8x256xf32>
    %338 = arith.negf %337 : vector<8x256xf32>
    %339 = math.exp %338 : vector<8x256xf32>
    %cst_101 = arith.constant 1.000000e+00 : f32
    %340 = vector.broadcast %cst_101 : f32 to vector<8x256xf32>
    %341 = arith.addf %340, %339 : vector<8x256xf32>
    %342 = arith.divf %340, %341 : vector<8x256xf32>
    %cst_102 = arith.constant 2.000000e+00 : f32
    %343 = vector.broadcast %cst_102 : f32 to vector<8x256xf32>
    %344 = arith.mulf %343, %342 : vector<8x256xf32>
    %cst_103 = arith.constant 1.000000e+00 : f32
    %345 = vector.broadcast %cst_103 : f32 to vector<8x256xf32>
    %346 = arith.subf %344, %345 : vector<8x256xf32>
    %347 = arith.select %23, %346, %342 : vector<8x256xi1>, vector<8x256xf32>
    %348 = vector.extract_strided_slice %347 {offsets = [0, 0], sizes = [8, 64], strides = [1, 1]} : vector<8x256xf32> to vector<8x64xf32>
    %349 = vector.extract_strided_slice %347 {offsets = [0, 64], sizes = [8, 64], strides = [1, 1]} : vector<8x256xf32> to vector<8x64xf32>
    %350 = vector.extract_strided_slice %347 {offsets = [0, 128], sizes = [8, 64], strides = [1, 1]} : vector<8x256xf32> to vector<8x64xf32>
    %351 = vector.extract_strided_slice %347 {offsets = [0, 192], sizes = [8, 64], strides = [1, 1]} : vector<8x256xf32> to vector<8x64xf32>
    %352 = arith.mulf %349, %307 : vector<8x64xf32>
    %353 = arith.mulf %348, %350 : vector<8x64xf32>
    %354 = arith.addf %352, %353 : vector<8x64xf32>
    %355 = math.tanh %354 : vector<8x64xf32>
    %356 = arith.mulf %351, %355 : vector<8x64xf32>
    %c7_i32 = arith.constant 7 : i32
    %cst_104 = arith.constant dense<0.000000e+00> : vector<8x256xf32>
    %357 = tpu.matmul %356, %14, %cst_104 {dimension_numbers = #tpu.dot_dimension_numbers<[1], [0], [0], [1], [0, 0, 1, 1], [], []>} : vector<8x64xf32>, vector<64x256xf32>, vector<8x256xf32> -> vector<8x256xf32>
    %358 = arith.addf %357, %17 : vector<8x256xf32>
    %359 = arith.index_cast %c7_i32 : i32 to index
    %c0_105 = arith.constant 0 : index
    %c0_106 = arith.constant 0 : index
    %360 = vector.load %arg14[%359, %c0_105, %c0_106] : memref<8x8x256xf32, #tpu.memory_space<vmem>>, vector<1x8x256xf32>
    %361 = vector.shape_cast %360 : vector<1x8x256xf32> to vector<8x256xf32>
    %cst_107 = arith.constant dense<0.000000e+00> : vector<8x256xf32>
    %362 = tpu.matmul %335, %12, %cst_107 {dimension_numbers = #tpu.dot_dimension_numbers<[1], [0], [0], [1], [0, 0, 1, 1], [], []>} : vector<8x64xf32>, vector<64x256xf32>, vector<8x256xf32> -> vector<8x256xf32>
    %363 = arith.addf %361, %362 : vector<8x256xf32>
    %364 = arith.negf %363 : vector<8x256xf32>
    %365 = math.exp %364 : vector<8x256xf32>
    %cst_108 = arith.constant 1.000000e+00 : f32
    %366 = vector.broadcast %cst_108 : f32 to vector<8x256xf32>
    %367 = arith.addf %366, %365 : vector<8x256xf32>
    %368 = arith.divf %366, %367 : vector<8x256xf32>
    %cst_109 = arith.constant 2.000000e+00 : f32
    %369 = vector.broadcast %cst_109 : f32 to vector<8x256xf32>
    %370 = arith.mulf %369, %368 : vector<8x256xf32>
    %cst_110 = arith.constant 1.000000e+00 : f32
    %371 = vector.broadcast %cst_110 : f32 to vector<8x256xf32>
    %372 = arith.subf %370, %371 : vector<8x256xf32>
    %373 = arith.select %23, %372, %368 : vector<8x256xi1>, vector<8x256xf32>
    %374 = vector.extract_strided_slice %373 {offsets = [0, 0], sizes = [8, 64], strides = [1, 1]} : vector<8x256xf32> to vector<8x64xf32>
    %375 = vector.extract_strided_slice %373 {offsets = [0, 64], sizes = [8, 64], strides = [1, 1]} : vector<8x256xf32> to vector<8x64xf32>
    %376 = vector.extract_strided_slice %373 {offsets = [0, 128], sizes = [8, 64], strides = [1, 1]} : vector<8x256xf32> to vector<8x64xf32>
    %377 = vector.extract_strided_slice %373 {offsets = [0, 192], sizes = [8, 64], strides = [1, 1]} : vector<8x256xf32> to vector<8x64xf32>
    %378 = arith.mulf %375, %333 : vector<8x64xf32>
    %379 = arith.mulf %374, %376 : vector<8x64xf32>
    %380 = arith.addf %378, %379 : vector<8x64xf32>
    %381 = math.tanh %380 : vector<8x64xf32>
    %382 = arith.mulf %377, %381 : vector<8x64xf32>
    %cst_111 = arith.constant dense<0.000000e+00> : vector<8x256xf32>
    %383 = tpu.matmul %382, %13, %cst_111 {dimension_numbers = #tpu.dot_dimension_numbers<[1], [0], [0], [1], [0, 0, 1, 1], [], []>} : vector<8x64xf32>, vector<64x256xf32>, vector<8x256xf32> -> vector<8x256xf32>
    %384 = arith.addf %383, %358 : vector<8x256xf32>
    %385 = arith.negf %384 : vector<8x256xf32>
    %386 = math.exp %385 : vector<8x256xf32>
    %cst_112 = arith.constant 1.000000e+00 : f32
    %387 = vector.broadcast %cst_112 : f32 to vector<8x256xf32>
    %388 = arith.addf %387, %386 : vector<8x256xf32>
    %389 = arith.divf %387, %388 : vector<8x256xf32>
    %cst_113 = arith.constant 2.000000e+00 : f32
    %390 = vector.broadcast %cst_113 : f32 to vector<8x256xf32>
    %391 = arith.mulf %390, %389 : vector<8x256xf32>
    %cst_114 = arith.constant 1.000000e+00 : f32
    %392 = vector.broadcast %cst_114 : f32 to vector<8x256xf32>
    %393 = arith.subf %391, %392 : vector<8x256xf32>
    %394 = arith.select %23, %393, %389 : vector<8x256xi1>, vector<8x256xf32>
    %395 = vector.extract_strided_slice %394 {offsets = [0, 0], sizes = [8, 64], strides = [1, 1]} : vector<8x256xf32> to vector<8x64xf32>
    %396 = vector.extract_strided_slice %394 {offsets = [0, 64], sizes = [8, 64], strides = [1, 1]} : vector<8x256xf32> to vector<8x64xf32>
    %397 = vector.extract_strided_slice %394 {offsets = [0, 128], sizes = [8, 64], strides = [1, 1]} : vector<8x256xf32> to vector<8x64xf32>
    %398 = vector.extract_strided_slice %394 {offsets = [0, 192], sizes = [8, 64], strides = [1, 1]} : vector<8x256xf32> to vector<8x64xf32>
    %399 = arith.mulf %396, %354 : vector<8x64xf32>
    %400 = arith.mulf %395, %397 : vector<8x64xf32>
    %401 = arith.addf %399, %400 : vector<8x64xf32>
    %402 = math.tanh %401 : vector<8x64xf32>
    %403 = arith.mulf %398, %402 : vector<8x64xf32>
    %c8_i32 = arith.constant 8 : i32
    %c0_115 = arith.constant 0 : index
    %c0_116 = arith.constant 0 : index
    %404 = vector.load %arg10[%c0_115, %c0_116] : memref<8x64xf32, #tpu.memory_space<vmem>>, vector<8x64xf32>
    tpu.vector_store %arg10[%c0_115, %c0_116], %382 {strides = array<i32>} : memref<8x64xf32, #tpu.memory_space<vmem>>, vector<8x64xf32>,
    %c0_117 = arith.constant 0 : index
    %c0_118 = arith.constant 0 : index
    %405 = vector.load %arg11[%c0_117, %c0_118] : memref<8x64xf32, #tpu.memory_space<vmem>>, vector<8x64xf32>
    tpu.vector_store %arg11[%c0_117, %c0_118], %380 {strides = array<i32>} : memref<8x64xf32, #tpu.memory_space<vmem>>, vector<8x64xf32>,
    %c0_119 = arith.constant 0 : index
    %c0_120 = arith.constant 0 : index
    %406 = vector.load %arg12[%c0_119, %c0_120] : memref<8x64xf32, #tpu.memory_space<vmem>>, vector<8x64xf32>
    tpu.vector_store %arg12[%c0_119, %c0_120], %403 {strides = array<i32>} : memref<8x64xf32, #tpu.memory_space<vmem>>, vector<8x64xf32>,
    %c0_121 = arith.constant 0 : index
    %c0_122 = arith.constant 0 : index
    %407 = vector.load %arg13[%c0_121, %c0_122] : memref<8x64xf32, #tpu.memory_space<vmem>>, vector<8x64xf32>
    tpu.vector_store %arg13[%c0_121, %c0_122], %401 {strides = array<i32>} : memref<8x64xf32, #tpu.memory_space<vmem>>, vector<8x64xf32>,
    %c0_123 = arith.constant 0 : index
    %c0_124 = arith.constant 0 : index
    %408 = vector.load %arg9[%c0_123, %c0_124] : memref<8x64xf32, #tpu.memory_space<vmem>>, vector<8x64xf32>
    tpu.vector_store %arg9[%c0_123, %c0_124], %403 {strides = array<i32>} : memref<8x64xf32, #tpu.memory_space<vmem>>, vector<8x64xf32>,
    return
  }
  func.func @transform_0(%arg0: i32, %arg1: i32) -> (i32, i32, i32) {
    %c0_i32 = arith.constant 0 : i32
    %c0_i32_0 = arith.constant 0 : i32
    return %arg1, %arg0, %c0_i32 : i32, i32, i32
  }
  func.func @transform_1(%arg0: i32, %arg1: i32) -> (i32, i32) {
    %c0_i32 = arith.constant 0 : i32
    %c0_i32_0 = arith.constant 0 : i32
    %c0_i32_1 = arith.constant 0 : i32
    return %c0_i32, %c0_i32_0 : i32, i32
  }
  func.func @transform_2(%arg0: i32, %arg1: i32) -> (i32, i32) {
    %c0_i32 = arith.constant 0 : i32
    %c0_i32_0 = arith.constant 0 : i32
    %c0_i32_1 = arith.constant 0 : i32
    return %c0_i32, %c0_i32_0 : i32, i32
  }
  func.func @transform_3(%arg0: i32, %arg1: i32) -> (i32, i32) {
    %c0_i32 = arith.constant 0 : i32
    %c0_i32_0 = arith.constant 0 : i32
    %c0_i32_1 = arith.constant 0 : i32
    return %c0_i32, %c0_i32_0 : i32, i32
  }
  func.func @transform_4(%arg0: i32, %arg1: i32) -> (i32, i32) {
    %c0_i32 = arith.constant 0 : i32
    %c0_i32_0 = arith.constant 0 : i32
    %c0_i32_1 = arith.constant 0 : i32
    return %c0_i32, %c0_i32_0 : i32, i32
  }
  func.func @transform_5(%arg0: i32, %arg1: i32) -> (i32, i32) {
    %c0_i32 = arith.constant 0 : i32
    %c0_i32_0 = arith.constant 0 : i32
    %c0_i32_1 = arith.constant 0 : i32
    return %c0_i32, %c0_i32_0 : i32, i32
  }
  func.func @transform_6(%arg0: i32, %arg1: i32) -> (i32, i32) {
    %c0_i32 = arith.constant 0 : i32
    %c0_i32_0 = arith.constant 0 : i32
    %c0_i32_1 = arith.constant 0 : i32
    return %c0_i32, %c0_i32_0 : i32, i32
  }
  func.func @transform_7(%arg0: i32, %arg1: i32) -> (i32, i32) {
    %c0_i32 = arith.constant 0 : i32
    %c0_i32_0 = arith.constant 0 : i32
    return %arg0, %c0_i32 : i32, i32
  }
}

</mosaic_0001>

<bundles_post_ra>
// kernel: lstm_model_forward.1
= control target key start
LH: loop header
LB: loop body
LE: loop exit
PB: predicated region body
PF: predicated region fallthrough
CT: control target
= control target key end

     0   :  { %12 = vsyncpa [#allocation8], 0  ;;  %s4276_s0 = inlined_call_operand.vmem [shape: f32[16,8,16], index: 0, kind: input, shape index: {}]   ;;  %s4277_s1 = inlined_call_operand.vmem [shape: f32[16,256], index: 1, kind: input, shape index: {}]   ;;  %s4278_s2 = inlined_call_operand.vmem [shape: f32[64,256], index: 2, kind: input, shape index: {}]   ;;  %s4279_s3 = inlined_call_operand.vmem [shape: f32[1,256], index: 3, kind: input, shape index: {}]   ;;  %s4280_s4 = inlined_call_operand.hbm [shape: f32[64,256], index: 4, kind: input, shape index: {}]   ;;  %s4281_s5 = inlined_call_operand.hbm [shape: f32[64,256], index: 5, kind: input, shape index: {}]   ;;  %s4282_s6 = inlined_call_operand.vmem [shape: f32[1,256], index: 6, kind: input, shape index: {}]   ;;  %s4283_s7 = inlined_call_operand.vmem [shape: f32[8,64], index: 7, kind: output, shape index: {}]  }
   0x1   :  { %13 = vsyncpa [#allocation10], 0  ;;  %s3145_s24 = smov 0   ;;  %s3147_s25 = smov 0  }
   0x2   :  { %s3149_s26 = smov 0  }
   0x3 LB: > { %s2592_s27 = sadd.s32 4294967295, %s3097_s26   ;;  %s28_s28 = sadd.s32 1, %s3093_s25  ;;  %s3097_s26 = sphi %s3149_s26, %s19_s26   ;;  %s3093_s25 = sphi %s3147_s25, %s4469_s25   ;;  %s3089_s24 = sphi %s3145_s24, %s4468_s24  }
   0x4   : > { %p29_p0 = scmp.ge.s32.totalorder %s28_s28, 2  ;;  %p2593_p1 = scmp.ge.s32.totalorder %s3097_s26, 1 }
   0x5   : > { %p216_p2 = scmp.lt.s32.totalorder %s3097_s26, 3  ;;  %p3170_p4 = scmp.eq.s32.totalorder %s2592_s27, 0 }
   0x6   : > { %s4471_s28 = smov (%p29_p0, %s28_s28), 0  ;;  %s236_s10 = sshll.u32 %s4280_s4, 4  ;;  %s237_s10 = int_to_ptr.hbm [resolvable:$true] %s236_s10 }
   0x7   : > { %p3166_p3 = pnand %p2593_p1, %p216_p2  ;;  %s3099_s11 = smov [#allocation7]  }
   0x8   : > { %s238_s12 = sshll.u32 %s3099_s11, 4  ;;  %s250_s15 = sshll.u32 %s4281_s5, 4  ;;  %s239_s12 = int_to_ptr.vmem [resolvable:$true] %s238_s12  ;;  %s251_s15 = int_to_ptr.hbm [resolvable:$true] %s250_s15 }
   0x9   : > { %p2742_p5 = pneg %p3166_p3  ;;  %s3100_s16 = smov 256  }
   0xa   : > { %s3101_s17 = smov 16   ;;  %s3102_s18 = smov [#allocation9]  }
   0xb   : > { %p2743_p6 = pnand %p3170_p4, %p2742_p5  ;;  %s252_s19 = sshll.u32 %s3102_s18, 4  ;;  %s253_s19 = int_to_ptr.vmem [resolvable:$true] %s252_s19 }
   0xc   : > { %283 = sbr.rel (%p3166_p3) target bundleno = 3715 (0xe83), region = 48 }
   0xd   : > { %2745 = dma.hbm_to_vmem [thread:$0]  (!%p2743_p6), %s237_s10, 2048, %s239_s12, [#allocation8], %s3100_s16, %s3100_s16, %s3101_s17  }
   0xe   : > { %2748 = dma.hbm_to_vmem [thread:$0]  (!%p2743_p6), %s251_s15, 2048, %s253_s19, [#allocation10], %s3100_s16, %s3100_s16, %s3101_s17  }
  0x11   : > { %3080 = dma.done.wait (%p3170_p4), [#allocation8], 2048  }
  0x12   : > { %3082 = vsyncadd (%p3170_p4), [#allocation8], 4294965248 }
  0x13   : > { %3084 = dma.done.wait (%p3170_p4), [#allocation10], 2048  }
  0x14   : > { %3086 = vsyncadd (%p3170_p4), [#allocation10], 4294965248  ;;  %s2600_s20 = sshll.u32 %s3089_s24, 3  ;;  %p2602_p8 = scmp.ne.s32.totalorder %s3089_s24, 0 }
  0x15   : > { %p324_p7 = scmp.lt.s32.totalorder %s2600_s20, 15 }
  0x16   : > { %339 = sbr.rel (%p2602_p8) target bundleno = 32 (0x20), region = 60 }
  0x17   : > { %s4473_s20 = smov (!%p324_p7, %s2600_s20), 15 }
  0x18   : > { %s2601_s21 = sshll.u32 %s4473_s20, 3 }
  0x19   : > { %s3198_s27 = scalar_lea.vmem %s4276_s0, %s2601_s21 }
  0x1b   : > { %vm340_vm0 = vcmask 523264   ;;  %v3103_v0 = vmov 0.0  }
  0x1c   : > { %341 = vst.msk [vmem:[#allocation2] sm:$0xff] %vm340_vm0, %v3103_v0 }
  0x1d   : > { %342 = vst.msk [vmem:[#allocation3] sm:$0xff] %vm340_vm0, %v3103_v0 }
  0x1e   : > { %343 = vst.msk [vmem:[#allocation4] sm:$0xff] %vm340_vm0, %v3103_v0 }
  0x1f   : > { %344 = vst.msk [vmem:[#allocation5] sm:$0xff] %vm340_vm0, %v3103_v0 }
  0x20 PF: > { %v3201_v1 = vld [vmem:[#allocation9 + $0x70] sm:$0xff]  ;;  %v3203_v2 = vld [vmem:[#allocation9 + $0x78] sm:$0xff]  ;;  %v3205_v3 = vld [vmem:[#allocation9 + $0x60] sm:$0xff]  ;;  %vm553_vm1 = vcmask 523264   ;;  %vm363_vm2 = vcmask 130048   ;;  %s3104_s14 = smov 64   ;;  %v540_v62 = vlaneseq }
  0x21   : > { %565 = vmatpush.msra.mxu2 %v3201_v1  ;;  %585 = vmatpush.msra.mxu3 %v3203_v2  ;;  %v3209_v4 = vld [vmem:[#allocation9 + $0x68] sm:$0xff]  ;;  %v3211_v5 = vld [vmem:[#allocation9 + $0x50] sm:$0xff]  ;;  %v3213_v6 = vld [vmem:[#allocation9 + $0x58] sm:$0xff] }
  0x22   : > { %v3217_v7 = vld [vmem:[#allocation9 + $0x40] sm:$0xff]  ;;  %v3219_v8 = vld [vmem:[#allocation9 + $0x48] sm:$0xff]  ;;  %v3223_v9 = vld [vmem:[#allocation9 + $0x30] sm:$0xff] }
  0x23   : > { %566 = vmatpush.msra.mxu2 %v3205_v3  ;;  %586 = vmatpush.msra.mxu3 %v3209_v4  ;;  %v3225_v10 = vld [vmem:[#allocation9 + $0x38] sm:$0xff]  ;;  %v3229_v11 = vld [vmem:[#allocation9 + $0x20] sm:$0xff]  ;;  %v3231_v12 = vld [vmem:[#allocation9 + $0x28] sm:$0xff] }
  0x24   : > { %v3235_v13 = vld [vmem:[#allocation9 + $0x10] sm:$0xff]  ;;  %v3237_v14 = vld [vmem:[#allocation9 + $0x18] sm:$0xff]  ;;  %v3241_v15 = vld [vmem:[#allocation9] sm:$0xff] }
  0x25   : > { %567 = vmatpush.msra.mxu2 %v3211_v5  ;;  %587 = vmatpush.msra.mxu3 %v3213_v6  ;;  %v355_v16 = vld [vmem:[%s4277_s1 + $0x10] sm:$0xff]  ;;  %v356_v17 = vld [vmem:[%s4277_s1 + $0x18] sm:$0xff]  ;;  %v3249_v18 = vld [vmem:[#allocation9 + $0x8] sm:$0xff] }
  0x26   : > { %402 = vmatpush.msra.mxu0 %v355_v16  ;;  %443 = vmatpush.msra.mxu1 %v356_v17  ;;  %v353_v19 = vld [vmem:[%s4277_s1] sm:$0xff]  ;;  %v354_v20 = vld [vmem:[%s4277_s1 + $0x8] sm:$0xff]  ;;  %v3262_v21 = vld [vmem:[%s4278_s2 + $0x70] sm:$0xff] }
  0x27   : > { %568 = vmatpush.msra.mxu2 %v3217_v7  ;;  %588 = vmatpush.msra.mxu3 %v3219_v8  ;;  %v3267_v22 = vld [vmem:[%s4278_s2 + $0x78] sm:$0xff]  ;;  %v551_v23 = vld [vmem:[#allocation4] sm:$0xff]  ;;  %v3274_v24 = vld [vmem:[%s4278_s2 + $0x60] sm:$0xff] }
  0x28   : > { %403 = vmatpush.msra.mxu0 %v353_v19  ;;  %444 = vmatpush.msra.mxu1 %v354_v20  ;;  %v3279_v25 = vld [vmem:[%s4278_s2 + $0x68] sm:$0xff]  ;;  %v345_v26 = vld [vmem:[%s3198_s27] sm:$0xff]  ;;  %v3287_v27 = vld [vmem:[%s4278_s2 + $0x50] sm:$0xff]  ;;  %v541_v19 = vand.u32 127, %v540_v62 }
  0x29   : > { %569 = vmatpush.msra.mxu2 %v3223_v9  ;;  %589 = vmatpush.msra.mxu3 %v3225_v10  ;;  %v3292_v28 = vld [vmem:[%s4278_s2 + $0x58] sm:$0xff]  ;;  %v550_v29 = vld [vmem:[#allocation3] sm:$0xff]  ;;  %v3301_v30 = vld [vmem:[%s4278_s2 + $0x40] sm:$0xff] }
  0x2a   : > { %v3306_v31 = vld [vmem:[%s4278_s2 + $0x48] sm:$0xff]  ;;  %2603 = vmatmul.msk.f32.vlgmr.msra.gmra.mxu0 %vm363_vm2, %v345_v26  ;;  %2611 = vmatmul.msk.f32.vlgmr.msra.gmra.mxu1 %vm363_vm2, %v345_v26  ;;  %v3315_v32 = vld [vmem:[%s4278_s2 + $0x30] sm:$0xff]  ;;  %v3320_v33 = vld [vmem:[%s4278_s2 + $0x38] sm:$0xff] }
  0x2b   : > { %570 = vmatpush.msra.mxu2 %v3229_v11  ;;  %590 = vmatpush.msra.mxu3 %v3231_v12  ;;  %v3329_v34 = vld [vmem:[%s4278_s2 + $0x20] sm:$0xff]  ;;  %v3334_v35 = vld [vmem:[%s4278_s2 + $0x28] sm:$0xff]  ;;  %v3343_v36 = vld [vmem:[%s4278_s2 + $0x10] sm:$0xff] }
  0x2c   : > { %689 = vrot.lane.b32.xlu0 %v550_v29, %s3104_s14  ;;  %879 = vmatpush.msrb.mxu1 %v3267_v22  ;;  %v3348_v37 = vld [vmem:[%s4278_s2 + $0x18] sm:$0xff]  ;;  %v3357_v38 = vld [vmem:[%s4278_s2] sm:$0xff]  ;;  %v3362_v39 = vld [vmem:[%s4278_s2 + $0x8] sm:$0xff] }
  0x2d   : > { %571 = vmatpush.msra.mxu2 %v3235_v13  ;;  %591 = vmatpush.msra.mxu3 %v3237_v14  ;;  %v549_v40 = vld [vmem:[#allocation2] sm:$0xff]  ;;  %v3424_v62 = vld [vmem:[#allocation7 + $0x78] sm:$0xff] }
  0x2e   : > { %859 = vmatpush.msrb.mxu0 %v3262_v21  ;;  %880 = vmatpush.msrb.mxu1 %v3279_v25  ;;  %v357_v43 = vld [vmem:[%s4279_s3] sm:$0x3] }
  0x2f   : > { %572 = vmatpush.msra.mxu2 %v3241_v15  ;;  %592 = vmatpush.msra.mxu3 %v3249_v18  ;;  %v3404_v44 = vperm.slane %v357_v43, 0  ;;  %v3406_v45 = vperm.slane %v357_v43, 1  ;;  %v3410_v43 = vadd.s32 128, %v541_v19 }
  0x30   : > { %2619 = vmatmul.msk.f32.vlgmr.msra.gmra.mxu2 %vm553_vm1, %v551_v23  ;;  %2620 = vmatmul.msk.f32.vlgmr.msra.gmra.mxu3 %vm553_vm1, %v551_v23 }
  0x31   : > { %610 = vmatpush.msrb.mxu2 %v3262_v21  ;;  %630 = vmatpush.msrb.mxu3 %v3267_v22  ;;  %4354 = vst [vmem:[#allocation13_spill] sm:$0xff] %v3404_v44  ;;  %vm546_vm10 = vcmp.lt.s32.totalorder %v3410_v43, 192 }
  0x32   : > { %860 = vmatpush.msrb.mxu0 %v3274_v24  ;;  %881 = vmatpush.msrb.mxu1 %v3292_v28  ;;  %4355 = vst [vmem:[#allocation14_spill] sm:$0xff] %v3406_v45 }
  0x33   : > { %611 = vmatpush.msrb.mxu2 %v3274_v24  ;;  %631 = vmatpush.msrb.mxu3 %v3279_v25 }
  0x34   : > { %861 = vmatpush.msrb.mxu0 %v3287_v27  ;;  %882 = vmatpush.msrb.mxu1 %v3306_v31 }
  0x35   : > { %612 = vmatpush.msrb.mxu2 %v3287_v27  ;;  %632 = vmatpush.msrb.mxu3 %v3292_v28 }
  0x36   : > { %862 = vmatpush.msrb.mxu0 %v3301_v30  ;;  %883 = vmatpush.msrb.mxu1 %v3320_v33 }
  0x37   : > { %613 = vmatpush.msrb.mxu2 %v3301_v30  ;;  %633 = vmatpush.msrb.mxu3 %v3306_v31 }
  0x38   : > { %863 = vmatpush.msrb.mxu0 %v3315_v32  ;;  %884 = vmatpush.msrb.mxu1 %v3334_v35 }
  0x39   : > { %614 = vmatpush.msrb.mxu2 %v3315_v32  ;;  %634 = vmatpush.msrb.mxu3 %v3320_v33 }
  0x3a   : > { %864 = vmatpush.msrb.mxu0 %v3329_v34  ;;  %885 = vmatpush.msrb.mxu1 %v3348_v37 }
  0x3b   : > { %615 = vmatpush.msrb.mxu2 %v3329_v34  ;;  %635 = vmatpush.msrb.mxu3 %v3334_v35 }
  0x3c   : > { %865 = vmatpush.msrb.mxu0 %v3343_v36  ;;  %886 = vmatpush.msrb.mxu1 %v3362_v39 }
  0x3d   : > { %616 = vmatpush.msrb.mxu2 %v3343_v36  ;;  %636 = vmatpush.msrb.mxu3 %v3348_v37 }
  0x3e   : > { %1077 = vmatpush.msra.mxu1 %v3203_v2  ;;  %866 = vmatpush.msrb.mxu0 %v3357_v38 }
  0x3f   : > { %617 = vmatpush.msrb.mxu2 %v3357_v38  ;;  %637 = vmatpush.msrb.mxu3 %v3362_v39 }
  0x40   : > { %2621 = vmatmul.msk.f32.vlgmr.msrb.gmra.mxu2 %vm553_vm1, %v549_v40  ;;  %2622 = vmatmul.msk.f32.vlgmr.msrb.gmra.mxu3 %vm553_vm1, %v549_v40 }
  0x41   : > { %1057 = vmatpush.msra.mxu0 %v3201_v1  ;;  %1078 = vmatpush.msra.mxu1 %v3209_v4 }
  0x42   : > { %734 = vmatpush.msra.mxu3 %v3424_v62 }
  0x43   : > { %1058 = vmatpush.msra.mxu0 %v3205_v3  ;;  %1079 = vmatpush.msra.mxu1 %v3213_v6 }
  0x45   : > { %1059 = vmatpush.msra.mxu0 %v3211_v5  ;;  %1080 = vmatpush.msra.mxu1 %v3219_v8 }
  0x47   : > { %1060 = vmatpush.msra.mxu0 %v3217_v7  ;;  %1081 = vmatpush.msra.mxu1 %v3225_v10 }
  0x49   : > { %1061 = vmatpush.msra.mxu0 %v3223_v9  ;;  %1082 = vmatpush.msra.mxu1 %v3231_v12 }
  0x4b   : > { %1062 = vmatpush.msra.mxu0 %v3229_v11  ;;  %1083 = vmatpush.msra.mxu1 %v3237_v14 }
  0x4d   : > { %1063 = vmatpush.msra.mxu0 %v3235_v13  ;;  %1084 = vmatpush.msra.mxu1 %v3249_v18 }
  0x4f   : > { %1064 = vmatpush.msra.mxu0 %v3241_v15 }
  0x9e   : > { %v690_v19 = vpop.permute.xlu0 %689 }
  0xa7   : > { %v405_v46 = vpop.f32.mrf.mxu0  ;;  %v446_v47 = vpop.f32.mrf.mxu1 }
  0xa8   : > { %v406_v48 = vadd.f32 %v405_v46, %v3404_v44  ;;  %v447_v49 = vadd.f32 %v446_v47, %v3406_v45 }
  0xb3   : > { %v3397_v41 = vpop.f32.mrf.mxu2  ;;  %v3399_v42 = vpop.f32.mrf.mxu3 }
  0xc3   : > { %v619_v50 = vpop.f32.mrf.mxu2  ;;  %v639_v51 = vpop.f32.mrf.mxu3 }
  0xc4   : > { %v642_v52 = vadd.f32 %v619_v50, %v406_v48  ;;  %v643_v53 = vadd.f32 %v639_v51, %v447_v49 }
  0xc6   : > { %v2623_v54 = vmul.f32 -1.442695, %v642_v52  ;;  %v2624_v55 = vmul.f32 -1.442695, %v643_v53 }
  0xc8   : > { %2783 = vpow2.f32 %v2623_v54 }
  0xc9   : > { %2785 = vpow2.f32 %v2624_v55 }
  0xce   : > { %v2784_v56 = vpop.eup %2783 }
  0xcf   : > { %v2786_v57 = vpop.eup %2785  ;;  %v650_v58 = vadd.f32 1.0, %v2784_v56 }
  0xd0   : > { %v651_v59 = vadd.f32 1.0, %v2786_v57 }
  0xd1   : > { %2787 = vrcp.f32 %v650_v58  ;;  %v663_v48 = vand.u32 2147483648, %v650_v58  ;;  %vm657_vm8 = vweird.f32 %v650_v58  ;;  %v661_v50 = vand.u32 2147483647, %v650_v58 }
  0xd2   : > { %2789 = vrcp.f32 %v651_v59  ;;  %v678_v23 = vand.u32 2147483648, %v651_v59  ;;  %v676_v29 = vand.u32 2147483647, %v651_v59  ;;  %vm672_vm4 = vweird.f32 %v651_v59 }
  0xd3   : > { %v664_v54 = vor.u32 1.1754944e-38, %v663_v48  ;;  %vm662_vm11 = vcmp.eq.f32.partialorder %v661_v50, 8.507059e+37  ;;  %v3461_v50 = vld [vmem:[#allocation7 + $0x18] sm:$0xff] }
  0xd4   : > { %v679_v47 = vor.u32 1.1754944e-38, %v678_v23  ;;  %vm677_vm7 = vcmp.eq.f32.partialorder %v676_v29, 8.507059e+37  ;;  %v3440_v23 = vld [vmem:[#allocation7 + $0x48] sm:$0xff]  ;;  %v3449_v29 = vld [vmem:[#allocation7 + $0x30] sm:$0xff]  ;;  %4367 = vst [vmem:[#allocation26_spill] sm:$0xff] %v3461_v50 }
  0xd5   : > { %4361 = vst [vmem:[#allocation20_spill] sm:$0xff] %v3440_v23 }
  0xd6   : > { %4362 = vst [vmem:[#allocation21_spill] sm:$0xff] %v3449_v29 }
  0xd7   : > { %v2788_v60 = vpop.eup %2787 }
  0xd8   : > { %v2790_v61 = vpop.eup %2789  ;;  %v653_v63 = vmul.f32 %v2788_v60, %v650_v58  ;;  %vm658_vm5 = vweird.f32 %v2788_v60  ;;  %v347_v58 = vld [vmem:[%s3198_s27 + $0x10] sm:$0xff] }
  0xd9   : > { %v668_v0 = vmul.f32 %v2790_v61, %v651_v59  ;;  %vm673_vm3 = vweird.f32 %v2790_v61  ;;  %vm659_vm9 = vmor %vm657_vm8, %vm658_vm5 }
  0xda   : > { %v654_v16 = vsub.f32 1.0, %v653_v63  ;;  %vm674_vm6 = vmor %vm672_vm4, %vm673_vm3  ;;  %v3426_v63 = vld [vmem:[#allocation7 + $0x60] sm:$0xff] }
  0xdb   : > { %v669_v17 = vsub.f32 1.0, %v668_v0  ;;  %4356 = vst [vmem:[#allocation15_spill] sm:$0xff] %v3426_v63  ;;  %v3430_v0 = vld [vmem:[#allocation7 + $0x68] sm:$0xff] }
  0xdc   : > { %v655_v20 = vmul.f32 %v2788_v60, %v654_v16  ;;  %4357 = vst [vmem:[#allocation16_spill] sm:$0xff] %v3430_v0  ;;  %v3432_v16 = vld [vmem:[#allocation7 + $0x50] sm:$0xff]  ;;  %735 = vmatpush.msra.mxu3 %v3430_v0 }
  0xdd   : > { %v670_v26 = vmul.f32 %v2790_v61, %v669_v17  ;;  %4358 = vst [vmem:[#allocation17_spill] sm:$0xff] %v3432_v16  ;;  %v3434_v17 = vld [vmem:[#allocation7 + $0x58] sm:$0xff] }
  0xde   : > { %v656_v46 = vadd.f32 %v2788_v60, %v655_v20  ;;  %4359 = vst [vmem:[#allocation18_spill] sm:$0xff] %v3434_v17  ;;  %v3438_v20 = vld [vmem:[#allocation7 + $0x40] sm:$0xff]  ;;  %736 = vmatpush.msra.mxu3 %v3434_v17 }
  0xdf   : > { %v671_v40 = vadd.f32 %v2790_v61, %v670_v26  ;;  %4360 = vst [vmem:[#allocation19_spill] sm:$0xff] %v3438_v20  ;;  %v348_v26 = vld [vmem:[%s3198_s27 + $0x18] sm:$0xff] }
  0xe0   : > { %v660_v53 = vsel %vm659_vm9, %v2788_v60, %v656_v46  ;;  %v3422_v60 = vld [vmem:[#allocation7 + $0x70] sm:$0xff]  ;;  %737 = vmatpush.msra.mxu3 %v3440_v23  ;;  %v3453_v46 = vld [vmem:[#allocation7 + $0x20] sm:$0xff] }
  0xe1   : > { %v675_v49 = vsel %vm674_vm6, %v2790_v61, %v671_v40  ;;  %v665_v56 = vsel %vm662_vm11, %v664_v54, %v660_v53  ;;  %v346_v61 = vld [vmem:[%s3198_s27 + $0x8] sm:$0xff]  ;;  %714 = vmatpush.msra.mxu2 %v3422_v60  ;;  %v3451_v40 = vld [vmem:[#allocation7 + $0x38] sm:$0xff]  ;;  %4364 = vst [vmem:[#allocation23_spill] sm:$0xff] %v3453_v46  ;;  %v3467_v53 = vld [vmem:[#allocation7] sm:$0xff] }
  0xe2   : > { %v680_v51 = vsel %vm677_vm7, %v679_v47, %v675_v49  ;;  %2604 = vmatmul.msk.f32.gmra.mxu0 %vm363_vm2, %v346_v61  ;;  %2612 = vmatmul.msk.f32.gmra.mxu1 %vm363_vm2, %v346_v61  ;;  %4363 = vst [vmem:[#allocation22_spill] sm:$0xff] %v3451_v40  ;;  %v3457_v47 = vld [vmem:[#allocation7 + $0x28] sm:$0xff]  ;;  %v692_v48 = vmul.f32 %v690_v19, %v665_v56  ;;  %v3459_v49 = vld [vmem:[#allocation7 + $0x10] sm:$0xff]  ;;  %v552_v19 = vld [vmem:[#allocation5] sm:$0xff] }
  0xe3   : > { %v683_v52 = vmul.f32 2.0, %v680_v51  ;;  %715 = vmatpush.msra.mxu2 %v3426_v63  ;;  %738 = vmatpush.msra.mxu3 %v3451_v40  ;;  %4365 = vst [vmem:[#allocation24_spill] sm:$0xff] %v3457_v47  ;;  %v3469_v54 = vld [vmem:[#allocation7 + $0x8] sm:$0xff] }
  0xe4   : > { %4366 = vst [vmem:[#allocation25_spill] sm:$0xff] %v3459_v49  ;;  %v350_v61 = vld [vmem:[%s3198_s27 + $0x28] sm:$0xff] }
  0xe5   : > { %v2626_v55 = vadd.f32 -1.0, %v683_v52  ;;  %716 = vmatpush.msra.mxu2 %v3432_v16  ;;  %739 = vmatpush.msra.mxu3 %v3457_v47  ;;  %4368 = vst [vmem:[#allocation27_spill] sm:$0xff] %v3467_v53 }
  0xe6   : > { %4369 = vst [vmem:[#allocation28_spill] sm:$0xff] %v3469_v54 }
  0xe7   : > { %v687_v57 = vsel %vm546_vm10, %v2626_v55, %v680_v51  ;;  %717 = vmatpush.msra.mxu2 %v3438_v20  ;;  %v349_v55 = vld [vmem:[%s3198_s27 + $0x20] sm:$0xff]  ;;  %740 = vmatpush.msra.mxu3 %v3461_v50 }
  0xe8   : > { %v693_v59 = vmul.f32 %v687_v57, %v665_v56 }
  0xe9   : > { %718 = vmatpush.msra.mxu2 %v3449_v29  ;;  %741 = vmatpush.msra.mxu3 %v3469_v54 }
  0xea   : > { %695 = vrot.lane.b32.xlu0 %v693_v59, %s3104_s14  ;;  %2605 = vmatmul.msk.f32.gmra.mxu0 %vm363_vm2, %v347_v58 }
  0xeb   : > { %2613 = vmatmul.msk.f32.gmra.mxu1 %vm363_vm2, %v347_v58  ;;  %719 = vmatpush.msra.mxu2 %v3453_v46  ;;  %v352_v58 = vld [vmem:[%s3198_s27 + $0x38] sm:$0xff] }
  0xec   : > { %836 = vmatpush.msrb.mxu3 %v3203_v2 }
  0xed   : > { %720 = vmatpush.msra.mxu2 %v3459_v49 }
  0xee   : > { %837 = vmatpush.msrb.mxu3 %v3209_v4 }
  0xef   : > { %721 = vmatpush.msra.mxu2 %v3467_v53 }
  0xf0   : > { %838 = vmatpush.msrb.mxu3 %v3213_v6 }
  0xf1   : > { %816 = vmatpush.msrb.mxu2 %v3201_v1 }
  0xf2   : > { %2606 = vmatmul.msk.f32.gmra.mxu0 %vm363_vm2, %v348_v26  ;;  %839 = vmatpush.msrb.mxu3 %v3219_v8 }
  0xf3   : > { %2614 = vmatmul.msk.f32.gmra.mxu1 %vm363_vm2, %v348_v26  ;;  %817 = vmatpush.msrb.mxu2 %v3205_v3 }
  0xf4   : > { %840 = vmatpush.msrb.mxu3 %v3225_v10 }
  0xf5   : > { %818 = vmatpush.msrb.mxu2 %v3211_v5 }
  0xf6   : > { %841 = vmatpush.msrb.mxu3 %v3231_v12 }
  0xf7   : > { %819 = vmatpush.msrb.mxu2 %v3217_v7 }
  0xf8   : > { %842 = vmatpush.msrb.mxu3 %v3237_v14 }
  0xf9   : > { %820 = vmatpush.msrb.mxu2 %v3223_v9 }
  0xfa   : > { %2607 = vmatmul.msk.f32.gmra.mxu0 %vm363_vm2, %v349_v55  ;;  %843 = vmatpush.msrb.mxu3 %v3249_v18 }
  0xfb   : > { %2615 = vmatmul.msk.f32.gmra.mxu1 %vm363_vm2, %v349_v55  ;;  %821 = vmatpush.msrb.mxu2 %v3229_v11 }
  0xfd   : > { %822 = vmatpush.msrb.mxu2 %v3235_v13 }
  0xff   : > { %823 = vmatpush.msrb.mxu2 %v3241_v15 }
 0x102   : > { %2608 = vmatmul.msk.f32.gmra.mxu0 %vm363_vm2, %v350_v61 }
 0x103   : > { %2616 = vmatmul.msk.f32.gmra.mxu1 %vm363_vm2, %v350_v61 }
 0x15c   : > { %v696_v51 = vpop.permute.xlu0 %695 }
 0x15d   : > { %v3465_v52 = vadd.f32 %v696_v51, %v692_v48 }
 0x15f   : > { %2791 = vtanh.f32 %v3465_v52  ;;  %v408_v48 = vpop.f32.mrf.mxu0  ;;  %v449_v51 = vpop.f32.mrf.mxu1 }
 0x165   : > { %v2792_v56 = vpop.eup %2791 }
 0x166   : > { %v700_v59 = vmul.f32 %v2792_v56, %v687_v57  ;;  %v351_v57 = vld [vmem:[%s3198_s27 + $0x30] sm:$0xff] }
 0x167   : > { %2609 = vmatmul.msk.f32.gmra.mxu0 %vm363_vm2, %v351_v57  ;;  %2617 = vmatmul.msk.f32.gmra.mxu1 %vm363_vm2, %v351_v57  ;;  %v3542_v55 = vpop.f32.mrf.mxu0 }
 0x168   : > { %702 = vrot.lane.b32.xlu1 %v700_v59, %s3104_s14  ;;  %4370 = vst [vmem:[#allocation29_spill] sm:$0xff] %v3542_v55  ;;  %v3544_v56 = vpop.f32.mrf.mxu1 }
 0x169   : > { %4371 = vst [vmem:[#allocation30_spill] sm:$0xff] %v3544_v56 }
 0x16f   : > { %2610 = vmatmul.msk.f32.gmra.mxu0 %vm363_vm2, %v352_v58  ;;  %2618 = vmatmul.msk.f32.gmra.mxu1 %vm363_vm2, %v352_v58  ;;  %v3546_v59 = vpop.f32.mrf.mxu0 }
 0x170   : > { %791 = vrot.lane.b32.xlu1 %v552_v19, %s3104_s14  ;;  %4372 = vst [vmem:[#allocation31_spill] sm:$0xff] %v3546_v59  ;;  %v3548_v61 = vpop.f32.mrf.mxu1 }
 0x171   : > { %4373 = vst [vmem:[#allocation32_spill] sm:$0xff] %v3548_v61  ;;  %v534_v61 = vld [vmem:[%s4282_s6] sm:$0x3] }
 0x172   : > { %v3571_v59 = vperm.slane %v534_v61, 0 }
 0x174   : > { %4382 = vst [vmem:[#allocation41_spill] sm:$0xff] %v3571_v59 }
 0x177   : > { %v3550_v57 = vpop.f32.mrf.mxu0 }
 0x178   : > { %4374 = vst [vmem:[#allocation33_spill] sm:$0xff] %v3550_v57  ;;  %v3552_v58 = vpop.f32.mrf.mxu1  ;;  %v409_v57 = vadd.f32 %v408_v48, %v3404_v44 }
 0x179   : > { %4375 = vst [vmem:[#allocation34_spill] sm:$0xff] %v3552_v58  ;;  %v450_v58 = vadd.f32 %v449_v51, %v3406_v45 }
 0x17f   : > { %v3554_v19 = vpop.f32.mrf.mxu0 }
 0x180   : > { %4376 = vst [vmem:[#allocation35_spill] sm:$0xff] %v3554_v19  ;;  %v3573_v19 = vperm.slane %v534_v61, 1 }
 0x182   : > { %4383 = vst [vmem:[#allocation42_spill] sm:$0xff] %v3573_v19 }
 0x1da   : > { %v703_v26 = vpop.permute.xlu1 %702 }
 0x1db   : > { %2627 = vmatmul.msk.f32.vlgmr.msra.gmra.mxu2 %vm553_vm1, %v703_v26  ;;  %2628 = vmatmul.msk.f32.vlgmr.msra.gmra.mxu3 %vm553_vm1, %v703_v26 }
 0x1dc   : > { %2635 = vmatmul.msk.f32.vlgmr.msrb.gmra.mxu0 %vm553_vm1, %v703_v26  ;;  %2636 = vmatmul.msk.f32.vlgmr.msrb.gmra.mxu1 %vm553_vm1, %v703_v26  ;;  %v3556_v26 = vpop.f32.mrf.mxu1 }
 0x1dd   : > { %959 = vmatpush.msra.mxu2 %v3422_v60  ;;  %979 = vmatpush.msra.mxu3 %v3424_v62  ;;  %4377 = vst [vmem:[#allocation36_spill] sm:$0xff] %v3556_v26 }
 0x1de   : > { %1200 = vmatpush.msrb.mxu0 %v3422_v60  ;;  %1220 = vmatpush.msrb.mxu1 %v3424_v62 }
 0x1df   : > { %960 = vmatpush.msra.mxu2 %v3426_v63  ;;  %980 = vmatpush.msra.mxu3 %v3430_v0 }
 0x1e0   : > { %1201 = vmatpush.msrb.mxu0 %v3426_v63  ;;  %1221 = vmatpush.msrb.mxu1 %v3430_v0 }
 0x1e1   : > { %961 = vmatpush.msra.mxu2 %v3432_v16  ;;  %981 = vmatpush.msra.mxu3 %v3434_v17 }
 0x1e2   : > { %1202 = vmatpush.msrb.mxu0 %v3432_v16  ;;  %1222 = vmatpush.msrb.mxu1 %v3434_v17 }
 0x1e3   : > { %962 = vmatpush.msra.mxu2 %v3438_v20  ;;  %982 = vmatpush.msra.mxu3 %v3440_v23 }
 0x1e4   : > { %1203 = vmatpush.msrb.mxu0 %v3438_v20  ;;  %1223 = vmatpush.msrb.mxu1 %v3440_v23 }
 0x1e5   : > { %963 = vmatpush.msra.mxu2 %v3449_v29  ;;  %983 = vmatpush.msra.mxu3 %v3451_v40 }
 0x1e6   : > { %1204 = vmatpush.msrb.mxu0 %v3449_v29  ;;  %1224 = vmatpush.msrb.mxu1 %v3451_v40 }
 0x1e7   : > { %964 = vmatpush.msra.mxu2 %v3453_v46  ;;  %984 = vmatpush.msra.mxu3 %v3457_v47 }
 0x1e8   : > { %1205 = vmatpush.msrb.mxu0 %v3453_v46  ;;  %1225 = vmatpush.msrb.mxu1 %v3457_v47 }
 0x1e9   : > { %965 = vmatpush.msra.mxu2 %v3459_v49  ;;  %985 = vmatpush.msra.mxu3 %v3461_v50 }
 0x1ea   : > { %1206 = vmatpush.msrb.mxu0 %v3459_v49  ;;  %1226 = vmatpush.msrb.mxu1 %v3461_v50 }
 0x1eb   : > { %966 = vmatpush.msra.mxu2 %v3467_v53  ;;  %986 = vmatpush.msra.mxu3 %v3469_v54 }
 0x1ec   : > { %1207 = vmatpush.msrb.mxu0 %v3467_v53  ;;  %1227 = vmatpush.msrb.mxu1 %v3469_v54  ;;  %v3558_v53 = vpop.f32.mrf.mxu0  ;;  %v3560_v54 = vpop.f32.mrf.mxu1 }
 0x1ed   : > { %4378 = vst [vmem:[#allocation37_spill] sm:$0xff] %v3558_v53 }
 0x1ee   : > { %4379 = vst [vmem:[#allocation38_spill] sm:$0xff] %v3560_v54 }
 0x1f4   : > { %v3562_v50 = vpop.f32.mrf.mxu0  ;;  %v3564_v55 = vpop.f32.mrf.mxu1 }
 0x1f5   : > { %4380 = vst [vmem:[#allocation39_spill] sm:$0xff] %v3562_v50  ;;  %v595_v50 = vadd.f32 %v3399_v42, %v3573_v19 }
 0x1f6   : > { %4381 = vst [vmem:[#allocation40_spill] sm:$0xff] %v3564_v55  ;;  %v575_v55 = vadd.f32 %v3397_v41, %v3571_v59 }
 0x259   : > { %v868_v26 = vpop.f32.mrf.mxu0  ;;  %v888_v53 = vpop.f32.mrf.mxu1 }
 0x25a   : > { %v891_v56 = vadd.f32 %v868_v26, %v409_v57  ;;  %v892_v54 = vadd.f32 %v888_v53, %v450_v58 }
 0x25c   : > { %v2638_v49 = vmul.f32 -1.442695, %v892_v54  ;;  %v2637_v47 = vmul.f32 -1.442695, %v891_v56 }
 0x25e   : > { %v723_v46 = vpop.f32.mrf.mxu2  ;;  %v743_v48 = vpop.f32.mrf.mxu3  ;;  %2793 = vpow2.f32 %v2638_v49 }
 0x25f   : > { %v724_v51 = vadd.f32 %v723_v46, %v575_v55  ;;  %v744_v45 = vadd.f32 %v743_v48, %v595_v50  ;;  %2795 = vpow2.f32 %v2637_v47 }
 0x261   : > { %v2629_v61 = vmul.f32 -1.442695, %v724_v51  ;;  %v2630_v44 = vmul.f32 -1.442695, %v744_v45 }
 0x263   : > { %2797 = vpow2.f32 %v2629_v61 }
 0x264   : > { %2799 = vpow2.f32 %v2630_v44  ;;  %v2794_v57 = vpop.eup %2793 }
 0x265   : > { %v900_v53 = vadd.f32 1.0, %v2794_v57  ;;  %v2796_v54 = vpop.eup %2795 }
 0x266   : > { %v3579_v26 = vadd.f32 1.0, %v2796_v54 }
 0x267   : > { %2801 = vrcp.f32 %v900_v53  ;;  %v927_v54 = vand.u32 2147483648, %v900_v53  ;;  %vm921_vm13 = vweird.f32 %v900_v53 }
 0x268   : > { %vm906_vm11 = vweird.f32 %v3579_v26 }
 0x269   : > { %v2798_v58 = vpop.eup %2797 }
 0x26a   : > { %v2800_v41 = vpop.eup %2799  ;;  %v752_v42 = vadd.f32 1.0, %v2798_v58 }
 0x26b   : > { %v753_v56 = vadd.f32 1.0, %v2800_v41 }
 0x26c   : > { %2803 = vrcp.f32 %v752_v42  ;;  %v765_v17 = vand.u32 2147483648, %v752_v42  ;;  %vm759_vm6 = vweird.f32 %v752_v42 }
 0x26d   : > { %2805 = vrcp.f32 %v753_v56  ;;  %v2802_v49 = vpop.eup %2801  ;;  %v780_v59 = vand.u32 2147483648, %v753_v56  ;;  %v778_v29 = vand.u32 2147483647, %v753_v56  ;;  %vm774_vm0 = vweird.f32 %v753_v56 }
 0x26e   : > { %2807 = vrcp.f32 %v3579_v26  ;;  %v917_v46 = vmul.f32 %v2802_v49, %v900_v53  ;;  %vm922_vm12 = vweird.f32 %v2802_v49  ;;  %v766_v23 = vor.u32 1.1754944e-38, %v765_v17 }
 0x26f   : > { %vm3583_vm15 = vmor %vm921_vm13, %vm922_vm12  ;;  %vm779_vm4 = vcmp.eq.f32.partialorder %v778_v29, 8.507059e+37  ;;  %v912_v29 = vand.u32 2147483648, %v3579_v26 }
 0x270   : > { %v918_v47 = vsub.f32 1.0, %v917_v46  ;;  %v925_v46 = vand.u32 2147483647, %v900_v53  ;;  %v763_v53 = vand.u32 2147483647, %v752_v42 }
 0x272   : > { %v2804_v45 = vpop.eup %2803  ;;  %v919_v55 = vmul.f32 %v2802_v49, %v918_v47  ;;  %vm926_vm5 = vcmp.eq.f32.partialorder %v925_v46, 8.507059e+37  ;;  %vm764_vm8 = vcmp.eq.f32.partialorder %v763_v53, 8.507059e+37 }
 0x273   : > { %v2806_v50 = vpop.eup %2805  ;;  %v755_v44 = vmul.f32 %v2804_v45, %v752_v42  ;;  %vm760_vm2 = vweird.f32 %v2804_v45 }
 0x274   : > { %v2808_v48 = vpop.eup %2807  ;;  %v770_v51 = vmul.f32 %v2806_v50, %v753_v56  ;;  %v920_v19 = vadd.f32 %v2802_v49, %v919_v55  ;;  %vm775_vm14 = vweird.f32 %v2806_v50  ;;  %v928_v55 = vor.u32 1.1754944e-38, %v927_v54  ;;  %vm761_vm7 = vmor %vm759_vm6, %vm760_vm2 }
 0x275   : > { %v756_v61 = vsub.f32 1.0, %v755_v44  ;;  %v902_v58 = vmul.f32 %v2808_v48, %v3579_v26  ;;  %vm776_vm3 = vmor %vm774_vm0, %vm775_vm14  ;;  %vm907_vm9 = vweird.f32 %v2808_v48 }
 0x276   : > { %v771_v57 = vsub.f32 1.0, %v770_v51  ;;  %v924_v44 = vsel %vm3583_vm15, %v2802_v49, %v920_v19  ;;  %vm908_vm12 = vmor %vm906_vm11, %vm907_vm9 }
 0x277   : > { %v757_v41 = vmul.f32 %v2804_v45, %v756_v61  ;;  %v781_v61 = vor.u32 1.1754944e-38, %v780_v59  ;;  %v903_v20 = vsub.f32 1.0, %v902_v58  ;;  %v929_v0 = vsel %vm926_vm5, %v928_v55, %v924_v44 }
 0x278   : > { %v772_v40 = vmul.f32 %v2806_v50, %v771_v57  ;;  %v932_v49 = vmul.f32 2.0, %v929_v0 }
 0x279   : > { %v758_v51 = vadd.f32 %v2804_v45, %v757_v41  ;;  %v904_v63 = vmul.f32 %v2808_v48, %v903_v20  ;;  %v910_v20 = vand.u32 2147483647, %v3579_v26 }
 0x27a   : > { %v773_v47 = vadd.f32 %v2806_v50, %v772_v40  ;;  %v2640_v42 = vadd.f32 -1.0, %v932_v49 }
 0x27b   : > { %v762_v56 = vsel %vm761_vm7, %v2804_v45, %v758_v51  ;;  %v913_v45 = vor.u32 1.1754944e-38, %v912_v29  ;;  %vm911_vm13 = vcmp.eq.f32.partialorder %v910_v20, 8.507059e+37 }
 0x27c   : > { %v777_v57 = vsel %vm776_vm3, %v2806_v50, %v773_v47  ;;  %v767_v54 = vsel %vm764_vm8, %v766_v23, %v762_v56  ;;  %v905_v50 = vadd.f32 %v2808_v48, %v904_v63  ;;  %v936_v41 = vsel %vm546_vm10, %v2640_v42, %v929_v0  ;;  %v792_v63 = vpop.permute.xlu1 %791 }
 0x27d   : > { %v782_v16 = vsel %vm779_vm4, %v781_v61, %v777_v57  ;;  %v794_v47 = vmul.f32 %v792_v63, %v767_v54 }
 0x27e   : > { %v785_v40 = vmul.f32 2.0, %v782_v16  ;;  %v909_v17 = vsel %vm908_vm12, %v2808_v48, %v905_v50 }
 0x280   : > { %v2632_v19 = vadd.f32 -1.0, %v785_v40 }
 0x282   : > { %v789_v59 = vsel %vm546_vm10, %v2632_v19, %v782_v16  ;;  %v914_v16 = vsel %vm911_vm13, %v913_v45, %v909_v17 }
 0x283   : > { %v795_v58 = vmul.f32 %v789_v59, %v767_v54  ;;  %v938_v46 = vmul.f32 %v936_v41, %v914_v16  ;;  %v937_v26 = vmul.f32 %v914_v16, %v3465_v52 }
 0x285   : > { %797 = vrot.lane.b32.xlu2 %v795_v58, %s3104_s14 }
 0x28d   : > { %940 = vrot.lane.b32.xlu2 %v938_v46, %s3104_s14 }
 0x2df   : > { %v798_v44 = vpop.permute.xlu2 %797 }
 0x2e0   : > { %v3598_v55 = vadd.f32 %v798_v44, %v794_v47 }
 0x2e2   : > { %2809 = vtanh.f32 %v3598_v55 }
 0x2e7   : > { %v941_v51 = vpop.permute.xlu2 %940 }
 0x2e8   : > { %v2810_v48 = vpop.eup %2809  ;;  %v3602_v61 = vadd.f32 %v941_v51, %v937_v26 }
 0x2e9   : > { %v802_v57 = vmul.f32 %v2810_v48, %v789_v59 }
 0x2ea   : > { %2811 = vtanh.f32 %v3602_v61 }
 0x2eb   : > { %804 = vrot.lane.b32.xlu0 %v802_v57, %s3104_s14 }
 0x2f0   : > { %v2812_v0 = vpop.eup %2811 }
 0x2f1   : > { %v945_v53 = vmul.f32 %v2812_v0, %v936_v41 }
 0x2f3   : > { %947 = vrot.lane.b32.xlu1 %v945_v53, %s3104_s14 }
 0x35d   : > { %v805_v40 = vpop.permute.xlu0 %804 }
 0x35e   : > { %2633 = vmatmul.msk.f32.vlgmr.msrb.gmra.mxu2 %vm553_vm1, %v805_v40  ;;  %2634 = vmatmul.msk.f32.vlgmr.msrb.gmra.mxu3 %vm553_vm1, %v805_v40 }
 0x35f   : > { %1100 = vmatpush.msrb.mxu2 %v3262_v21  ;;  %1120 = vmatpush.msrb.mxu3 %v3267_v22  ;;  %v4400_v21 = vld [vmem:[#allocation41_spill] sm:$0xff] }
 0x361   : > { %1101 = vmatpush.msrb.mxu2 %v3274_v24  ;;  %1121 = vmatpush.msrb.mxu3 %v3279_v25  ;;  %v4401_v24 = vld [vmem:[#allocation42_spill] sm:$0xff] }
 0x363   : > { %1102 = vmatpush.msrb.mxu2 %v3287_v27  ;;  %1122 = vmatpush.msrb.mxu3 %v3292_v28 }
 0x365   : > { %1103 = vmatpush.msrb.mxu2 %v3301_v30  ;;  %1123 = vmatpush.msrb.mxu3 %v3306_v31  ;;  %v948_v52 = vpop.permute.xlu1 %947 }
 0x366   : > { %2641 = vmatmul.msk.f32.vlgmr.msra.gmra.mxu2 %vm553_vm1, %v948_v52  ;;  %2642 = vmatmul.msk.f32.vlgmr.msra.gmra.mxu3 %vm553_vm1, %v948_v52 }
 0x367   : > { %1104 = vmatpush.msrb.mxu2 %v3315_v32  ;;  %1124 = vmatpush.msrb.mxu3 %v3320_v33 }
 0x369   : > { %1105 = vmatpush.msrb.mxu2 %v3329_v34  ;;  %1125 = vmatpush.msrb.mxu3 %v3334_v35  ;;  %v4402_v34 = vld [vmem:[#allocation13_spill] sm:$0xff] }
 0x36a   : > { %v4403_v35 = vld [vmem:[#allocation29_spill] sm:$0xff] }
 0x36b   : > { %1106 = vmatpush.msrb.mxu2 %v3343_v36  ;;  %1126 = vmatpush.msrb.mxu3 %v3348_v37  ;;  %v412_v36 = vadd.f32 %v4403_v35, %v4402_v34  ;;  %v4404_v37 = vld [vmem:[#allocation14_spill] sm:$0xff] }
 0x36d   : > { %1107 = vmatpush.msrb.mxu2 %v3357_v38  ;;  %1127 = vmatpush.msrb.mxu3 %v3362_v39  ;;  %v4405_v38 = vld [vmem:[#allocation30_spill] sm:$0xff] }
 0x36e   : > { %2649 = vmatmul.msk.f32.vlgmr.msrb.gmra.mxu2 %vm553_vm1, %v948_v52  ;;  %2650 = vmatmul.msk.f32.vlgmr.msrb.gmra.mxu3 %vm553_vm1, %v948_v52  ;;  %v453_v39 = vadd.f32 %v4405_v38, %v4404_v37 }
 0x36f   : > { %1298 = vmatpush.msra.mxu2 %v3201_v1  ;;  %1318 = vmatpush.msra.mxu3 %v3203_v2  ;;  %v4386_v1 = vld [vmem:[#allocation15_spill] sm:$0xff]  ;;  %v4387_v2 = vld [vmem:[#allocation16_spill] sm:$0xff] }
 0x371   : > { %1299 = vmatpush.msra.mxu2 %v3205_v3  ;;  %1319 = vmatpush.msra.mxu3 %v3209_v4  ;;  %v4388_v3 = vld [vmem:[#allocation17_spill] sm:$0xff]  ;;  %v4389_v4 = vld [vmem:[#allocation18_spill] sm:$0xff] }
 0x373   : > { %1300 = vmatpush.msra.mxu2 %v3211_v5  ;;  %1320 = vmatpush.msra.mxu3 %v3213_v6  ;;  %v4390_v5 = vld [vmem:[#allocation19_spill] sm:$0xff]  ;;  %v4391_v6 = vld [vmem:[#allocation20_spill] sm:$0xff] }
 0x375   : > { %1301 = vmatpush.msra.mxu2 %v3217_v7  ;;  %1321 = vmatpush.msra.mxu3 %v3219_v8  ;;  %v4392_v7 = vld [vmem:[#allocation21_spill] sm:$0xff]  ;;  %v4393_v8 = vld [vmem:[#allocation22_spill] sm:$0xff] }
 0x377   : > { %1302 = vmatpush.msra.mxu2 %v3223_v9  ;;  %1322 = vmatpush.msra.mxu3 %v3225_v10  ;;  %v4394_v9 = vld [vmem:[#allocation23_spill] sm:$0xff]  ;;  %v4395_v10 = vld [vmem:[#allocation24_spill] sm:$0xff] }
 0x379   : > { %1303 = vmatpush.msra.mxu2 %v3229_v11  ;;  %1323 = vmatpush.msra.mxu3 %v3231_v12  ;;  %v4396_v11 = vld [vmem:[#allocation25_spill] sm:$0xff]  ;;  %v4397_v12 = vld [vmem:[#allocation26_spill] sm:$0xff] }
 0x37b   : > { %1304 = vmatpush.msra.mxu2 %v3235_v13  ;;  %1324 = vmatpush.msra.mxu3 %v3237_v14  ;;  %v4398_v13 = vld [vmem:[#allocation27_spill] sm:$0xff]  ;;  %v4399_v14 = vld [vmem:[#allocation28_spill] sm:$0xff] }
 0x37d   : > { %1305 = vmatpush.msra.mxu2 %v3241_v15  ;;  %1325 = vmatpush.msra.mxu3 %v3249_v18 }
 0x37f   : > { %1441 = vmatpush.msrb.mxu2 %v3422_v60  ;;  %1461 = vmatpush.msrb.mxu3 %v3424_v62 }
 0x381   : > { %1442 = vmatpush.msrb.mxu2 %v4386_v1  ;;  %1462 = vmatpush.msrb.mxu3 %v4387_v2 }
 0x383   : > { %1443 = vmatpush.msrb.mxu2 %v4388_v3  ;;  %1463 = vmatpush.msrb.mxu3 %v4389_v4 }
 0x385   : > { %1444 = vmatpush.msrb.mxu2 %v4390_v5  ;;  %1464 = vmatpush.msrb.mxu3 %v4391_v6 }
 0x387   : > { %1445 = vmatpush.msrb.mxu2 %v4392_v7  ;;  %1465 = vmatpush.msrb.mxu3 %v4393_v8 }
 0x389   : > { %1446 = vmatpush.msrb.mxu2 %v4394_v9  ;;  %1466 = vmatpush.msrb.mxu3 %v4395_v10 }
 0x38b   : > { %1447 = vmatpush.msrb.mxu2 %v4396_v11  ;;  %1467 = vmatpush.msrb.mxu3 %v4397_v12 }
 0x38d   : > { %1448 = vmatpush.msrb.mxu2 %v4398_v13  ;;  %1468 = vmatpush.msrb.mxu3 %v4399_v14 }
 0x3e1   : > { %v825_v15 = vpop.f32.mrf.mxu2  ;;  %v845_v18 = vpop.f32.mrf.mxu3 }
 0x3e2   : > { %v826_v22 = vadd.f32 %v825_v15, %v4400_v21  ;;  %v846_v25 = vadd.f32 %v845_v18, %v4401_v24 }
 0x3e9   : > { %v968_v27 = vpop.f32.mrf.mxu2  ;;  %v988_v28 = vpop.f32.mrf.mxu3 }
 0x3ea   : > { %v969_v30 = vadd.f32 %v968_v27, %v826_v22  ;;  %v989_v31 = vadd.f32 %v988_v28, %v846_v25 }
 0x3ec   : > { %v2643_v32 = vmul.f32 -1.442695, %v969_v30  ;;  %v2644_v33 = vmul.f32 -1.442695, %v989_v31 }
 0x3ee   : > { %2813 = vpow2.f32 %v2643_v32 }
 0x3ef   : > { %2815 = vpow2.f32 %v2644_v33 }
 0x3f1   : > { %v1109_v56 = vpop.f32.mrf.mxu2  ;;  %v1129_v23 = vpop.f32.mrf.mxu3 }
 0x3f2   : > { %v1132_v19 = vadd.f32 %v1109_v56, %v412_v36  ;;  %v1133_v49 = vadd.f32 %v1129_v23, %v453_v39 }
 0x3f4   : > { %v2814_v54 = vpop.eup %2813  ;;  %v2651_v59 = vmul.f32 -1.442695, %v1132_v19  ;;  %v2652_v29 = vmul.f32 -1.442695, %v1133_v49 }
 0x3f5   : > { %v2816_v58 = vpop.eup %2815  ;;  %v997_v50 = vadd.f32 1.0, %v2814_v54 }
 0x3f6   : > { %v998_v42 = vadd.f32 1.0, %v2816_v58  ;;  %2817 = vpow2.f32 %v2651_v59 }
 0x3f7   : > { %2819 = vrcp.f32 %v997_v50  ;;  %v1010_v22 = vand.u32 2147483648, %v997_v50  ;;  %vm1004_vm4 = vweird.f32 %v997_v50  ;;  %v1008_v28 = vand.u32 2147483647, %v997_v50 }
 0x3f8   : > { %2821 = vrcp.f32 %v998_v42  ;;  %v1025_v48 = vand.u32 2147483648, %v998_v42  ;;  %v1023_v0 = vand.u32 2147483647, %v998_v42  ;;  %vm1019_vm15 = vweird.f32 %v998_v42 }
 0x3f9   : > { %2823 = vpow2.f32 %v2652_v29  ;;  %v1011_v38 = vor.u32 1.1754944e-38, %v1010_v22  ;;  %vm1009_vm6 = vcmp.eq.f32.partialorder %v1008_v28, 8.507059e+37  ;;  %v3707_v28 = vld [vmem:[%s4278_s2 + $0x60] sm:$0xff] }
 0x3fa   : > { %v1026_v18 = vor.u32 1.1754944e-38, %v1025_v48  ;;  %vm1024_vm3 = vcmp.eq.f32.partialorder %v1023_v0, 8.507059e+37 }
 0x3fc   : > { %v2818_v20 = vpop.eup %2817 }
 0x3fd   : > { %v2820_v17 = vpop.eup %2819  ;;  %v3667_v45 = vadd.f32 1.0, %v2818_v20 }
 0x3fe   : > { %v2822_v41 = vpop.eup %2821  ;;  %v1000_v16 = vmul.f32 %v2820_v17, %v997_v50  ;;  %vm1005_vm0 = vweird.f32 %v2820_v17 }
 0x3ff   : > { %v2824_v46 = vpop.eup %2823  ;;  %v1015_v63 = vmul.f32 %v2822_v41, %v998_v42  ;;  %2825 = vrcp.f32 %v3667_v45  ;;  %vm1020_vm14 = vweird.f32 %v2822_v41  ;;  %vm1006_vm5 = vmor %vm1004_vm4, %vm1005_vm0  ;;  %v1153_v20 = vand.u32 2147483648, %v3667_v45 }
 0x400   : > { %v1141_v47 = vadd.f32 1.0, %v2824_v46  ;;  %v1001_v44 = vsub.f32 1.0, %v1000_v16  ;;  %vm1021_vm2 = vmor %vm1019_vm15, %vm1020_vm14  ;;  %vm1147_vm13 = vweird.f32 %v3667_v45 }
 0x401   : > { %v1016_v26 = vsub.f32 1.0, %v1015_v63 }
 0x402   : > { %2827 = vrcp.f32 %v1141_v47  ;;  %v1002_v51 = vmul.f32 %v2820_v17, %v1001_v44  ;;  %v1166_v23 = vand.u32 2147483647, %v1141_v47  ;;  %v1168_v19 = vand.u32 2147483648, %v1141_v47 }
 0x403   : > { %v1017_v57 = vmul.f32 %v2822_v41, %v1016_v26  ;;  %vm1162_vm8 = vweird.f32 %v1141_v47  ;;  %v1154_v44 = vor.u32 1.1754944e-38, %v1153_v20  ;;  %v3804_v20 = vld [vmem:[#allocation9 + $0x50] sm:$0xff] }
 0x404   : > { %v1003_v15 = vadd.f32 %v2820_v17, %v1002_v51  ;;  %v1169_v42 = vor.u32 1.1754944e-38, %v1168_v19  ;;  %vm1167_vm12 = vcmp.eq.f32.partialorder %v1166_v23, 8.507059e+37  ;;  %v3763_v23 = vld [vmem:[%s4278_s2 + $0x28] sm:$0xff]  ;;  %v3769_v19 = vld [vmem:[%s4278_s2 + $0x10] sm:$0xff] }
 0x405   : > { %v2826_v53 = vpop.eup %2825  ;;  %v1018_v40 = vadd.f32 %v2822_v41, %v1017_v57 }
 0x406   : > { %v1143_v52 = vmul.f32 %v2826_v53, %v3667_v45  ;;  %v1007_v35 = vsel %vm1006_vm5, %v2820_v17, %v1003_v15  ;;  %vm1148_vm9 = vweird.f32 %v2826_v53 }
 0x407   : > { %v1022_v25 = vsel %vm1021_vm2, %v2822_v41, %v1018_v40  ;;  %v1012_v49 = vsel %vm1009_vm6, %v1011_v38, %v1007_v35  ;;  %v1151_v41 = vand.u32 2147483647, %v3667_v45  ;;  %vm1149_vm14 = vmor %vm1147_vm13, %vm1148_vm9  ;;  %v3737_v35 = vld [vmem:[%s4278_s2 + $0x48] sm:$0xff]  ;;  %v3743_v38 = vld [vmem:[%s4278_s2 + $0x30] sm:$0xff] }
 0x408   : > { %v2828_v27 = vpop.eup %2827  ;;  %v1027_v30 = vsel %vm1024_vm3, %v1026_v18, %v1022_v25  ;;  %v1144_v31 = vsub.f32 1.0, %v1143_v52  ;;  %v1035_v57 = vmul.f32 %v1012_v49, %v3598_v55 }
 0x409   : > { %v1158_v32 = vmul.f32 %v2828_v27, %v1141_v47  ;;  %v1030_v33 = vmul.f32 2.0, %v1027_v30  ;;  %vm1163_vm7 = vweird.f32 %v2828_v27  ;;  %vm1152_vm15 = vcmp.eq.f32.partialorder %v1151_v41, 8.507059e+37  ;;  %v3810_v41 = vld [vmem:[#allocation9 + $0x40] sm:$0xff] }
 0x40a   : > { %v1145_v56 = vmul.f32 %v2826_v53, %v1144_v31  ;;  %vm1164_vm11 = vmor %vm1162_vm8, %vm1163_vm7  ;;  %v3719_v31 = vld [vmem:[%s4278_s2 + $0x50] sm:$0xff] }
 0x40b   : > { %v1159_v36 = vsub.f32 1.0, %v1158_v32  ;;  %v2646_v39 = vadd.f32 -1.0, %v1030_v33  ;;  %v3725_v32 = vld [vmem:[%s4278_s2 + $0x58] sm:$0xff]  ;;  %v3731_v33 = vld [vmem:[%s4278_s2 + $0x40] sm:$0xff] }
 0x40c   : > { %v1146_v29 = vadd.f32 %v2826_v53, %v1145_v56  ;;  %v3757_v56 = vld [vmem:[%s4278_s2 + $0x20] sm:$0xff] }
 0x40d   : > { %v1034_v54 = vsel %vm546_vm10, %v2646_v39, %v1027_v30  ;;  %v1160_v59 = vmul.f32 %v2828_v27, %v1159_v36  ;;  %v3713_v30 = vld [vmem:[%s4278_s2 + $0x68] sm:$0xff]  ;;  %v3749_v39 = vld [vmem:[%s4278_s2 + $0x38] sm:$0xff] }
 0x40e   : > { %v1036_v58 = vmul.f32 %v1034_v54, %v1012_v49  ;;  %v1150_v63 = vsel %vm1149_vm14, %v2826_v53, %v1146_v29  ;;  %v3775_v49 = vld [vmem:[%s4278_s2 + $0x18] sm:$0xff]  ;;  %v3798_v29 = vld [vmem:[#allocation9 + $0x60] sm:$0xff] }
 0x40f   : > { %v1161_v50 = vadd.f32 %v2828_v27, %v1160_v59  ;;  %v1155_v26 = vsel %vm1152_vm15, %v1154_v44, %v1150_v63  ;;  %v3787_v59 = vld [vmem:[%s4278_s2 + $0x8] sm:$0xff]  ;;  %v3819_v63 = vld [vmem:[#allocation9 + $0x38] sm:$0xff]  ;;  %v3822_v44 = vld [vmem:[#allocation9 + $0x20] sm:$0xff] }
 0x410   : > { %1038 = vrot.lane.b32.xlu2 %v1036_v58, %s3104_s14  ;;  %v1178_v53 = vmul.f32 %v1155_v26, %v3602_v61  ;;  %v3701_v61 = vld [vmem:[%s4278_s2 + $0x78] sm:$0xff]  ;;  %v3790_v58 = vld [vmem:[#allocation9 + $0x70] sm:$0xff] }
 0x411   : > { %v1165_v17 = vsel %vm1164_vm11, %v2828_v27, %v1161_v50  ;;  %v3695_v27 = vld [vmem:[%s4278_s2 + $0x70] sm:$0xff]  ;;  %v3793_v50 = vld [vmem:[#allocation9 + $0x78] sm:$0xff] }
 0x412   : > { %v1170_v16 = vsel %vm1167_vm12, %v1169_v42, %v1165_v17  ;;  %v3801_v42 = vld [vmem:[#allocation9 + $0x68] sm:$0xff]  ;;  %v3807_v17 = vld [vmem:[#allocation9 + $0x58] sm:$0xff] }
 0x413   : > { %v1173_v46 = vmul.f32 2.0, %v1170_v16 }
 0x415   : > { %v2654_v47 = vadd.f32 -1.0, %v1173_v46  ;;  %v3816_v46 = vld [vmem:[#allocation9 + $0x30] sm:$0xff] }
 0x417   : > { %v1177_v51 = vsel %vm546_vm10, %v2654_v47, %v1170_v16  ;;  %v3813_v16 = vld [vmem:[#allocation9 + $0x48] sm:$0xff] }
 0x418   : > { %v1179_v48 = vmul.f32 %v1177_v51, %v1155_v26  ;;  %v3825_v47 = vld [vmem:[#allocation9 + $0x28] sm:$0xff]  ;;  %v3828_v26 = vld [vmem:[#allocation9 + $0x10] sm:$0xff] }
 0x41a   : > { %1181 = vrot.lane.b32.xlu0 %v1179_v48, %s3104_s14  ;;  %v3834_v48 = vld [vmem:[#allocation9] sm:$0xff] }
 0x46a   : > { %v1039_v0 = vpop.permute.xlu2 %1038 }
 0x46b   : > { %v3681_v40 = vadd.f32 %v1039_v0, %v1035_v57  ;;  %v3837_v57 = vld [vmem:[#allocation9 + $0x8] sm:$0xff] }
 0x46d   : > { %2829 = vtanh.f32 %v3681_v40 }
 0x473   : > { %v2830_v45 = vpop.eup %2829 }
 0x474   : > { %v1043_v52 = vmul.f32 %v2830_v45, %v1034_v54  ;;  %v3781_v54 = vld [vmem:[%s4278_s2] sm:$0xff] }
 0x476   : > { %1045 = vrot.lane.b32.xlu1 %v1043_v52, %s3104_s14 }
 0x48c   : > { %v1182_v15 = vpop.permute.xlu0 %1181 }
 0x48d   : > { %v3686_v18 = vadd.f32 %v1182_v15, %v1178_v53 }
 0x48f   : > { %2831 = vtanh.f32 %v3686_v18 }
 0x495   : > { %v2832_v22 = vpop.eup %2831 }
 0x496   : > { %v1186_v25 = vmul.f32 %v2832_v22, %v1177_v51  ;;  %v3831_v51 = vld [vmem:[#allocation9 + $0x18] sm:$0xff] }
 0x498   : > { %1188 = vrot.lane.b32.xlu2 %v1186_v25, %s3104_s14 }
 0x4e8   : > { %v1046_v55 = vpop.permute.xlu1 %1045 }
 0x4e9   : > { %2647 = vmatmul.msk.f32.vlgmr.msra.gmra.mxu0 %vm553_vm1, %v1046_v55  ;;  %2648 = vmatmul.msk.f32.vlgmr.msra.gmra.mxu1 %vm553_vm1, %v1046_v55 }
 0x4ea   : > { %1341 = vmatpush.msra.mxu0 %v3695_v27  ;;  %1361 = vmatpush.msra.mxu1 %v3701_v61 }
 0x4ec   : > { %1342 = vmatpush.msra.mxu0 %v3707_v28  ;;  %1362 = vmatpush.msra.mxu1 %v3713_v30 }
 0x4ee   : > { %1343 = vmatpush.msra.mxu0 %v3719_v31  ;;  %1363 = vmatpush.msra.mxu1 %v3725_v32 }
 0x4f0   : > { %1344 = vmatpush.msra.mxu0 %v3731_v33  ;;  %1364 = vmatpush.msra.mxu1 %v3737_v35 }
 0x4f2   : > { %v1189_v36 = vpop.permute.xlu2 %1188  ;;  %1345 = vmatpush.msra.mxu0 %v3743_v38  ;;  %1365 = vmatpush.msra.mxu1 %v3749_v39 }
 0x4f3   : > { %2655 = vmatmul.msk.f32.vlgmr.msrb.gmra.mxu0 %vm553_vm1, %v1189_v36  ;;  %2656 = vmatmul.msk.f32.vlgmr.msrb.gmra.mxu1 %vm553_vm1, %v1189_v36 }
 0x4f4   : > { %1346 = vmatpush.msra.mxu0 %v3757_v56  ;;  %1366 = vmatpush.msra.mxu1 %v3763_v23 }
 0x4f6   : > { %1347 = vmatpush.msra.mxu0 %v3769_v19  ;;  %1367 = vmatpush.msra.mxu1 %v3775_v49 }
 0x4f8   : > { %1348 = vmatpush.msra.mxu0 %v3781_v54  ;;  %1368 = vmatpush.msra.mxu1 %v3787_v59 }
 0x4fa   : > { %1539 = vmatpush.msrb.mxu0 %v3790_v58  ;;  %1559 = vmatpush.msrb.mxu1 %v3793_v50 }
 0x4fb   : > { %2663 = vmatmul.msk.f32.vlgmr.msra.gmra.mxu0 %vm553_vm1, %v1189_v36  ;;  %2664 = vmatmul.msk.f32.vlgmr.msra.gmra.mxu1 %vm553_vm1, %v1189_v36 }
 0x4fc   : > { %1540 = vmatpush.msrb.mxu0 %v3798_v29  ;;  %1560 = vmatpush.msrb.mxu1 %v3801_v42 }
 0x4fe   : > { %1541 = vmatpush.msrb.mxu0 %v3804_v20  ;;  %1561 = vmatpush.msrb.mxu1 %v3807_v17 }
 0x500   : > { %1542 = vmatpush.msrb.mxu0 %v3810_v41  ;;  %1562 = vmatpush.msrb.mxu1 %v3813_v16 }
 0x502   : > { %1543 = vmatpush.msrb.mxu0 %v3816_v46  ;;  %1563 = vmatpush.msrb.mxu1 %v3819_v63 }
 0x504   : > { %1544 = vmatpush.msrb.mxu0 %v3822_v44  ;;  %1564 = vmatpush.msrb.mxu1 %v3825_v47 }
 0x506   : > { %1545 = vmatpush.msrb.mxu0 %v3828_v26  ;;  %1565 = vmatpush.msrb.mxu1 %v3831_v51 }
 0x508   : > { %1546 = vmatpush.msrb.mxu0 %v3834_v48  ;;  %1566 = vmatpush.msrb.mxu1 %v3837_v57 }
 0x50a   : > { %1682 = vmatpush.msra.mxu0 %v3422_v60  ;;  %1702 = vmatpush.msra.mxu1 %v3424_v62 }
 0x50c   : > { %1683 = vmatpush.msra.mxu0 %v4386_v1  ;;  %1703 = vmatpush.msra.mxu1 %v4387_v2 }
 0x50e   : > { %1684 = vmatpush.msra.mxu0 %v4388_v3  ;;  %1704 = vmatpush.msra.mxu1 %v4389_v4 }
 0x510   : > { %1685 = vmatpush.msra.mxu0 %v4390_v5  ;;  %1705 = vmatpush.msra.mxu1 %v4391_v6 }
 0x512   : > { %1686 = vmatpush.msra.mxu0 %v4392_v7  ;;  %1706 = vmatpush.msra.mxu1 %v4393_v8 }
 0x514   : > { %1687 = vmatpush.msra.mxu0 %v4394_v9  ;;  %1707 = vmatpush.msra.mxu1 %v4395_v10  ;;  %v4406_v9 = vld [vmem:[#allocation31_spill] sm:$0xff] }
 0x515   : > { %v415_v10 = vadd.f32 %v4406_v9, %v4402_v34 }
 0x516   : > { %1688 = vmatpush.msra.mxu0 %v4396_v11  ;;  %1708 = vmatpush.msra.mxu1 %v4397_v12  ;;  %v4407_v11 = vld [vmem:[#allocation32_spill] sm:$0xff] }
 0x517   : > { %v456_v12 = vadd.f32 %v4407_v11, %v4404_v37 }
 0x518   : > { %1689 = vmatpush.msra.mxu0 %v4398_v13  ;;  %1709 = vmatpush.msra.mxu1 %v4399_v14 }
 0x566   : > { %v1066_v60 = vpop.f32.mrf.mxu0  ;;  %v1086_v62 = vpop.f32.mrf.mxu1 }
 0x567   : > { %v1067_v1 = vadd.f32 %v1066_v60, %v4400_v21  ;;  %v1087_v2 = vadd.f32 %v1086_v62, %v4401_v24 }
 0x570   : > { %v1209_v3 = vpop.f32.mrf.mxu0  ;;  %v1229_v4 = vpop.f32.mrf.mxu1 }
 0x571   : > { %v1210_v5 = vadd.f32 %v1209_v3, %v1067_v1  ;;  %v1230_v6 = vadd.f32 %v1229_v4, %v1087_v2 }
 0x573   : > { %v2657_v7 = vmul.f32 -1.442695, %v1210_v5  ;;  %v2658_v8 = vmul.f32 -1.442695, %v1230_v6 }
 0x575   : > { %2833 = vpow2.f32 %v2657_v7 }
 0x576   : > { %2835 = vpow2.f32 %v2658_v8 }
 0x578   : > { %v1350_v13 = vpop.f32.mrf.mxu0  ;;  %v1370_v14 = vpop.f32.mrf.mxu1 }
 0x579   : > { %v1373_v0 = vadd.f32 %v1350_v13, %v415_v10  ;;  %v1374_v45 = vadd.f32 %v1370_v14, %v456_v12 }
 0x57b   : > { %v2834_v52 = vpop.eup %2833  ;;  %v2665_v53 = vmul.f32 -1.442695, %v1373_v0  ;;  %v2666_v25 = vmul.f32 -1.442695, %v1374_v45 }
 0x57c   : > { %v2836_v15 = vpop.eup %2835  ;;  %v1238_v22 = vadd.f32 1.0, %v2834_v52 }
 0x57d   : > { %v1239_v55 = vadd.f32 1.0, %v2836_v15  ;;  %2837 = vpow2.f32 %v2665_v53 }
 0x57e   : > { %2839 = vrcp.f32 %v1238_v22  ;;  %v1251_v52 = vand.u32 2147483648, %v1238_v22  ;;  %vm1245_vm6 = vweird.f32 %v1238_v22 }
 0x57f   : > { %2841 = vrcp.f32 %v1239_v55  ;;  %v1266_v9 = vand.u32 2147483648, %v1239_v55  ;;  %v1264_v11 = vand.u32 2147483647, %v1239_v55  ;;  %vm1260_vm2 = vweird.f32 %v1239_v55 }
 0x580   : > { %2843 = vpow2.f32 %v2666_v25  ;;  %v1249_v25 = vand.u32 2147483647, %v1238_v22 }
 0x581   : > { %v1267_v45 = vor.u32 1.1754944e-38, %v1266_v9  ;;  %vm1265_vm5 = vcmp.eq.f32.partialorder %v1264_v11, 8.507059e+37 }
 0x582   : > { %vm1250_vm8 = vcmp.eq.f32.partialorder %v1249_v25, 8.507059e+37 }
 0x583   : > { %v2838_v36 = vpop.eup %2837 }
 0x584   : > { %v2840_v60 = vpop.eup %2839  ;;  %v3862_v62 = vadd.f32 1.0, %v2838_v36 }
 0x585   : > { %v2842_v1 = vpop.eup %2841  ;;  %v1241_v2 = vmul.f32 %v2840_v60, %v1238_v22  ;;  %vm1246_vm3 = vweird.f32 %v2840_v60 }
 0x586   : > { %v2844_v3 = vpop.eup %2843  ;;  %v1256_v4 = vmul.f32 %v2842_v1, %v1239_v55  ;;  %2845 = vrcp.f32 %v3862_v62  ;;  %vm1261_vm0 = vweird.f32 %v2842_v1  ;;  %vm1247_vm7 = vmor %vm1245_vm6, %vm1246_vm3  ;;  %v1252_v55 = vor.u32 1.1754944e-38, %v1251_v52 }
 0x587   : > { %v1382_v5 = vadd.f32 1.0, %v2844_v3  ;;  %v1242_v6 = vsub.f32 1.0, %v1241_v2  ;;  %vm1262_vm4 = vmor %vm1260_vm2, %vm1261_vm0  ;;  %vm1388_vm15 = vweird.f32 %v3862_v62  ;;  %v1392_v52 = vand.u32 2147483647, %v3862_v62 }
 0x588   : > { %v1257_v7 = vsub.f32 1.0, %v1256_v4 }
 0x589   : > { %2847 = vrcp.f32 %v1382_v5  ;;  %v1243_v8 = vmul.f32 %v2840_v60, %v1242_v6  ;;  %v1407_v37 = vand.u32 2147483647, %v1382_v5  ;;  %v1409_v34 = vand.u32 2147483648, %v1382_v5 }
 0x58a   : > { %v1258_v10 = vmul.f32 %v2842_v1, %v1257_v7  ;;  %vm1403_vm11 = vweird.f32 %v1382_v5  ;;  %vm1393_vm2 = vcmp.eq.f32.partialorder %v1392_v52, 8.507059e+37  ;;  %v3947_v52 = vld [vmem:[#allocation7 + $0x30] sm:$0xff] }
 0x58b   : > { %v1244_v0 = vadd.f32 %v2840_v60, %v1243_v8  ;;  %vm1408_vm14 = vcmp.eq.f32.partialorder %v1407_v37, 8.507059e+37  ;;  %4414 = vst [vmem:[#allocation21_spill] sm:$0xff] %v3947_v52 }
 0x58c   : > { %v2846_v12 = vpop.eup %2845  ;;  %v1259_v13 = vadd.f32 %v2842_v1, %v1258_v10 }
 0x58d   : > { %v1384_v14 = vmul.f32 %v2846_v12, %v3862_v62  ;;  %v1248_v6 = vsel %vm1247_vm7, %v2840_v60, %v1244_v0  ;;  %vm1389_vm12 = vweird.f32 %v2846_v12  ;;  %v1410_v60 = vor.u32 1.1754944e-38, %v1409_v34 }
 0x58e   : > { %v1263_v53 = vsel %vm1262_vm4, %v2842_v1, %v1259_v13  ;;  %v1253_v9 = vsel %vm1250_vm8, %v1252_v55, %v1248_v6  ;;  %v1394_v0 = vand.u32 2147483648, %v3862_v62  ;;  %vm1390_vm0 = vmor %vm1388_vm15, %vm1389_vm12 }
 0x58f   : > { %v2848_v15 = vpop.eup %2847  ;;  %v1268_v36 = vsel %vm1265_vm5, %v1267_v45, %v1263_v53  ;;  %v1385_v2 = vsub.f32 1.0, %v1384_v14  ;;  %v1276_v37 = vmul.f32 %v1253_v9, %v3681_v40 }
 0x590   : > { %v1399_v3 = vmul.f32 %v2848_v15, %v1382_v5  ;;  %v1271_v4 = vmul.f32 2.0, %v1268_v36  ;;  %vm1404_vm9 = vweird.f32 %v2848_v15 }
 0x591   : > { %v1386_v8 = vmul.f32 %v2846_v12, %v1385_v2  ;;  %vm1405_vm13 = vmor %vm1403_vm11, %vm1404_vm9  ;;  %v1395_v2 = vor.u32 1.1754944e-38, %v1394_v0  ;;  %v3941_v0 = vld [vmem:[#allocation7 + $0x40] sm:$0xff] }
 0x592   : > { %v1400_v7 = vsub.f32 1.0, %v1399_v3  ;;  %v2660_v10 = vadd.f32 -1.0, %v1271_v4  ;;  %4412 = vst [vmem:[#allocation19_spill] sm:$0xff] %v3941_v0 }
 0x593   : > { %v1387_v14 = vadd.f32 %v2846_v12, %v1386_v8 }
 0x594   : > { %v1275_v1 = vsel %vm546_vm10, %v2660_v10, %v1268_v36  ;;  %v1401_v11 = vmul.f32 %v2848_v15, %v1400_v7 }
 0x595   : > { %v1277_v22 = vmul.f32 %v1275_v1, %v1253_v9  ;;  %v1391_v36 = vsel %vm1390_vm0, %v2846_v12, %v1387_v14  ;;  %v3923_v9 = vld [vmem:[#allocation7 + $0x70] sm:$0xff] }
 0x596   : > { %v1402_v13 = vadd.f32 %v2848_v15, %v1401_v11  ;;  %v1396_v3 = vsel %vm1393_vm2, %v1395_v2, %v1391_v36  ;;  %v3935_v14 = vld [vmem:[#allocation7 + $0x50] sm:$0xff]  ;;  %v3956_v36 = vld [vmem:[#allocation7 + $0x28] sm:$0xff] }
 0x597   : > { %1279 = vrot.lane.b32.xlu0 %v1277_v22, %s3104_s14  ;;  %v1419_v12 = vmul.f32 %v1396_v3, %v3686_v18  ;;  %v3929_v22 = vld [vmem:[#allocation7 + $0x60] sm:$0xff]  ;;  %4410 = vst [vmem:[#allocation17_spill] sm:$0xff] %v3935_v14  ;;  %v3959_v2 = vld [vmem:[#allocation7 + $0x10] sm:$0xff] }
 0x598   : > { %v1406_v45 = vsel %vm1405_vm13, %v2848_v15, %v1402_v13  ;;  %4408 = vst [vmem:[#allocation15_spill] sm:$0xff] %v3929_v22  ;;  %v3932_v13 = vld [vmem:[#allocation7 + $0x68] sm:$0xff] }
 0x599   : > { %v1411_v53 = vsel %vm1408_vm14, %v1410_v60, %v1406_v45  ;;  %4409 = vst [vmem:[#allocation16_spill] sm:$0xff] %v3932_v13  ;;  %v3938_v60 = vld [vmem:[#allocation7 + $0x58] sm:$0xff]  ;;  %v3944_v45 = vld [vmem:[#allocation7 + $0x48] sm:$0xff] }
 0x59a   : > { %v1414_v25 = vmul.f32 2.0, %v1411_v53  ;;  %4411 = vst [vmem:[#allocation18_spill] sm:$0xff] %v3938_v60 }
 0x59b   : > { %4413 = vst [vmem:[#allocation20_spill] sm:$0xff] %v3944_v45 }
 0x59c   : > { %v2668_v5 = vadd.f32 -1.0, %v1414_v25  ;;  %v3953_v25 = vld [vmem:[#allocation7 + $0x20] sm:$0xff]  ;;  %4417 = vst [vmem:[#allocation24_spill] sm:$0xff] %v3956_v36 }
 0x59d   : > { %4416 = vst [vmem:[#allocation23_spill] sm:$0xff] %v3953_v25 }
 0x59e   : > { %v1418_v4 = vsel %vm546_vm10, %v2668_v5, %v1411_v53  ;;  %v3950_v53 = vld [vmem:[#allocation7 + $0x38] sm:$0xff]  ;;  %4418 = vst [vmem:[#allocation25_spill] sm:$0xff] %v3959_v2 }
 0x59f   : > { %v1420_v34 = vmul.f32 %v1418_v4, %v1396_v3  ;;  %4415 = vst [vmem:[#allocation22_spill] sm:$0xff] %v3950_v53  ;;  %v3962_v5 = vld [vmem:[#allocation7 + $0x18] sm:$0xff]  ;;  %v3965_v3 = vld [vmem:[#allocation7] sm:$0xff] }
 0x5a0   : > { %4419 = vst [vmem:[#allocation26_spill] sm:$0xff] %v3962_v5 }
 0x5a1   : > { %1422 = vrot.lane.b32.xlu1 %v1420_v34, %s3104_s14  ;;  %4420 = vst [vmem:[#allocation27_spill] sm:$0xff] %v3965_v3 }
 0x609   : > { %v1280_v15 = vpop.permute.xlu0 %1279 }
 0x60a   : > { %v3876_v6 = vadd.f32 %v1280_v15, %v1276_v37 }
 0x60c   : > { %2849 = vtanh.f32 %v3876_v6 }
 0x612   : > { %v2850_v62 = vpop.eup %2849 }
 0x613   : > { %v1423_v7 = vpop.permute.xlu1 %1422  ;;  %v1284_v55 = vmul.f32 %v2850_v62, %v1275_v1  ;;  %v3926_v1 = vld [vmem:[#allocation7 + $0x78] sm:$0xff] }
 0x614   : > { %v3880_v10 = vadd.f32 %v1423_v7, %v1419_v12 }
 0x615   : > { %1286 = vrot.lane.b32.xlu2 %v1284_v55, %s3104_s14 }
 0x616   : > { %2851 = vtanh.f32 %v3880_v10 }
 0x61c   : > { %v2852_v8 = vpop.eup %2851 }
 0x61d   : > { %v1427_v11 = vmul.f32 %v2852_v8, %v1418_v4  ;;  %v3968_v4 = vld [vmem:[#allocation7 + $0x8] sm:$0xff] }
 0x61e   : > { %4421 = vst [vmem:[#allocation28_spill] sm:$0xff] %v3968_v4 }
 0x61f   : > { %1429 = vrot.lane.b32.xlu0 %v1427_v11, %s3104_s14 }
 0x66f   : > { %v1287_v40 = vpop.permute.xlu2 %1286 }
 0x670   : > { %2661 = vmatmul.msk.f32.vlgmr.msra.gmra.mxu2 %vm553_vm1, %v1287_v40  ;;  %2662 = vmatmul.msk.f32.vlgmr.msra.gmra.mxu3 %vm553_vm1, %v1287_v40 }
 0x671   : > { %1582 = vmatpush.msra.mxu2 %v3695_v27  ;;  %1602 = vmatpush.msra.mxu3 %v3701_v61 }
 0x673   : > { %1583 = vmatpush.msra.mxu2 %v3707_v28  ;;  %1603 = vmatpush.msra.mxu3 %v3713_v30 }
 0x675   : > { %1584 = vmatpush.msra.mxu2 %v3719_v31  ;;  %1604 = vmatpush.msra.mxu3 %v3725_v32 }
 0x677   : > { %1585 = vmatpush.msra.mxu2 %v3731_v33  ;;  %1605 = vmatpush.msra.mxu3 %v3737_v35 }
 0x679   : > { %1586 = vmatpush.msra.mxu2 %v3743_v38  ;;  %1606 = vmatpush.msra.mxu3 %v3749_v39 }
 0x67b   : > { %1587 = vmatpush.msra.mxu2 %v3757_v56  ;;  %1607 = vmatpush.msra.mxu3 %v3763_v23 }
 0x67d   : > { %1588 = vmatpush.msra.mxu2 %v3769_v19  ;;  %1608 = vmatpush.msra.mxu3 %v3775_v49 }
 0x67f   : > { %1589 = vmatpush.msra.mxu2 %v3781_v54  ;;  %1609 = vmatpush.msra.mxu3 %v3787_v59 }
 0x691   : > { %v1430_v18 = vpop.permute.xlu0 %1429 }
 0x692   : > { %2669 = vmatmul.msk.f32.vlgmr.msrb.gmra.mxu2 %vm553_vm1, %v1430_v18  ;;  %2670 = vmatmul.msk.f32.vlgmr.msrb.gmra.mxu3 %vm553_vm1, %v1430_v18 }
 0x693   : > { %1780 = vmatpush.msrb.mxu2 %v3790_v58  ;;  %1800 = vmatpush.msrb.mxu3 %v3793_v50 }
 0x695   : > { %1781 = vmatpush.msrb.mxu2 %v3798_v29  ;;  %1801 = vmatpush.msrb.mxu3 %v3801_v42 }
 0x697   : > { %1782 = vmatpush.msrb.mxu2 %v3804_v20  ;;  %1802 = vmatpush.msrb.mxu3 %v3807_v17 }
 0x699   : > { %1783 = vmatpush.msrb.mxu2 %v3810_v41  ;;  %1803 = vmatpush.msrb.mxu3 %v3813_v16 }
 0x69a   : > { %2677 = vmatmul.msk.f32.vlgmr.msra.gmra.mxu2 %vm553_vm1, %v1430_v18  ;;  %2678 = vmatmul.msk.f32.vlgmr.msra.gmra.mxu3 %vm553_vm1, %v1430_v18  ;;  %v4422_v18 = vld [vmem:[#allocation13_spill] sm:$0xff] }
 0x69b   : > { %1784 = vmatpush.msrb.mxu2 %v3816_v46  ;;  %1804 = vmatpush.msrb.mxu3 %v3819_v63 }
 0x69d   : > { %1785 = vmatpush.msrb.mxu2 %v3822_v44  ;;  %1805 = vmatpush.msrb.mxu3 %v3825_v47 }
 0x69f   : > { %1786 = vmatpush.msrb.mxu2 %v3828_v26  ;;  %1806 = vmatpush.msrb.mxu3 %v3831_v51 }
 0x6a1   : > { %1787 = vmatpush.msrb.mxu2 %v3834_v48  ;;  %1807 = vmatpush.msrb.mxu3 %v3837_v57 }
 0x6a3   : > { %1923 = vmatpush.msra.mxu2 %v3923_v9  ;;  %1943 = vmatpush.msra.mxu3 %v3926_v1 }
 0x6a5   : > { %1924 = vmatpush.msra.mxu2 %v3929_v22  ;;  %1944 = vmatpush.msra.mxu3 %v3932_v13 }
 0x6a7   : > { %1925 = vmatpush.msra.mxu2 %v3935_v14  ;;  %1945 = vmatpush.msra.mxu3 %v3938_v60 }
 0x6a9   : > { %1926 = vmatpush.msra.mxu2 %v3941_v0  ;;  %1946 = vmatpush.msra.mxu3 %v3944_v45 }
 0x6ab   : > { %1927 = vmatpush.msra.mxu2 %v3947_v52  ;;  %1947 = vmatpush.msra.mxu3 %v3950_v53 }
 0x6ad   : > { %1928 = vmatpush.msra.mxu2 %v3953_v25  ;;  %1948 = vmatpush.msra.mxu3 %v3956_v36  ;;  %v4425_v36 = vld [vmem:[#allocation34_spill] sm:$0xff] }
 0x6af   : > { %1929 = vmatpush.msra.mxu2 %v3959_v2  ;;  %1949 = vmatpush.msra.mxu3 %v3962_v5  ;;  %v4424_v2 = vld [vmem:[#allocation14_spill] sm:$0xff] }
 0x6b1   : > { %1930 = vmatpush.msra.mxu2 %v3965_v3  ;;  %1950 = vmatpush.msra.mxu3 %v3968_v4  ;;  %v4423_v3 = vld [vmem:[#allocation33_spill] sm:$0xff]  ;;  %v459_v4 = vadd.f32 %v4425_v36, %v4424_v2 }
 0x6b2   : > { %v418_v5 = vadd.f32 %v4423_v3, %v4422_v18 }
 0x6f3   : > { %v1307_v34 = vpop.f32.mrf.mxu2  ;;  %v1327_v37 = vpop.f32.mrf.mxu3 }
 0x6f4   : > { %v1308_v15 = vadd.f32 %v1307_v34, %v4400_v21  ;;  %v1328_v62 = vadd.f32 %v1327_v37, %v4401_v24 }
 0x715   : > { %v1450_v12 = vpop.f32.mrf.mxu2  ;;  %v1470_v7 = vpop.f32.mrf.mxu3 }
 0x716   : > { %v1451_v55 = vadd.f32 %v1450_v12, %v1308_v15  ;;  %v1471_v8 = vadd.f32 %v1470_v7, %v1328_v62 }
 0x718   : > { %v2671_v11 = vmul.f32 -1.442695, %v1451_v55  ;;  %v2672_v40 = vmul.f32 -1.442695, %v1471_v8 }
 0x71a   : > { %2853 = vpow2.f32 %v2671_v11 }
 0x71b   : > { %2855 = vpow2.f32 %v2672_v40 }
 0x71d   : > { %v1591_v25 = vpop.f32.mrf.mxu2  ;;  %v1611_v53 = vpop.f32.mrf.mxu3 }
 0x71e   : > { %v1614_v52 = vadd.f32 %v1591_v25, %v418_v5  ;;  %v1615_v34 = vadd.f32 %v1611_v53, %v459_v4 }
 0x720   : > { %v2854_v21 = vpop.eup %2853  ;;  %v2679_v37 = vmul.f32 -1.442695, %v1614_v52  ;;  %v2680_v15 = vmul.f32 -1.442695, %v1615_v34 }
 0x721   : > { %v2856_v24 = vpop.eup %2855  ;;  %v1479_v45 = vadd.f32 1.0, %v2854_v21 }
 0x722   : > { %v1480_v62 = vadd.f32 1.0, %v2856_v24  ;;  %2857 = vpow2.f32 %v2679_v37 }
 0x723   : > { %2859 = vrcp.f32 %v1479_v45  ;;  %v1492_v2 = vand.u32 2147483648, %v1479_v45  ;;  %vm1486_vm8 = vweird.f32 %v1479_v45 }
 0x724   : > { %2861 = vrcp.f32 %v1480_v62  ;;  %v1507_v24 = vand.u32 2147483648, %v1480_v62  ;;  %v1505_v4 = vand.u32 2147483647, %v1480_v62  ;;  %vm1501_vm4 = vweird.f32 %v1480_v62 }
 0x725   : > { %2863 = vpow2.f32 %v2680_v15 }
 0x726   : > { %vm1506_vm7 = vcmp.eq.f32.partialorder %v1505_v4, 8.507059e+37 }
 0x728   : > { %v2858_v12 = vpop.eup %2857 }
 0x729   : > { %v2860_v7 = vpop.eup %2859  ;;  %v3977_v3 = vadd.f32 1.0, %v2858_v12  ;;  %v1508_v12 = vor.u32 1.1754944e-38, %v1507_v24 }
 0x72a   : > { %v2862_v55 = vpop.eup %2861  ;;  %v1482_v36 = vmul.f32 %v2860_v7, %v1479_v45  ;;  %vm1487_vm5 = vweird.f32 %v2860_v7 }
 0x72b   : > { %v2864_v8 = vpop.eup %2863  ;;  %v1497_v11 = vmul.f32 %v2862_v55, %v1480_v62  ;;  %2865 = vrcp.f32 %v3977_v3  ;;  %vm1502_vm3 = vweird.f32 %v2862_v55  ;;  %vm1488_vm9 = vmor %vm1486_vm8, %vm1487_vm5  ;;  %v1493_v62 = vor.u32 1.1754944e-38, %v1492_v2 }
 0x72c   : > { %v1623_v53 = vadd.f32 1.0, %v2864_v8  ;;  %v1483_v52 = vsub.f32 1.0, %v1482_v36  ;;  %vm1503_vm6 = vmor %vm1501_vm4, %vm1502_vm3  ;;  %v1490_v8 = vand.u32 2147483647, %v1479_v45  ;;  %vm1629_vm2 = vweird.f32 %v3977_v3 }
 0x72d   : > { %v1498_v25 = vsub.f32 1.0, %v1497_v11 }
 0x72e   : > { %2867 = vrcp.f32 %v1623_v53  ;;  %v1484_v21 = vmul.f32 %v2860_v7, %v1483_v52  ;;  %vm1491_vm11 = vcmp.eq.f32.partialorder %v1490_v8, 8.507059e+37  ;;  %v1648_v13 = vand.u32 2147483647, %v1623_v53 }
 0x72f   : > { %v1499_v5 = vmul.f32 %v2862_v55, %v1498_v25  ;;  %v1650_v22 = vand.u32 2147483648, %v1623_v53  ;;  %vm1644_vm13 = vweird.f32 %v1623_v53 }
 0x730   : > { %v1485_v15 = vadd.f32 %v2860_v7, %v1484_v21  ;;  %vm1649_vm0 = vcmp.eq.f32.partialorder %v1648_v13, 8.507059e+37 }
 0x731   : > { %v2866_v40 = vpop.eup %2865  ;;  %v1500_v34 = vadd.f32 %v2862_v55, %v1499_v5  ;;  %v1651_v2 = vor.u32 1.1754944e-38, %v1650_v22 }
 0x732   : > { %v1625_v37 = vmul.f32 %v2866_v40, %v3977_v3  ;;  %v1489_v60 = vsel %vm1488_vm9, %v2860_v7, %v1485_v15  ;;  %vm1630_vm14 = vweird.f32 %v2866_v40 }
 0x733   : > { %v1504_v18 = vsel %vm1503_vm6, %v2862_v55, %v1500_v34  ;;  %v1494_v24 = vsel %vm1491_vm11, %v1493_v62, %v1489_v60  ;;  %v1633_v60 = vand.u32 2147483647, %v3977_v3  ;;  %vm1631_vm3 = vmor %vm1629_vm2, %vm1630_vm14 }
 0x734   : > { %v2868_v36 = vpop.eup %2867  ;;  %v1509_v11 = vsel %vm1506_vm7, %v1508_v12, %v1504_v18  ;;  %v1626_v52 = vsub.f32 1.0, %v1625_v37 }
 0x735   : > { %v1640_v25 = vmul.f32 %v2868_v36, %v1623_v53  ;;  %v1512_v0 = vmul.f32 2.0, %v1509_v11  ;;  %vm1645_vm12 = vweird.f32 %v2868_v36  ;;  %vm1634_vm4 = vcmp.eq.f32.partialorder %v1633_v60, 8.507059e+37  ;;  %v4434_v60 = vld [vmem:[#allocation23_spill] sm:$0xff] }
 0x736   : > { %v1627_v21 = vmul.f32 %v2866_v40, %v1626_v52  ;;  %vm1646_vm15 = vmor %vm1644_vm13, %vm1645_vm12 }
 0x737   : > { %v1641_v5 = vsub.f32 1.0, %v1640_v25  ;;  %v2674_v14 = vadd.f32 -1.0, %v1512_v0  ;;  %v1635_v0 = vand.u32 2147483648, %v3977_v3 }
 0x738   : > { %v1628_v34 = vadd.f32 %v2866_v40, %v1627_v21 }
 0x739   : > { %v1516_v55 = vsel %vm546_vm10, %v2674_v14, %v1509_v11  ;;  %v1642_v4 = vmul.f32 %v2868_v36, %v1641_v5  ;;  %v1636_v12 = vor.u32 1.1754944e-38, %v1635_v0  ;;  %v4432_v0 = vld [vmem:[#allocation21_spill] sm:$0xff] }
 0x73a   : > { %v1518_v45 = vmul.f32 %v1516_v55, %v1494_v24  ;;  %v1632_v15 = vsel %vm1631_vm3, %v2866_v40, %v1628_v34  ;;  %v1517_v40 = vmul.f32 %v1494_v24, %v3876_v6  ;;  %v4426_v24 = vld [vmem:[#allocation15_spill] sm:$0xff] }
 0x73b   : > { %v1643_v18 = vadd.f32 %v2868_v36, %v1642_v4  ;;  %v1637_v8 = vsel %vm1634_vm4, %v1636_v12, %v1632_v15  ;;  %v4430_v34 = vld [vmem:[#allocation19_spill] sm:$0xff]  ;;  %v4437_v15 = vld [vmem:[#allocation26_spill] sm:$0xff] }
 0x73c   : > { %1520 = vrot.lane.b32.xlu1 %v1518_v45, %s3104_s14  ;;  %v1660_v13 = vmul.f32 %v1637_v8, %v3880_v10  ;;  %v4428_v45 = vld [vmem:[#allocation17_spill] sm:$0xff]  ;;  %v4438_v12 = vld [vmem:[#allocation27_spill] sm:$0xff] }
 0x73d   : > { %v1647_v7 = vsel %vm1646_vm15, %v2868_v36, %v1643_v18  ;;  %v4429_v18 = vld [vmem:[#allocation18_spill] sm:$0xff] }
 0x73e   : > { %v1652_v14 = vsel %vm1649_vm0, %v1651_v2, %v1647_v7  ;;  %v4431_v2 = vld [vmem:[#allocation20_spill] sm:$0xff]  ;;  %v4433_v7 = vld [vmem:[#allocation22_spill] sm:$0xff] }
 0x73f   : > { %v1655_v37 = vmul.f32 2.0, %v1652_v14 }
 0x741   : > { %v2682_v53 = vadd.f32 -1.0, %v1655_v37  ;;  %v4436_v37 = vld [vmem:[#allocation25_spill] sm:$0xff] }
 0x743   : > { %v1659_v11 = vsel %vm546_vm10, %v2682_v53, %v1652_v14  ;;  %v4435_v14 = vld [vmem:[#allocation24_spill] sm:$0xff] }
 0x744   : > { %v1661_v22 = vmul.f32 %v1659_v11, %v1637_v8  ;;  %v4439_v53 = vld [vmem:[#allocation28_spill] sm:$0xff] }
 0x746   : > { %1663 = vrot.lane.b32.xlu2 %v1661_v22, %s3104_s14  ;;  %v4440_v22 = vld [vmem:[#allocation41_spill] sm:$0xff] }
 0x7a0   : > { %v1664_v36 = vpop.permute.xlu2 %1663 }
 0x7a1   : > { %v3991_v52 = vadd.f32 %v1664_v36, %v1660_v13  ;;  %v4441_v36 = vld [vmem:[#allocation42_spill] sm:$0xff] }
 0x7a3   : > { %2869 = vtanh.f32 %v3991_v52 }
 0x7a9   : > { %v2870_v3 = vpop.eup %2869 }
 0x7aa   : > { %v1668_v25 = vmul.f32 %v2870_v3, %v1659_v11 }
 0x7ac   : > { %1670 = vrot.lane.b32.xlu1 %v1668_v25, %s3104_s14 }
 0x7ae   : > { %v1521_v5 = vpop.permute.xlu1 %1520 }
 0x7af   : > { %v3996_v62 = vadd.f32 %v1521_v5, %v1517_v40 }
 0x7b1   : > { %2871 = vtanh.f32 %v3996_v62 }
 0x7b7   : > { %v2872_v21 = vpop.eup %2871 }
 0x7b8   : > { %v1525_v4 = vmul.f32 %v2872_v21, %v1516_v55  ;;  %v4427_v55 = vld [vmem:[#allocation16_spill] sm:$0xff] }
 0x7ba   : > { %1527 = vrot.lane.b32.xlu0 %v1525_v4, %s3104_s14 }
 0x81e   : > { %v1671_v6 = vpop.permute.xlu1 %1670 }
 0x82c   : > { %v1528_v10 = vpop.permute.xlu0 %1527 }
 0x82d   : > { %2675 = vmatmul.msk.f32.vlgmr.msrb.gmra.mxu0 %vm553_vm1, %v1528_v10  ;;  %2676 = vmatmul.msk.f32.vlgmr.msrb.gmra.mxu1 %vm553_vm1, %v1528_v10 }
 0x82e   : > { %1823 = vmatpush.msrb.mxu0 %v3695_v27  ;;  %1843 = vmatpush.msrb.mxu1 %v3701_v61 }
 0x830   : > { %1824 = vmatpush.msrb.mxu0 %v3707_v28  ;;  %1844 = vmatpush.msrb.mxu1 %v3713_v30 }
 0x832   : > { %1825 = vmatpush.msrb.mxu0 %v3719_v31  ;;  %1845 = vmatpush.msrb.mxu1 %v3725_v32 }
 0x834   : > { %1826 = vmatpush.msrb.mxu0 %v3731_v33  ;;  %1846 = vmatpush.msrb.mxu1 %v3737_v35 }
 0x835   : > { %2683 = vmatmul.msk.f32.vlgmr.msra.gmra.mxu0 %vm553_vm1, %v1671_v6  ;;  %2684 = vmatmul.msk.f32.vlgmr.msra.gmra.mxu1 %vm553_vm1, %v1671_v6 }
 0x836   : > { %1827 = vmatpush.msrb.mxu0 %v3743_v38  ;;  %1847 = vmatpush.msrb.mxu1 %v3749_v39 }
 0x838   : > { %1828 = vmatpush.msrb.mxu0 %v3757_v56  ;;  %1848 = vmatpush.msrb.mxu1 %v3763_v23 }
 0x83a   : > { %1829 = vmatpush.msrb.mxu0 %v3769_v19  ;;  %1849 = vmatpush.msrb.mxu1 %v3775_v49 }
 0x83c   : > { %1830 = vmatpush.msrb.mxu0 %v3781_v54  ;;  %1850 = vmatpush.msrb.mxu1 %v3787_v59 }
 0x83d   : > { %2691 = vmatmul.msk.f32.vlgmr.msrb.gmra.mxu0 %vm553_vm1, %v1671_v6  ;;  %2692 = vmatmul.msk.f32.vlgmr.msrb.gmra.mxu1 %vm553_vm1, %v1671_v6  ;;  %v4442_v6 = vld [vmem:[#allocation13_spill] sm:$0xff] }
 0x83e   : > { %2021 = vmatpush.msra.mxu0 %v3790_v58  ;;  %2041 = vmatpush.msra.mxu1 %v3793_v50 }
 0x840   : > { %2022 = vmatpush.msra.mxu0 %v3798_v29  ;;  %2042 = vmatpush.msra.mxu1 %v3801_v42 }
 0x842   : > { %2023 = vmatpush.msra.mxu0 %v3804_v20  ;;  %2043 = vmatpush.msra.mxu1 %v3807_v17 }
 0x844   : > { %2024 = vmatpush.msra.mxu0 %v3810_v41  ;;  %2044 = vmatpush.msra.mxu1 %v3813_v16 }
 0x846   : > { %2025 = vmatpush.msra.mxu0 %v3816_v46  ;;  %2045 = vmatpush.msra.mxu1 %v3819_v63 }
 0x848   : > { %2026 = vmatpush.msra.mxu0 %v3822_v44  ;;  %2046 = vmatpush.msra.mxu1 %v3825_v47 }
 0x84a   : > { %2027 = vmatpush.msra.mxu0 %v3828_v26  ;;  %2047 = vmatpush.msra.mxu1 %v3831_v51 }
 0x84c   : > { %2028 = vmatpush.msra.mxu0 %v3834_v48  ;;  %2048 = vmatpush.msra.mxu1 %v3837_v57 }
 0x84e   : > { %2164 = vmatpush.msrb.mxu0 %v3923_v9  ;;  %2184 = vmatpush.msrb.mxu1 %v3926_v1 }
 0x850   : > { %2165 = vmatpush.msrb.mxu0 %v4426_v24  ;;  %2185 = vmatpush.msrb.mxu1 %v4427_v55 }
 0x852   : > { %2166 = vmatpush.msrb.mxu0 %v4428_v45  ;;  %2186 = vmatpush.msrb.mxu1 %v4429_v18 }
 0x854   : > { %2167 = vmatpush.msrb.mxu0 %v4430_v34  ;;  %2187 = vmatpush.msrb.mxu1 %v4431_v2 }
 0x856   : > { %2168 = vmatpush.msrb.mxu0 %v4432_v0  ;;  %2188 = vmatpush.msrb.mxu1 %v4433_v7 }
 0x858   : > { %2169 = vmatpush.msrb.mxu0 %v4434_v60  ;;  %2189 = vmatpush.msrb.mxu1 %v4435_v14  ;;  %v4445_v14 = vld [vmem:[#allocation36_spill] sm:$0xff] }
 0x85a   : > { %2170 = vmatpush.msrb.mxu0 %v4436_v37  ;;  %2190 = vmatpush.msrb.mxu1 %v4437_v15  ;;  %v4443_v15 = vld [vmem:[#allocation35_spill] sm:$0xff] }
 0x85b   : > { %v421_v37 = vadd.f32 %v4443_v15, %v4442_v6 }
 0x85c   : > { %2171 = vmatpush.msrb.mxu0 %v4438_v12  ;;  %2191 = vmatpush.msrb.mxu1 %v4439_v53  ;;  %v4444_v12 = vld [vmem:[#allocation14_spill] sm:$0xff] }
 0x85d   : > { %v462_v53 = vadd.f32 %v4445_v14, %v4444_v12 }
 0x8aa   : > { %v1548_v8 = vpop.f32.mrf.mxu0  ;;  %v1568_v11 = vpop.f32.mrf.mxu1 }
 0x8ab   : > { %v1549_v13 = vadd.f32 %v1548_v8, %v4440_v22  ;;  %v1569_v3 = vadd.f32 %v1568_v11, %v4441_v36 }
 0x8b2   : > { %v1691_v25 = vpop.f32.mrf.mxu0  ;;  %v1711_v40 = vpop.f32.mrf.mxu1 }
 0x8b3   : > { %v1692_v5 = vadd.f32 %v1691_v25, %v1549_v13  ;;  %v1712_v21 = vadd.f32 %v1711_v40, %v1569_v3 }
 0x8b5   : > { %v2685_v4 = vmul.f32 -1.442695, %v1692_v5  ;;  %v2686_v10 = vmul.f32 -1.442695, %v1712_v21 }
 0x8b7   : > { %2873 = vpow2.f32 %v2685_v4 }
 0x8b8   : > { %2875 = vpow2.f32 %v2686_v10 }
 0x8ba   : > { %v1832_v60 = vpop.f32.mrf.mxu0  ;;  %v1852_v7 = vpop.f32.mrf.mxu1 }
 0x8bb   : > { %v1855_v0 = vadd.f32 %v1832_v60, %v421_v37  ;;  %v1856_v8 = vadd.f32 %v1852_v7, %v462_v53 }
 0x8bd   : > { %v2874_v22 = vpop.eup %2873  ;;  %v2693_v11 = vmul.f32 -1.442695, %v1855_v0  ;;  %v2694_v13 = vmul.f32 -1.442695, %v1856_v8 }
 0x8be   : > { %v2876_v36 = vpop.eup %2875  ;;  %v1720_v2 = vadd.f32 1.0, %v2874_v22 }
 0x8bf   : > { %v1721_v3 = vadd.f32 1.0, %v2876_v36  ;;  %2877 = vpow2.f32 %v2693_v11 }
 0x8c0   : > { %2879 = vrcp.f32 %v1720_v2  ;;  %v1733_v12 = vand.u32 2147483648, %v1720_v2  ;;  %vm1727_vm11 = vweird.f32 %v1720_v2 }
 0x8c1   : > { %2881 = vrcp.f32 %v1721_v3  ;;  %v1748_v53 = vand.u32 2147483648, %v1721_v3  ;;  %v1746_v36 = vand.u32 2147483647, %v1721_v3  ;;  %vm1742_vm6 = vweird.f32 %v1721_v3 }
 0x8c2   : > { %2883 = vpow2.f32 %v2694_v13 }
 0x8c3   : > { %vm1747_vm9 = vcmp.eq.f32.partialorder %v1746_v36, 8.507059e+37 }
 0x8c5   : > { %v2878_v25 = vpop.eup %2877 }
 0x8c6   : > { %v2880_v40 = vpop.eup %2879  ;;  %v4060_v15 = vadd.f32 1.0, %v2878_v25  ;;  %v1749_v25 = vor.u32 1.1754944e-38, %v1748_v53 }
 0x8c7   : > { %v2882_v5 = vpop.eup %2881  ;;  %v1723_v14 = vmul.f32 %v2880_v40, %v1720_v2  ;;  %vm1728_vm7 = vweird.f32 %v2880_v40 }
 0x8c8   : > { %v2884_v21 = vpop.eup %2883  ;;  %v1738_v4 = vmul.f32 %v2882_v5, %v1721_v3  ;;  %2885 = vrcp.f32 %v4060_v15  ;;  %vm1743_vm5 = vweird.f32 %v2882_v5  ;;  %vm1729_vm12 = vmor %vm1727_vm11, %vm1728_vm7  ;;  %v1734_v3 = vor.u32 1.1754944e-38, %v1733_v12 }
 0x8c9   : > { %v1864_v7 = vadd.f32 1.0, %v2884_v21  ;;  %v1724_v0 = vsub.f32 1.0, %v1723_v14  ;;  %vm1744_vm8 = vmor %vm1742_vm6, %vm1743_vm5  ;;  %v1731_v21 = vand.u32 2147483647, %v1720_v2  ;;  %vm1870_vm4 = vweird.f32 %v4060_v15 }
 0x8ca   : > { %v1739_v60 = vsub.f32 1.0, %v1738_v4 }
 0x8cb   : > { %2887 = vrcp.f32 %v1864_v7  ;;  %v1725_v37 = vmul.f32 %v2880_v40, %v1724_v0  ;;  %vm1732_vm13 = vcmp.eq.f32.partialorder %v1731_v21, 8.507059e+37  ;;  %v1889_v55 = vand.u32 2147483647, %v1864_v7 }
 0x8cc   : > { %v1740_v22 = vmul.f32 %v2882_v5, %v1739_v60  ;;  %v1891_v24 = vand.u32 2147483648, %v1864_v7  ;;  %vm1885_vm15 = vweird.f32 %v1864_v7 }
 0x8cd   : > { %v1726_v13 = vadd.f32 %v2880_v40, %v1725_v37  ;;  %vm1890_vm3 = vcmp.eq.f32.partialorder %v1889_v55, 8.507059e+37 }
 0x8ce   : > { %v2886_v10 = vpop.eup %2885  ;;  %v1741_v8 = vadd.f32 %v2882_v5, %v1740_v22  ;;  %v1892_v12 = vor.u32 1.1754944e-38, %v1891_v24 }
 0x8cf   : > { %v1866_v11 = vmul.f32 %v2886_v10, %v4060_v15  ;;  %v1730_v18 = vsel %vm1729_vm12, %v2880_v40, %v1726_v13  ;;  %vm1871_vm0 = vweird.f32 %v2886_v10 }
 0x8d0   : > { %v1745_v6 = vsel %vm1744_vm8, %v2882_v5, %v1741_v8  ;;  %v1735_v53 = vsel %vm1732_vm13, %v1734_v3, %v1730_v18  ;;  %v1874_v18 = vand.u32 2147483647, %v4060_v15  ;;  %vm1872_vm5 = vmor %vm1870_vm4, %vm1871_vm0 }
 0x8d1   : > { %v2888_v14 = vpop.eup %2887  ;;  %v1750_v4 = vsel %vm1747_vm9, %v1749_v25, %v1745_v6  ;;  %v1867_v0 = vsub.f32 1.0, %v1866_v11  ;;  %v1758_v55 = vmul.f32 %v1735_v53, %v3996_v62 }
 0x8d2   : > { %v1881_v60 = vmul.f32 %v2888_v14, %v1864_v7  ;;  %v1753_v34 = vmul.f32 2.0, %v1750_v4  ;;  %vm1886_vm14 = vweird.f32 %v2888_v14  ;;  %vm1875_vm6 = vcmp.eq.f32.partialorder %v1874_v18, 8.507059e+37 }
 0x8d3   : > { %v1868_v37 = vmul.f32 %v2886_v10, %v1867_v0  ;;  %vm1887_vm2 = vmor %vm1885_vm15, %vm1886_vm14 }
 0x8d4   : > { %v1882_v22 = vsub.f32 1.0, %v1881_v60  ;;  %v2688_v45 = vadd.f32 -1.0, %v1753_v34  ;;  %v1876_v34 = vand.u32 2147483648, %v4060_v15 }
 0x8d5   : > { %v1869_v8 = vadd.f32 %v2886_v10, %v1868_v37 }
 0x8d6   : > { %v1757_v5 = vsel %vm546_vm10, %v2688_v45, %v1750_v4  ;;  %v1883_v36 = vmul.f32 %v2888_v14, %v1882_v22  ;;  %v1877_v25 = vor.u32 1.1754944e-38, %v1876_v34 }
 0x8d7   : > { %v1759_v2 = vmul.f32 %v1757_v5, %v1735_v53  ;;  %v1873_v13 = vsel %vm1872_vm5, %v2886_v10, %v1869_v8 }
 0x8d8   : > { %v1884_v6 = vadd.f32 %v2888_v14, %v1883_v36  ;;  %v1878_v21 = vsel %vm1875_vm6, %v1877_v25, %v1873_v13 }
 0x8d9   : > { %1761 = vrot.lane.b32.xlu2 %v1759_v2, %s3104_s14  ;;  %v1901_v10 = vmul.f32 %v1878_v21, %v3991_v52 }
 0x8da   : > { %v1888_v40 = vsel %vm1887_vm2, %v2888_v14, %v1884_v6 }
 0x8db   : > { %v1893_v45 = vsel %vm1890_vm3, %v1892_v12, %v1888_v40 }
 0x8dc   : > { %v1896_v11 = vmul.f32 2.0, %v1893_v45 }
 0x8de   : > { %v2696_v7 = vadd.f32 -1.0, %v1896_v11 }
 0x8e0   : > { %v1900_v4 = vsel %vm546_vm10, %v2696_v7, %v1893_v45 }
 0x8e1   : > { %v1902_v24 = vmul.f32 %v1900_v4, %v1878_v21 }
 0x8e3   : > { %1904 = vrot.lane.b32.xlu0 %v1902_v24, %s3104_s14 }
 0x933   : > { %v1762_v14 = vpop.permute.xlu2 %1761 }
 0x934   : > { %v4074_v0 = vadd.f32 %v1762_v14, %v1758_v55 }
 0x936   : > { %2889 = vtanh.f32 %v4074_v0 }
 0x93c   : > { %v2890_v15 = vpop.eup %2889 }
 0x93d   : > { %v1766_v60 = vmul.f32 %v2890_v15, %v1757_v5 }
 0x93f   : > { %1768 = vrot.lane.b32.xlu1 %v1766_v60, %s3104_s14 }
 0x955   : > { %v1905_v22 = vpop.permute.xlu0 %1904 }
 0x956   : > { %v4079_v3 = vadd.f32 %v1905_v22, %v1901_v10 }
 0x958   : > { %2891 = vtanh.f32 %v4079_v3 }
 0x95e   : > { %v2892_v37 = vpop.eup %2891 }
 0x95f   : > { %v1909_v36 = vmul.f32 %v2892_v37, %v1900_v4 }
 0x961   : > { %1911 = vrot.lane.b32.xlu2 %v1909_v36, %s3104_s14 }
 0x9b1   : > { %v1769_v62 = vpop.permute.xlu1 %1768 }
 0x9b2   : > { %2689 = vmatmul.msk.f32.vlgmr.msrb.gmra.mxu2 %vm553_vm1, %v1769_v62  ;;  %2690 = vmatmul.msk.f32.vlgmr.msrb.gmra.mxu3 %vm553_vm1, %v1769_v62 }
 0x9b3   : > { %2064 = vmatpush.msrb.mxu2 %v3695_v27  ;;  %2084 = vmatpush.msrb.mxu3 %v3701_v61  ;;  %v4446_v27 = vld [vmem:[#allocation15_spill] sm:$0xff]  ;;  %v4447_v61 = vld [vmem:[#allocation16_spill] sm:$0xff] }
 0x9b5   : > { %2065 = vmatpush.msrb.mxu2 %v3707_v28  ;;  %2085 = vmatpush.msrb.mxu3 %v3713_v30  ;;  %v4448_v28 = vld [vmem:[#allocation17_spill] sm:$0xff]  ;;  %v4449_v30 = vld [vmem:[#allocation18_spill] sm:$0xff] }
 0x9b7   : > { %2066 = vmatpush.msrb.mxu2 %v3719_v31  ;;  %2086 = vmatpush.msrb.mxu3 %v3725_v32  ;;  %v4450_v31 = vld [vmem:[#allocation19_spill] sm:$0xff]  ;;  %v4451_v32 = vld [vmem:[#allocation20_spill] sm:$0xff] }
 0x9b9   : > { %2067 = vmatpush.msrb.mxu2 %v3731_v33  ;;  %2087 = vmatpush.msrb.mxu3 %v3737_v35  ;;  %v4452_v33 = vld [vmem:[#allocation21_spill] sm:$0xff]  ;;  %v4453_v35 = vld [vmem:[#allocation22_spill] sm:$0xff] }
 0x9bb   : > { %v1912_v52 = vpop.permute.xlu2 %1911  ;;  %2068 = vmatpush.msrb.mxu2 %v3743_v38  ;;  %2088 = vmatpush.msrb.mxu3 %v3749_v39  ;;  %v4454_v38 = vld [vmem:[#allocation23_spill] sm:$0xff]  ;;  %v4455_v39 = vld [vmem:[#allocation24_spill] sm:$0xff] }
 0x9bc   : > { %2697 = vmatmul.msk.f32.vlgmr.msra.gmra.mxu2 %vm553_vm1, %v1912_v52  ;;  %2698 = vmatmul.msk.f32.vlgmr.msra.gmra.mxu3 %vm553_vm1, %v1912_v52 }
 0x9bd   : > { %2069 = vmatpush.msrb.mxu2 %v3757_v56  ;;  %2089 = vmatpush.msrb.mxu3 %v3763_v23  ;;  %v4456_v56 = vld [vmem:[#allocation25_spill] sm:$0xff]  ;;  %v4457_v23 = vld [vmem:[#allocation26_spill] sm:$0xff] }
 0x9bf   : > { %2070 = vmatpush.msrb.mxu2 %v3769_v19  ;;  %2090 = vmatpush.msrb.mxu3 %v3775_v49  ;;  %v4458_v19 = vld [vmem:[#allocation27_spill] sm:$0xff]  ;;  %v4459_v49 = vld [vmem:[#allocation28_spill] sm:$0xff] }
 0x9c1   : > { %2071 = vmatpush.msrb.mxu2 %v3781_v54  ;;  %2091 = vmatpush.msrb.mxu3 %v3787_v59 }
 0x9c3   : > { %2262 = vmatpush.msra.mxu2 %v3790_v58  ;;  %2282 = vmatpush.msra.mxu3 %v3793_v50  ;;  %v4460_v58 = vld [vmem:[#allocation41_spill] sm:$0xff] }
 0x9c4   : > { %2705 = vmatmul.msk.f32.vlgmr.msrb.gmra.mxu2 %vm553_vm1, %v1912_v52  ;;  %2706 = vmatmul.msk.f32.vlgmr.msrb.gmra.mxu3 %vm553_vm1, %v1912_v52 }
 0x9c5   : > { %2263 = vmatpush.msra.mxu2 %v3798_v29  ;;  %2283 = vmatpush.msra.mxu3 %v3801_v42  ;;  %v4461_v29 = vld [vmem:[#allocation42_spill] sm:$0xff] }
 0x9c7   : > { %2264 = vmatpush.msra.mxu2 %v3804_v20  ;;  %2284 = vmatpush.msra.mxu3 %v3807_v17 }
 0x9c9   : > { %2265 = vmatpush.msra.mxu2 %v3810_v41  ;;  %2285 = vmatpush.msra.mxu3 %v3813_v16 }
 0x9cb   : > { %2266 = vmatpush.msra.mxu2 %v3816_v46  ;;  %2286 = vmatpush.msra.mxu3 %v3819_v63 }
 0x9cd   : > { %2267 = vmatpush.msra.mxu2 %v3822_v44  ;;  %2287 = vmatpush.msra.mxu3 %v3825_v47  ;;  %v4462_v44 = vld [vmem:[#allocation13_spill] sm:$0xff] }
 0x9ce   : > { %v4463_v47 = vld [vmem:[#allocation37_spill] sm:$0xff] }
 0x9cf   : > { %2268 = vmatpush.msra.mxu2 %v3828_v26  ;;  %2288 = vmatpush.msra.mxu3 %v3831_v51  ;;  %v424_v26 = vadd.f32 %v4463_v47, %v4462_v44  ;;  %v4464_v51 = vld [vmem:[#allocation14_spill] sm:$0xff] }
 0x9d1   : > { %2269 = vmatpush.msra.mxu2 %v3834_v48  ;;  %2289 = vmatpush.msra.mxu3 %v3837_v57  ;;  %v4465_v48 = vld [vmem:[#allocation38_spill] sm:$0xff] }
 0x9d2   : > { %v465_v57 = vadd.f32 %v4465_v48, %v4464_v51 }
 0x9d3   : > { %2405 = vmatpush.msrb.mxu2 %v3923_v9  ;;  %2425 = vmatpush.msrb.mxu3 %v3926_v1 }
 0x9d5   : > { %2406 = vmatpush.msrb.mxu2 %v4446_v27  ;;  %2426 = vmatpush.msrb.mxu3 %v4447_v61 }
 0x9d7   : > { %2407 = vmatpush.msrb.mxu2 %v4448_v28  ;;  %2427 = vmatpush.msrb.mxu3 %v4449_v30 }
 0x9d9   : > { %2408 = vmatpush.msrb.mxu2 %v4450_v31  ;;  %2428 = vmatpush.msrb.mxu3 %v4451_v32 }
 0x9db   : > { %2409 = vmatpush.msrb.mxu2 %v4452_v33  ;;  %2429 = vmatpush.msrb.mxu3 %v4453_v35 }
 0x9dd   : > { %2410 = vmatpush.msrb.mxu2 %v4454_v38  ;;  %2430 = vmatpush.msrb.mxu3 %v4455_v39 }
 0x9df   : > { %2411 = vmatpush.msrb.mxu2 %v4456_v56  ;;  %2431 = vmatpush.msrb.mxu3 %v4457_v23 }
 0x9e1   : > { %2412 = vmatpush.msrb.mxu2 %v4458_v19  ;;  %2432 = vmatpush.msrb.mxu3 %v4459_v49 }
 0xa35   : > { %v1789_v54 = vpop.f32.mrf.mxu2  ;;  %v1809_v59 = vpop.f32.mrf.mxu3 }
 0xa36   : > { %v1790_v50 = vadd.f32 %v1789_v54, %v4460_v58  ;;  %v1810_v42 = vadd.f32 %v1809_v59, %v4461_v29 }
 0xa3f   : > { %v1932_v20 = vpop.f32.mrf.mxu2  ;;  %v1952_v17 = vpop.f32.mrf.mxu3 }
 0xa40   : > { %v1933_v41 = vadd.f32 %v1932_v20, %v1790_v50  ;;  %v1953_v16 = vadd.f32 %v1952_v17, %v1810_v42 }
 0xa42   : > { %v2699_v46 = vmul.f32 -1.442695, %v1933_v41  ;;  %v2700_v63 = vmul.f32 -1.442695, %v1953_v16 }
 0xa44   : > { %2893 = vpow2.f32 %v2699_v46 }
 0xa45   : > { %2895 = vpow2.f32 %v2700_v63 }
 0xa47   : > { %v2073_v9 = vpop.f32.mrf.mxu2  ;;  %v2093_v1 = vpop.f32.mrf.mxu3 }
 0xa48   : > { %v2096_v53 = vadd.f32 %v2073_v9, %v424_v26  ;;  %v2097_v5 = vadd.f32 %v2093_v1, %v465_v57 }
 0xa4a   : > { %v2894_v2 = vpop.eup %2893  ;;  %v2707_v6 = vmul.f32 -1.442695, %v2096_v53  ;;  %v2708_v34 = vmul.f32 -1.442695, %v2097_v5 }
 0xa4b   : > { %v2896_v8 = vpop.eup %2895  ;;  %v1961_v12 = vadd.f32 1.0, %v2894_v2 }
 0xa4c   : > { %v1962_v40 = vadd.f32 1.0, %v2896_v8  ;;  %2897 = vpow2.f32 %v2707_v6 }
 0xa4d   : > { %2899 = vrcp.f32 %v1961_v12  ;;  %v1974_v27 = vand.u32 2147483648, %v1961_v12  ;;  %vm1968_vm13 = vweird.f32 %v1961_v12  ;;  %v1972_v30 = vand.u32 2147483647, %v1961_v12 }
 0xa4e   : > { %2901 = vrcp.f32 %v1962_v40  ;;  %v1989_v15 = vand.u32 2147483648, %v1962_v40  ;;  %v1987_v10 = vand.u32 2147483647, %v1962_v40  ;;  %vm1983_vm8 = vweird.f32 %v1962_v40 }
 0xa4f   : > { %2903 = vpow2.f32 %v2708_v34  ;;  %v1975_v56 = vor.u32 1.1754944e-38, %v1974_v27  ;;  %vm1973_vm15 = vcmp.eq.f32.partialorder %v1972_v30, 8.507059e+37  ;;  %v3006_v27 = vld [vmem:[%s4278_s2 + $0x8] sm:$0xff] }
 0xa50   : > { %v1990_v52 = vor.u32 1.1754944e-38, %v1989_v15  ;;  %vm1988_vm12 = vcmp.eq.f32.partialorder %v1987_v10, 8.507059e+37  ;;  %v2998_v15 = vld [vmem:[%s4278_s2 + $0x48] sm:$0xff]  ;;  %v3000_v10 = vld [vmem:[%s4278_s2 + $0x38] sm:$0xff] }
 0xa52   : > { %v2898_v18 = vpop.eup %2897 }
 0xa53   : > { %v2900_v45 = vpop.eup %2899  ;;  %v4143_v11 = vadd.f32 1.0, %v2898_v18 }
 0xa54   : > { %v2902_v13 = vpop.eup %2901  ;;  %v1964_v25 = vmul.f32 %v2900_v45, %v1961_v12  ;;  %vm1969_vm9 = vweird.f32 %v2900_v45 }
 0xa55   : > { %v2904_v7 = vpop.eup %2903  ;;  %v1979_v21 = vmul.f32 %v2902_v13, %v1962_v40  ;;  %2905 = vrcp.f32 %v4143_v11  ;;  %vm1984_vm7 = vweird.f32 %v2902_v13  ;;  %vm1970_vm14 = vmor %vm1968_vm13, %vm1969_vm9  ;;  %v2117_v46 = vand.u32 2147483648, %v4143_v11 }
 0xa56   : > { %v2105_v4 = vadd.f32 1.0, %v2904_v7  ;;  %v1965_v24 = vsub.f32 1.0, %v1964_v25  ;;  %vm1985_vm11 = vmor %vm1983_vm8, %vm1984_vm7  ;;  %vm2111_vm6 = vweird.f32 %v4143_v11  ;;  %v2115_v47 = vand.u32 2147483647, %v4143_v11  ;;  %v2992_v7 = vld [vmem:[%s4278_s2 + $0x78] sm:$0xff] }
 0xa57   : > { %v1980_v55 = vsub.f32 1.0, %v1979_v21  ;;  %v2118_v9 = vor.u32 1.1754944e-38, %v2117_v46  ;;  %v2993_v21 = vld [vmem:[%s4278_s2 + $0x60] sm:$0xff] }
 0xa58   : > { %2907 = vrcp.f32 %v2105_v4  ;;  %v1966_v14 = vmul.f32 %v2900_v45, %v1965_v24  ;;  %v2130_v49 = vand.u32 2147483647, %v2105_v4  ;;  %v2132_v54 = vand.u32 2147483648, %v2105_v4  ;;  %v2995_v24 = vld [vmem:[%s4278_s2 + $0x50] sm:$0xff] }
 0xa59   : > { %v1981_v60 = vmul.f32 %v2902_v13, %v1980_v55  ;;  %vm2126_vm2 = vweird.f32 %v2105_v4  ;;  %vm2116_vm8 = vcmp.eq.f32.partialorder %v2115_v47, 8.507059e+37  ;;  %v2996_v55 = vld [vmem:[%s4278_s2 + $0x58] sm:$0xff] }
 0xa5a   : > { %v1967_v62 = vadd.f32 %v2900_v45, %v1966_v14  ;;  %v2133_v16 = vor.u32 1.1754944e-38, %v2132_v54  ;;  %vm2131_vm5 = vcmp.eq.f32.partialorder %v2130_v49, 8.507059e+37  ;;  %v2997_v14 = vld [vmem:[%s4278_s2 + $0x40] sm:$0xff]  ;;  %v4467_v54 = vld [vmem:[#allocation40_spill] sm:$0xff] }
 0xa5b   : > { %v2906_v22 = vpop.eup %2905  ;;  %v1982_v37 = vadd.f32 %v2902_v13, %v1981_v60  ;;  %v2999_v60 = vld [vmem:[%s4278_s2 + $0x30] sm:$0xff] }
 0xa5c   : > { %v2107_v36 = vmul.f32 %v2906_v22, %v4143_v11  ;;  %v1971_v38 = vsel %vm1970_vm14, %v2900_v45, %v1967_v62  ;;  %vm2112_vm3 = vweird.f32 %v2906_v22  ;;  %v3004_v62 = vld [vmem:[%s4278_s2 + $0x18] sm:$0xff] }
 0xa5d   : > { %v1986_v61 = vsel %vm1985_vm11, %v2902_v13, %v1982_v37  ;;  %v1976_v59 = vsel %vm1973_vm15, %v1975_v56, %v1971_v38  ;;  %vm2113_vm7 = vmor %vm2111_vm6, %vm2112_vm3  ;;  %v3002_v37 = vld [vmem:[%s4278_s2 + $0x28] sm:$0xff] }
 0xa5e   : > { %v2908_v28 = vpop.eup %2907  ;;  %v1991_v31 = vsel %vm1988_vm12, %v1990_v52, %v1986_v61  ;;  %v2108_v32 = vsub.f32 1.0, %v2107_v36  ;;  %v1999_v6 = vmul.f32 %v1976_v59, %v4074_v0  ;;  %v3003_v36 = vld [vmem:[%s4278_s2 + $0x10] sm:$0xff]  ;;  %v3005_v52 = vld [vmem:[%s4278_s2] sm:$0xff] }
 0xa5f   : > { %v2122_v33 = vmul.f32 %v2908_v28, %v2105_v4  ;;  %v1994_v35 = vmul.f32 2.0, %v1991_v31  ;;  %vm2127_vm0 = vweird.f32 %v2908_v28  ;;  %v2994_v4 = vld [vmem:[%s4278_s2 + $0x68] sm:$0xff] }
 0xa60   : > { %v2109_v19 = vmul.f32 %v2906_v22, %v2108_v32  ;;  %vm2128_vm4 = vmor %vm2126_vm2, %vm2127_vm0 }
 0xa61   : > { %v2123_v39 = vsub.f32 1.0, %v2122_v33  ;;  %v2702_v23 = vadd.f32 -1.0, %v1994_v35 }
 0xa62   : > { %v2110_v41 = vadd.f32 %v2906_v22, %v2109_v19  ;;  %v4466_v19 = vld [vmem:[#allocation39_spill] sm:$0xff] }
 0xa63   : > { %v1998_v50 = vsel %vm546_vm10, %v2702_v23, %v1991_v31  ;;  %v2124_v42 = vmul.f32 %v2908_v28, %v2123_v39  ;;  %v427_v49 = vadd.f32 %v4466_v19, %v4462_v44 }
 0xa64   : > { %v2000_v20 = vmul.f32 %v1998_v50, %v1976_v59  ;;  %v2114_v57 = vsel %vm2113_vm7, %v2906_v22, %v2110_v41  ;;  %v3001_v22 = vld [vmem:[%s4278_s2 + $0x20] sm:$0xff]  ;;  %v468_v59 = vadd.f32 %v4467_v54, %v4464_v51 }
 0xa65   : > { %v2125_v17 = vadd.f32 %v2908_v28, %v2124_v42  ;;  %v2119_v53 = vsel %vm2116_vm8, %v2118_v9, %v2114_v57 }
 0xa66   : > { %2002 = vrot.lane.b32.xlu0 %v2000_v20, %s3104_s14  ;;  %v2142_v40 = vmul.f32 %v2119_v53, %v4079_v3  ;;  %v2991_v3 = vld [vmem:[%s4278_s2 + $0x70] sm:$0xff] }
 0xa67   : > { %v2129_v63 = vsel %vm2128_vm4, %v2908_v28, %v2125_v17 }
 0xa68   : > { %v2134_v26 = vsel %vm2131_vm5, %v2133_v16, %v2129_v63 }
 0xa69   : > { %v2137_v48 = vmul.f32 2.0, %v2134_v26 }
 0xa6b   : > { %v2710_v1 = vadd.f32 -1.0, %v2137_v48 }
 0xa6d   : > { %v2141_v5 = vsel %vm546_vm10, %v2710_v1, %v2134_v26 }
 0xa6e   : > { %v2143_v2 = vmul.f32 %v2141_v5, %v2119_v53 }
 0xa70   : > { %2145 = vrot.lane.b32.xlu1 %v2143_v2, %s3104_s14 }
 0xad8   : > { %v2003_v8 = vpop.permute.xlu0 %2002 }
 0xad9   : > { %v4157_v12 = vadd.f32 %v2003_v8, %v1999_v6 }
 0xadb   : > { %2909 = vtanh.f32 %v4157_v12 }
 0xae1   : > { %v2910_v34 = vpop.eup %2909 }
 0xae2   : > { %v2146_v18 = vpop.permute.xlu1 %2145  ;;  %v2007_v45 = vmul.f32 %v2910_v34, %v1998_v50 }
 0xae3   : > { %v4161_v11 = vadd.f32 %v2146_v18, %v2142_v40 }
 0xae4   : > { %2009 = vrot.lane.b32.xlu2 %v2007_v45, %s3104_s14 }
 0xae5   : > { %2911 = vtanh.f32 %v4161_v11 }
 0xaeb   : > { %v2912_v13 = vpop.eup %2911 }
 0xaec   : > { %v2150_v25 = vmul.f32 %v2912_v13, %v2141_v5 }
 0xaee   : > { %2152 = vrot.lane.b32.xlu0 %v2150_v25, %s3104_s14 }
 0xb3e   : > { %v2010_v0 = vpop.permute.xlu2 %2009 }
 0xb3f   : > { %2703 = vmatmul.msk.f32.vlgmr.msra.gmra.mxu0 %vm553_vm1, %v2010_v0  ;;  %2704 = vmatmul.msk.f32.vlgmr.msra.gmra.mxu1 %vm553_vm1, %v2010_v0 }
 0xb40   : > { %2305 = vmatpush.msra.mxu0 %v2991_v3  ;;  %2325 = vmatpush.msra.mxu1 %v2992_v7 }
 0xb42   : > { %2306 = vmatpush.msra.mxu0 %v2993_v21  ;;  %2326 = vmatpush.msra.mxu1 %v2994_v4 }
 0xb44   : > { %2307 = vmatpush.msra.mxu0 %v2995_v24  ;;  %2327 = vmatpush.msra.mxu1 %v2996_v55 }
 0xb46   : > { %2308 = vmatpush.msra.mxu0 %v2997_v14  ;;  %2328 = vmatpush.msra.mxu1 %v2998_v15 }
 0xb48   : > { %2309 = vmatpush.msra.mxu0 %v2999_v60  ;;  %2329 = vmatpush.msra.mxu1 %v3000_v10 }
 0xb4a   : > { %2310 = vmatpush.msra.mxu0 %v3001_v22  ;;  %2330 = vmatpush.msra.mxu1 %v3002_v37 }
 0xb4c   : > { %2311 = vmatpush.msra.mxu0 %v3003_v36  ;;  %2331 = vmatpush.msra.mxu1 %v3004_v62 }
 0xb4e   : > { %2312 = vmatpush.msra.mxu0 %v3005_v52  ;;  %2332 = vmatpush.msra.mxu1 %v3006_v27 }
 0xb60   : > { %v2153_v61 = vpop.permute.xlu0 %2152 }
 0xb61   : > { %2711 = vmatmul.msk.f32.vlgmr.msrb.gmra.mxu0 %vm553_vm1, %v2153_v61  ;;  %2712 = vmatmul.msk.f32.vlgmr.msrb.gmra.mxu1 %vm553_vm1, %v2153_v61 }
 0xb69   : > { %2719 = vmatmul.msk.f32.vlgmr.msra.gmra.mxu0 %vm553_vm1, %v2153_v61  ;;  %2720 = vmatmul.msk.f32.vlgmr.msra.gmra.mxu1 %vm553_vm1, %v2153_v61 }
 0xbbc   : > { %v2030_v28 = vpop.f32.mrf.mxu0  ;;  %v2050_v30 = vpop.f32.mrf.mxu1 }
 0xbbd   : > { %v2031_v31 = vadd.f32 %v2030_v28, %v4460_v58  ;;  %v2051_v32 = vadd.f32 %v2050_v30, %v4461_v29 }
 0xbde   : > { %v2173_v33 = vpop.f32.mrf.mxu0  ;;  %v2193_v35 = vpop.f32.mrf.mxu1 }
 0xbdf   : > { %v2174_v38 = vadd.f32 %v2173_v33, %v2031_v31  ;;  %v2194_v39 = vadd.f32 %v2193_v35, %v2051_v32 }
 0xbe1   : > { %v2713_v56 = vmul.f32 -1.442695, %v2174_v38  ;;  %v2714_v23 = vmul.f32 -1.442695, %v2194_v39 }
 0xbe3   : > { %2913 = vpow2.f32 %v2713_v56 }
 0xbe4   : > { %2915 = vpow2.f32 %v2714_v23 }
 0xbe6   : > { %v2314_v50 = vpop.f32.mrf.mxu0  ;;  %v2334_v42 = vpop.f32.mrf.mxu1 }
 0xbe7   : > { %v2337_v20 = vadd.f32 %v2314_v50, %v427_v49  ;;  %v2338_v17 = vadd.f32 %v2334_v42, %v468_v59 }
 0xbe9   : > { %v2914_v41 = vpop.eup %2913  ;;  %v2721_v16 = vmul.f32 -1.442695, %v2337_v20  ;;  %v2722_v47 = vmul.f32 -1.442695, %v2338_v17 }
 0xbea   : > { %v2916_v46 = vpop.eup %2915  ;;  %v2202_v63 = vadd.f32 1.0, %v2914_v41 }
 0xbeb   : > { %v2203_v26 = vadd.f32 1.0, %v2916_v46  ;;  %2917 = vpow2.f32 %v2721_v16 }
 0xbec   : > { %2919 = vrcp.f32 %v2202_v63  ;;  %v2215_v7 = vand.u32 2147483648, %v2202_v63  ;;  %vm2209_vm15 = vweird.f32 %v2202_v63  ;;  %v2213_v24 = vand.u32 2147483647, %v2202_v63 }
 0xbed   : > { %2921 = vrcp.f32 %v2203_v26  ;;  %v2230_v34 = vand.u32 2147483648, %v2203_v26  ;;  %v2228_v18 = vand.u32 2147483647, %v2203_v26  ;;  %vm2224_vm11 = vweird.f32 %v2203_v26 }
 0xbee   : > { %2923 = vpow2.f32 %v2722_v47  ;;  %v2216_v37 = vor.u32 1.1754944e-38, %v2215_v7  ;;  %vm2214_vm2 = vcmp.eq.f32.partialorder %v2213_v24, 8.507059e+37 }
 0xbef   : > { %v2231_v3 = vor.u32 1.1754944e-38, %v2230_v34  ;;  %vm2229_vm14 = vcmp.eq.f32.partialorder %v2228_v18, 8.507059e+37 }
 0xbf1   : > { %v2918_v48 = vpop.eup %2917 }
 0xbf2   : > { %v2920_v57 = vpop.eup %2919  ;;  %v4226_v44 = vadd.f32 1.0, %v2918_v48 }
 0xbf3   : > { %v2922_v9 = vpop.eup %2921  ;;  %v2205_v51 = vmul.f32 %v2920_v57, %v2202_v63  ;;  %vm2210_vm12 = vweird.f32 %v2920_v57 }
 0xbf4   : > { %v2924_v1 = vpop.eup %2923  ;;  %v2220_v53 = vmul.f32 %v2922_v9, %v2203_v26  ;;  %2925 = vrcp.f32 %v4226_v44  ;;  %vm2225_vm9 = vweird.f32 %v2922_v9  ;;  %vm2211_vm0 = vmor %vm2209_vm15, %vm2210_vm12  ;;  %v2358_v38 = vand.u32 2147483648, %v4226_v44 }
 0xbf5   : > { %v2346_v5 = vadd.f32 1.0, %v2924_v1  ;;  %v2206_v2 = vsub.f32 1.0, %v2205_v51  ;;  %vm2226_vm13 = vmor %vm2224_vm11, %vm2225_vm9  ;;  %vm2352_vm8 = vweird.f32 %v4226_v44  ;;  %v2356_v56 = vand.u32 2147483647, %v4226_v44 }
 0xbf6   : > { %v2221_v6 = vsub.f32 1.0, %v2220_v53  ;;  %v2359_v54 = vor.u32 1.1754944e-38, %v2358_v38 }
 0xbf7   : > { %2927 = vrcp.f32 %v2346_v5  ;;  %v2207_v8 = vmul.f32 %v2920_v57, %v2206_v2  ;;  %v2371_v52 = vand.u32 2147483647, %v2346_v5  ;;  %v2373_v27 = vand.u32 2147483648, %v2346_v5 }
 0xbf8   : > { %v2222_v40 = vmul.f32 %v2922_v9, %v2221_v6  ;;  %vm2367_vm4 = vweird.f32 %v2346_v5  ;;  %vm2357_vm11 = vcmp.eq.f32.partialorder %v2356_v56, 8.507059e+37 }
 0xbf9   : > { %v2208_v0 = vadd.f32 %v2920_v57, %v2207_v8  ;;  %v2374_v35 = vor.u32 1.1754944e-38, %v2373_v27  ;;  %vm2372_vm7 = vcmp.eq.f32.partialorder %v2371_v52, 8.507059e+37 }
 0xbfa   : > { %v2926_v45 = vpop.eup %2925  ;;  %v2223_v13 = vadd.f32 %v2922_v9, %v2222_v40 }
 0xbfb   : > { %v2348_v25 = vmul.f32 %v2926_v45, %v4226_v44  ;;  %v2212_v10 = vsel %vm2211_vm0, %v2920_v57, %v2208_v0  ;;  %vm2353_vm5 = vweird.f32 %v2926_v45 }
 0xbfc   : > { %v2227_v21 = vsel %vm2226_vm13, %v2922_v9, %v2223_v13  ;;  %v2217_v61 = vsel %vm2214_vm2, %v2216_v37, %v2212_v10  ;;  %vm2354_vm9 = vmor %vm2352_vm8, %vm2353_vm5 }
 0xbfd   : > { %v2928_v4 = vpop.eup %2927  ;;  %v2232_v55 = vsel %vm2229_vm14, %v2231_v3, %v2227_v21  ;;  %v2349_v14 = vsub.f32 1.0, %v2348_v25  ;;  %v2240_v47 = vmul.f32 %v2217_v61, %v4157_v12 }
 0xbfe   : > { %v2363_v15 = vmul.f32 %v2928_v4, %v2346_v5  ;;  %v2235_v60 = vmul.f32 2.0, %v2232_v55  ;;  %vm2368_vm3 = vweird.f32 %v2928_v4 }
 0xbff   : > { %v2350_v62 = vmul.f32 %v2926_v45, %v2349_v14  ;;  %vm2369_vm6 = vmor %vm2367_vm4, %vm2368_vm3 }
 0xc00   : > { %v2364_v22 = vsub.f32 1.0, %v2363_v15  ;;  %v2716_v36 = vadd.f32 -1.0, %v2235_v60 }
 0xc01   : > { %v2351_v33 = vadd.f32 %v2926_v45, %v2350_v62 }
 0xc02   : > { %v2239_v28 = vsel %vm546_vm10, %v2716_v36, %v2232_v55  ;;  %v2365_v30 = vmul.f32 %v2928_v4, %v2364_v22 }
 0xc03   : > { %v2241_v31 = vmul.f32 %v2239_v28, %v2217_v61  ;;  %v2355_v49 = vsel %vm2354_vm9, %v2926_v45, %v2351_v33 }
 0xc04   : > { %v2366_v32 = vadd.f32 %v2928_v4, %v2365_v30  ;;  %v2360_v50 = vsel %vm2357_vm11, %v2359_v54, %v2355_v49 }
 0xc05   : > { %2243 = vrot.lane.b32.xlu1 %v2241_v31, %s3104_s14  ;;  %v2383_v17 = vmul.f32 %v2360_v50, %v4161_v11 }
 0xc06   : > { %v2370_v39 = vsel %vm2369_vm6, %v2928_v4, %v2366_v32 }
 0xc07   : > { %v2375_v23 = vsel %vm2372_vm7, %v2374_v35, %v2370_v39 }
 0xc08   : > { %v2378_v19 = vmul.f32 2.0, %v2375_v23 }
 0xc0a   : > { %v2724_v59 = vadd.f32 -1.0, %v2378_v19 }
 0xc0c   : > { %v2382_v42 = vsel %vm546_vm10, %v2724_v59, %v2375_v23 }
 0xc0d   : > { %v2384_v20 = vmul.f32 %v2382_v42, %v2360_v50 }
 0xc0f   : > { %2386 = vrot.lane.b32.xlu2 %v2384_v20, %s3104_s14 }
 0xc69   : > { %v2387_v41 = vpop.permute.xlu2 %2386 }
 0xc6a   : > { %v2389_v16 = vadd.f32 %v2387_v41, %v2383_v17 }
 0xc6c   : > { %2929 = vtanh.f32 %v2389_v16 }
 0xc72   : > { %v2930_v46 = vpop.eup %2929 }
 0xc73   : > { %v2391_v63 = vmul.f32 %v2930_v46, %v2382_v42 }
 0xc75   : > { %2393 = vrot.lane.b32.xlu1 %v2391_v63, %s3104_s14 }
 0xc77   : > { %v2244_v26 = vpop.permute.xlu1 %2243 }
 0xc78   : > { %v4242_v48 = vadd.f32 %v2244_v26, %v2240_v47 }
 0xc7a   : > { %2931 = vtanh.f32 %v4242_v48 }
 0xc80   : > { %v2932_v57 = vpop.eup %2931 }
 0xc81   : > { %v2248_v44 = vmul.f32 %v2932_v57, %v2239_v28 }
 0xc83   : > { %2250 = vrot.lane.b32.xlu0 %v2248_v44, %s3104_s14 }
 0xc8b   : > { %2493 = vrot.lane.b32.xlu0 %v2389_v16, %s3104_s14 }
 0xce7   : > { %v2394_v11 = vpop.permute.xlu1 %2393 }
 0xce8   : > { %2491 = vst.msk [vmem:[#allocation2] sm:$0xff] %vm553_vm1, %v2394_v11 }
 0xcf5   : > { %v2251_v9 = vpop.permute.xlu0 %2250 }
 0xcf6   : > { %2717 = vmatmul.msk.f32.vlgmr.msra.gmra.mxu2 %vm553_vm1, %v2251_v9  ;;  %2718 = vmatmul.msk.f32.vlgmr.msra.gmra.mxu3 %vm553_vm1, %v2251_v9 }
 0xcfd   : > { %v2494_v12 = vpop.permute.xlu0 %2493 }
 0xcfe   : > { %2496 = vst.msk [vmem:[#allocation3] sm:$0xff] %vm553_vm1, %v2494_v12  ;;  %2725 = vmatmul.msk.f32.vlgmr.msrb.gmra.mxu2 %vm553_vm1, %v2394_v11  ;;  %2726 = vmatmul.msk.f32.vlgmr.msrb.gmra.mxu3 %vm553_vm1, %v2394_v11 }
 0xd79   : > { %v2271_v51 = vpop.f32.mrf.mxu2  ;;  %v2291_v1 = vpop.f32.mrf.mxu3 }
 0xd7a   : > { %v2272_v53 = vadd.f32 %v2271_v51, %v4460_v58  ;;  %v2292_v5 = vadd.f32 %v2291_v1, %v4461_v29 }
 0xd81   : > { %v2414_v2 = vpop.f32.mrf.mxu2  ;;  %v2434_v6 = vpop.f32.mrf.mxu3 }
 0xd82   : > { %v2415_v8 = vadd.f32 %v2414_v2, %v2272_v53  ;;  %v2435_v34 = vadd.f32 %v2434_v6, %v2292_v5 }
 0xd84   : > { %v2727_v40 = vmul.f32 -1.442695, %v2415_v8  ;;  %v2728_v18 = vmul.f32 -1.442695, %v2435_v34 }
 0xd86   : > { %2933 = vpow2.f32 %v2727_v40 }
 0xd87   : > { %2935 = vpow2.f32 %v2728_v18 }
 0xd8c   : > { %v2934_v45 = vpop.eup %2933 }
 0xd8d   : > { %v2936_v13 = vpop.eup %2935  ;;  %v2443_v25 = vadd.f32 1.0, %v2934_v45 }
 0xd8e   : > { %v2444_v0 = vadd.f32 1.0, %v2936_v13 }
 0xd8f   : > { %2937 = vrcp.f32 %v2443_v25  ;;  %v2456_v37 = vand.u32 2147483648, %v2443_v25  ;;  %vm2450_vm2 = vweird.f32 %v2443_v25  ;;  %v2454_v62 = vand.u32 2147483647, %v2443_v25 }
 0xd90   : > { %2939 = vrcp.f32 %v2444_v0  ;;  %v2471_v55 = vand.u32 2147483648, %v2444_v0  ;;  %v2469_v15 = vand.u32 2147483647, %v2444_v0  ;;  %vm2465_vm13 = vweird.f32 %v2444_v0 }
 0xd91   : > { %v2457_v28 = vor.u32 1.1754944e-38, %v2456_v37  ;;  %vm2455_vm4 = vcmp.eq.f32.partialorder %v2454_v62, 8.507059e+37 }
 0xd92   : > { %v2472_v22 = vor.u32 1.1754944e-38, %v2471_v55  ;;  %vm2470_vm0 = vcmp.eq.f32.partialorder %v2469_v15, 8.507059e+37 }
 0xd95   : > { %v2938_v3 = vpop.eup %2937 }
 0xd96   : > { %v2940_v7 = vpop.eup %2939  ;;  %v2446_v21 = vmul.f32 %v2938_v3, %v2443_v25  ;;  %vm2451_vm14 = vweird.f32 %v2938_v3 }
 0xd97   : > { %v2461_v58 = vmul.f32 %v2940_v7, %v2444_v0  ;;  %vm2466_vm12 = vweird.f32 %v2940_v7  ;;  %vm2452_vm3 = vmor %vm2450_vm2, %vm2451_vm14 }
 0xd98   : > { %v2447_v4 = vsub.f32 1.0, %v2446_v21  ;;  %vm2467_vm15 = vmor %vm2465_vm13, %vm2466_vm12 }
 0xd99   : > { %v2462_v29 = vsub.f32 1.0, %v2461_v58 }
 0xd9a   : > { %v2448_v24 = vmul.f32 %v2938_v3, %v2447_v4 }
 0xd9b   : > { %v2463_v14 = vmul.f32 %v2940_v7, %v2462_v29 }
 0xd9c   : > { %v2449_v10 = vadd.f32 %v2938_v3, %v2448_v24 }
 0xd9d   : > { %v2464_v60 = vadd.f32 %v2940_v7, %v2463_v14 }
 0xd9e   : > { %v2453_v61 = vsel %vm2452_vm3, %v2938_v3, %v2449_v10 }
 0xd9f   : > { %v2468_v36 = vsel %vm2467_vm15, %v2940_v7, %v2464_v60  ;;  %v2458_v31 = vsel %vm2455_vm4, %v2457_v28, %v2453_v61 }
 0xda0   : > { %v2473_v52 = vsel %vm2470_vm0, %v2472_v22, %v2468_v36  ;;  %v2481_v35 = vmul.f32 %v2458_v31, %v4242_v48 }
 0xda1   : > { %v2476_v27 = vmul.f32 2.0, %v2473_v52 }
 0xda3   : > { %v2730_v30 = vadd.f32 -1.0, %v2476_v27 }
 0xda5   : > { %v2480_v32 = vsel %vm546_vm10, %v2730_v30, %v2473_v52 }
 0xda6   : > { %v2482_v33 = vmul.f32 %v2480_v32, %v2458_v31 }
 0xda8   : > { %2484 = vrot.lane.b32.xlu2 %v2482_v33, %s3104_s14 }
 0xe02   : > { %v2485_v38 = vpop.permute.xlu2 %2484 }
 0xe03   : > { %v2487_v39 = vadd.f32 %v2485_v38, %v2481_v35 }
 0xe05   : > { %2941 = vtanh.f32 %v2487_v39  ;;  %2503 = vrot.lane.b32.xlu2 %v2487_v39, %s3104_s14 }
 0xe0b   : > { %v2942_v56 = vpop.eup %2941 }
 0xe0c   : > { %v2489_v23 = vmul.f32 %v2942_v56, %v2480_v32 }
 0xe0e   : > { %2498 = vrot.lane.b32.xlu1 %v2489_v23, %s3104_s14 }
 0xe5f   : > { %v2504_v19 = vpop.permute.xlu2 %2503 }
 0xe60   : > { %2506 = vst.msk [vmem:[#allocation5] sm:$0xff] %vm553_vm1, %v2504_v19 }
 0xe80   : > { %v2499_v49 = vpop.permute.xlu1 %2498 }
 0xe81   : > { %2501 = vst.msk [vmem:[#allocation4] sm:$0xff] %vm553_vm1, %v2499_v49 }
 0xe82   : > { %2507 = vst.msk [vmem:[%s4283_s7] sm:$0xff] %vm553_vm1, %v2499_v49 }
 0xe83 PF: > { %s19_s26 = sadd.s32 1, %s3097_s26   ;;  %s4468_s24 = smov %s3093_s25 }
 0xe84   : > { %p16_p9 = scmp.ge.s32.totalorder %s19_s26, 4   ;;  %s4469_s25 = smov %s4471_s28 }
 0xe86   :  { %18 = sbr.rel (!%p16_p9) target bundleno = 3 (0x3), region = 98 }
 0xe8b   :  { %2527 = vsyncpa [#allocation8], 1 }
 0xe8c   :  { %2529 = vsyncpa [#allocation8 + $0x1], 1 }
 0xe8d   :  { %2530 = vsyncpa [#allocation10], 1 }

</bundles_post_ra>
